<compile_context>
chip_gen: v6e
topology: v6e:2x2x1
jax: 0.10.0
libtpu: 0.0.40
codegen_flags: <defaults>
</compile_context>

<pallas_src>
import functools

import jax
import jax.numpy as jnp
from jax.experimental import pallas as pl
from jax.experimental.pallas import tpu as pltpu


def routing_kernel(neigh_ref, self_ref, w_ref, b_ref, g_ref, out_ref, lhs_ref, *,
                   TM, Nn, K, H, max_iter, inv_tau, routing_dtype, mxu_highest,
                   approx_recip):
    Din = w_ref.shape[0]
    Dout = w_ref.shape[1]          # = K * H (lane-dense, 128 in this config)
    R = TM * Nn                    # neighbor rows in this tile
    prec = jax.lax.Precision.HIGHEST if mxu_highest else None
    g = g_ref[...]                 # [Dout, Dout] 0/1 capsule selector, compute dtype

    def mxu(a, m):
        return jnp.dot(a, m, preferred_element_type=jnp.float32, precision=prec)

    def seg_sum(x2d):
        # Per-capsule (H-lane group) segmented sum, broadcast back to every lane
        # of the group -> stays lane-dense. One MXU matmul (MXU otherwise idle).
        return mxu(x2d.astype(g.dtype), g)

    def l2_normalize(x2d):
        # torch F.normalize(dim=-1) per capsule: x / max(||x||, 1e-12)
        xs = x2d.astype(g.dtype)
        ss = mxu(xs * xs, g)
        inv = jax.lax.rsqrt(jnp.maximum(ss, 1e-24))
        return (x2d * inv).astype(routing_dtype)

    def cross_capsule_sum(x2d):
        # x2d is constant within each H-lane capsule group, so the sum over the
        # K capsules equals a sum of rolls by multiples of H (XLU, cheap).
        if K & (K - 1) == 0:                       # power-of-two K: log tree
            t, s = x2d, H
            while s < Dout:
                t = t + pltpu.roll(t, shift=s, axis=x2d.ndim - 1)
                s *= 2
            return t
        t = x2d
        for k in range(1, K):
            t = t + pltpu.roll(x2d, shift=k * H, axis=x2d.ndim - 1)
        return t

    def recip(x):
        return pl.reciprocal(x, approx=True) if approx_recip else 1.0 / x

    # ---- fc1: one fused MXU matmul over [neighbors ; self] rows -------------
    # Inputs already arrive in compute dtype; staging into the shared VMEM
    # scratch just lays them out contiguously for a single fused matmul.
    lhs_ref[pl.ds(0, R), :] = neigh_ref[...].reshape(R, Din)
    lhs_ref[pl.ds(R, TM), :] = self_ref[...]
    z = mxu(lhs_ref[...], w_ref[...])
    z = jnp.maximum(z + b_ref[...], 0.0)           # single bias broadcast + ReLU

    # ---- single merged per-capsule L2 normalization over all rows -----------
    zn = l2_normalize(z)                           # [(Nn+1)*TM, Dout], routing dtype
    neigh_zn3 = zn[:R].reshape(TM, Nn, Dout)
    self_zn_f32 = zn[R:].astype(jnp.float32)

    # ---- routing iterations (max_iter static -> unrolled) --------------------
    # Iteration 0: softmax over zero logits is uniform (1/K per capsule).
    u = jnp.sum(neigh_zn3, axis=1, dtype=jnp.float32) * (1.0 / K) + self_zn_f32
    if max_iter > 1:
        un = l2_normalize(u)                       # routing dtype, per-capsule unit

    for it in range(1, max_iter):
        # Fold 1/tau into the small [TM, Dout] broadcast operand, not the
        # [TM*Nn, Dout] logits (8x fewer elements touched).
        if inv_tau == 1.0:
            ub = un
        else:
            ub = (un.astype(jnp.float32) * inv_tau).astype(routing_dtype)
        prod = neigh_zn3 * ub[:, None, :]                       # [TM, Nn, Dout]
        logits = seg_sum(prod.reshape(R, Dout))                 # per-capsule <u, n> / tau
        e = jnp.exp(logits)                  # |logits| <= 1/tau: no max-subtract needed
        p = (e * recip(cross_capsule_sum(e))).astype(routing_dtype)  # softmax over K
        u = jnp.sum(neigh_zn3 * p.reshape(TM, Nn, Dout), axis=1,
                    dtype=jnp.float32) + self_zn_f32
        if it < max_iter - 1:
            un = l2_normalize(u)

    out_ref[...] = jnp.maximum(u, 0.0).astype(out_ref.dtype)


def _default_tiling():
    """Generation-aware (tm, vmem_limit_bytes) defaults."""
    try:
        vmem_cap = pltpu.get_tpu_info().vmem_capacity_bytes
    except Exception:
        vmem_cap = 64 * 1024 * 1024
    if vmem_cap >= 100 * 1024 * 1024:       # v5e / v6e: 128 MiB VMEM
        return 1024, 80 * 1024 * 1024
    return 512, 40 * 1024 * 1024            # v7x: 64 MiB VMEM per TensorCore


def routing_layer(self_vectors, neighbor_vectors, w, b, *, out_caps, nhidden,
                  max_iter, tau=1.0, tm=None, use_bf16_matmul=True,
                  bf16_routing_state=True, approx_recip=True,
                  vmem_limit_bytes=None):
    """Pallas TPU forward for RoutingLayer (eval mode).

    use_bf16_matmul:   bf16 MXU operands (fc1, selector seg-sums), f32 accumulation.
    bf16_routing_state: keep the large routing-loop temporaries in bf16
                       (recommended on v6e/v7x; set False on v5e: no bf16 VPU).
    tm / vmem_limit_bytes: default to generation-aware values (1024/80MiB on
                       128-MiB v5e/v6e, 512/40MiB on 64-MiB v7x).
    """
    B, N, Din = self_vectors.shape
    Nn = neighbor_vectors.shape[2]
    K, H = out_caps, nhidden
    Dout = K * H
    M = B * N

    if 1.0 / tau > 80.0:
        raise NotImplementedError(
            "softmax without max-subtraction overflows f32 for tau < ~0.0125")

    d_tm, d_vmem = _default_tiling()
    tm = d_tm if tm is None else tm
    vmem_limit_bytes = d_vmem if vmem_limit_bytes is None else vmem_limit_bytes

    tm = max(8, (tm // 8) * 8)              # keep (8,128)-friendly sublane tiling
    if M < 32:
        tm = min(tm, M)                      # tiny problem: single tile
    else:
        # Never collapse to 1 grid step: keep >= ~4 steps so v7x's two
        # TensorCores both get work and DMA overlaps compute.
        tm = min(tm, max(8, ((pl.cdiv(M, 4) + 7) // 8) * 8))
    grid = (pl.cdiv(M, tm),)

    compute_dtype = jnp.bfloat16 if use_bf16_matmul else jnp.float32
    routing_dtype = jnp.bfloat16 if (use_bf16_matmul and bf16_routing_state) \
        else jnp.float32

    # Stage inputs / weights / selector in compute dtype at the call boundary
    # (halves HBM->VMEM DMA and in-kernel casts; keep them bf16 upstream if possible).
    self2 = self_vectors.reshape(M, Din).astype(compute_dtype)
    neigh3 = neighbor_vectors.reshape(M, Nn, Din).astype(compute_dtype)
    w_c = jnp.asarray(w).astype(compute_dtype)
    b2 = jnp.asarray(b, jnp.float32).reshape(1, Dout)

    # One-hot capsule selector: G[i, j] = 1 iff lanes i, j belong to the same
    # H-lane capsule group. x @ G = per-capsule segmented sum broadcast to lanes.
    lane = jnp.arange(Dout)
    G = (lane[:, None] // H == lane[None, :] // H).astype(compute_dtype)

    kernel = functools.partial(
        routing_kernel, TM=tm, Nn=Nn, K=K, H=H, max_iter=max_iter,
        inv_tau=float(1.0 / tau), routing_dtype=routing_dtype,
        mxu_highest=(compute_dtype == jnp.float32), approx_recip=approx_recip)

    out = pl.pallas_call(
        kernel,
        out_shape=jax.ShapeDtypeStruct((M, Dout), jnp.float32),
        grid_spec=pltpu.PrefetchScalarGridSpec(
            num_scalar_prefetch=0,
            grid=grid,
            in_specs=[
                pl.BlockSpec((tm, Nn, Din), lambda i: (i, 0, 0)),   # neighbors
                pl.BlockSpec((tm, Din), lambda i: (i, 0)),          # self
                pl.BlockSpec((Din, Dout), lambda i: (0, 0)),        # fc1 weight
                pl.BlockSpec((1, Dout), lambda i: (0, 0)),          # fc1 bias (f32)
                pl.BlockSpec((Dout, Dout), lambda i: (0, 0)),       # capsule selector
            ],
            out_specs=pl.BlockSpec((tm, Dout), lambda i: (i, 0)),
            scratch_shapes=[pltpu.VMEM(((Nn + 1) * tm, Din), compute_dtype)],
        ),
        compiler_params=pltpu.CompilerParams(
            dimension_semantics=("parallel",),       # v7x: shard grid over 2 TCs
            vmem_limit_bytes=vmem_limit_bytes),
    )(neigh3, self2, w_c, b2, G)

    return out.reshape(B, N, Dout)


def routing_layer_ref(self_vectors, neighbor_vectors, w, b, *, out_caps, nhidden,
                      max_iter, tau=1.0):
    """Plain-JAX reference mirroring the PyTorch forward (eval mode), true f32."""
    B, N, Din = self_vectors.shape
    Nn = neighbor_vectors.shape[2]
    K, H = out_caps, nhidden
    hp = jax.lax.Precision.HIGHEST

    self_z = jax.nn.relu(jnp.dot(self_vectors.reshape(-1, Din), w, precision=hp) + b)
    neigh_z = jax.nn.relu(jnp.dot(neighbor_vectors.reshape(-1, Din), w, precision=hp) + b)

    def l2n(x):
        n = jnp.sqrt(jnp.sum(x * x, axis=-1, keepdims=True))
        return x / jnp.maximum(n, 1e-12)

    self_zn = l2n(self_z.reshape(B, N, K, H))
    neigh_zn = l2n(neigh_z.reshape(B, N, Nn, K, H))

    u = None
    for it in range(max_iter):
        if u is None:
            p = jnp.zeros((B, N, Nn, K), jnp.float32)
        else:
            p = jnp.sum(neigh_zn * u.reshape(B, N, 1, K, H), axis=-1)
        p = jax.nn.softmax(p / tau, axis=-1)
        u = jnp.sum(neigh_zn * p[..., None], axis=2)
        u = u + self_zn
        if it < max_iter - 1:
            u = l2n(u)
    return jax.nn.relu(u.reshape(B, N, K * H))


if __name__ == "__main__":
    # Module config: layers=1, inp_caps=4, out_caps(k)=4, nhidden=32,
    # drop=0.0 (eval), tau=1.0, edge_feature_dim=0.
    B, N, Nn = 2, 4, 8
    inp_caps, out_caps, nhidden = 4, 4, 32
    Din = inp_caps * nhidden       # 128
    Dout = out_caps * nhidden      # 128
    max_iter = 3
    tau = 1.0

    key = jax.random.PRNGKey(0)
    k1, k2, k3, k4 = jax.random.split(key, 4)
    self_vectors = jax.random.normal(k1, (B, N, Din), dtype=jnp.float32)
    neighbor_vectors = jax.random.normal(k2, (B, N, Nn, Din), dtype=jnp.float32)
    w = jax.random.normal(k3, (Din, Dout), dtype=jnp.float32) * 0.05
    b = jax.random.normal(k4, (1, Dout), dtype=jnp.float32) * 0.05

    ref = routing_layer_ref(self_vectors, neighbor_vectors, w, b,
                            out_caps=out_caps, nhidden=nhidden,
                            max_iter=max_iter, tau=tau)

    # 1) Precise config (true f32 MXU matmuls, exact reciprocal): validates semantics.
    out_precise = routing_layer(self_vectors, neighbor_vectors, w, b,
                                out_caps=out_caps, nhidden=nhidden,
                                max_iter=max_iter, tau=tau,
                                use_bf16_matmul=False, bf16_routing_state=False,
                                approx_recip=False)
    out_precise = jax.block_until_ready(out_precise)
    assert out_precise.shape == (B, N, Dout)
    assert jnp.allclose(out_precise, ref, rtol=2e-3, atol=2e-3), \
        float(jnp.max(jnp.abs(out_precise - ref)))

    # 2) v5e-style config: bf16 MXU operands, f32 routing-loop state.
    out_v5e = routing_layer(self_vectors, neighbor_vectors, w, b,
                            out_caps=out_caps, nhidden=nhidden,
                            max_iter=max_iter, tau=tau,
                            use_bf16_matmul=True, bf16_routing_state=False,
                            approx_recip=True)
    out_v5e = jax.block_until_ready(out_v5e)
    assert out_v5e.shape == (B, N, Dout)
    assert jnp.allclose(out_v5e, ref, rtol=3e-2, atol=3e-2), \
        float(jnp.max(jnp.abs(out_v5e - ref)))

    # 3) Default fast config (v6e/v7x): bf16 end-to-end data path + EUP approx
    #    reciprocal -> intentionally reduced precision (semantics gated by #1).
    out_fast = routing_layer(self_vectors, neighbor_vectors, w, b,
                             out_caps=out_caps, nhidden=nhidden,
                             max_iter=max_iter, tau=tau)
    out_fast = jax.block_until_ready(out_fast)
    assert out_fast.shape == (B, N, Dout)
    assert jnp.allclose(out_fast, ref, rtol=5e-2, atol=5e-2), \
        float(jnp.max(jnp.abs(out_fast - ref)))

    print("KERNEL_OK")
</pallas_src>

<mosaic_0001>
module attributes {stable_mosaic.version = 11 : i64} {
  func.func @routing_kernel(%arg0: i32, %arg1: memref<8x8x128xf32, #tpu.memory_space<vmem>>, %arg2: memref<8x128xf32, #tpu.memory_space<vmem>>, %arg3: memref<128x128xf32, #tpu.memory_space<vmem>>, %arg4: memref<1x128xf32, #tpu.memory_space<vmem>>, %arg5: memref<128x128xf32, #tpu.memory_space<vmem>>, %arg6: memref<8x128xf32, #tpu.memory_space<vmem>>, %arg7: memref<72x128xf32, #tpu.memory_space<vmem>>) attributes {dimension_semantics = [#tpu.dimension_semantics<parallel>], iteration_bounds = array<i64: 1>, scalar_prefetch = 0 : i64, scratch_operands = 1 : i64, tpu.core_type = #tpu.core_type<tc>, window_params = [{transform_indices = @transform_0, window_bounds = array<i64: 8, 8, 128>}, {transform_indices = @transform_1, window_bounds = array<i64: 8, 128>}, {pipeline_mode = #tpu.pipeline_mode<synchronous>, transform_indices = @transform_2, window_bounds = array<i64: 128, 128>}, {pipeline_mode = #tpu.pipeline_mode<synchronous>, transform_indices = @transform_3, window_bounds = array<i64: 1, 128>}, {pipeline_mode = #tpu.pipeline_mode<synchronous>, transform_indices = @transform_4, window_bounds = array<i64: 128, 128>}, {transform_indices = @transform_5, window_bounds = array<i64: 8, 128>}]} {
    %c0 = arith.constant 0 : index
    %c0_0 = arith.constant 0 : index
    %0 = vector.load %arg5[%c0, %c0_0] : memref<128x128xf32, #tpu.memory_space<vmem>>, vector<128x128xf32>
    %c0_1 = arith.constant 0 : index
    %c0_2 = arith.constant 0 : index
    %c0_3 = arith.constant 0 : index
    %1 = vector.load %arg1[%c0_1, %c0_2, %c0_3] : memref<8x8x128xf32, #tpu.memory_space<vmem>>, vector<8x8x128xf32>
    %2 = vector.shape_cast %1 : vector<8x8x128xf32> to vector<64x128xf32>
    %c0_4 = arith.constant 0 : index
    %c0_5 = arith.constant 0 : index
    %3 = vector.load %arg7[%c0_4, %c0_5] : memref<72x128xf32, #tpu.memory_space<vmem>>, vector<64x128xf32>
    tpu.vector_store %arg7[%c0_4, %c0_5], %2 {strides = array<i32>} : memref<72x128xf32, #tpu.memory_space<vmem>>, vector<64x128xf32>,
    %c0_6 = arith.constant 0 : index
    %c0_7 = arith.constant 0 : index
    %4 = vector.load %arg2[%c0_6, %c0_7] : memref<8x128xf32, #tpu.memory_space<vmem>>, vector<8x128xf32>
    %c64 = arith.constant 64 : index
    %c0_8 = arith.constant 0 : index
    %5 = vector.load %arg7[%c64, %c0_8] : memref<72x128xf32, #tpu.memory_space<vmem>>, vector<8x128xf32>
    tpu.vector_store %arg7[%c64, %c0_8], %4 {strides = array<i32>} : memref<72x128xf32, #tpu.memory_space<vmem>>, vector<8x128xf32>,
    %c0_9 = arith.constant 0 : index
    %c0_10 = arith.constant 0 : index
    %6 = vector.load %arg7[%c0_9, %c0_10] : memref<72x128xf32, #tpu.memory_space<vmem>>, vector<72x128xf32>
    %c0_11 = arith.constant 0 : index
    %c0_12 = arith.constant 0 : index
    %7 = vector.load %arg3[%c0_11, %c0_12] : memref<128x128xf32, #tpu.memory_space<vmem>>, vector<128x128xf32>
    %cst = arith.constant dense<0.000000e+00> : vector<72x128xf32>
    %8 = tpu.matmul %6, %7, %cst {dimension_numbers = #tpu.dot_dimension_numbers<[1], [0], [0], [1], [0, 0, 1, 1], [], []>, precision = #tpu.contract_precision<fp32>} : vector<72x128xf32>, vector<128x128xf32>, vector<72x128xf32> -> vector<72x128xf32>
    %c0_13 = arith.constant 0 : index
    %c0_14 = arith.constant 0 : index
    %9 = vector.load %arg4[%c0_13, %c0_14] : memref<1x128xf32, #tpu.memory_space<vmem>>, vector<1x128xf32>
    %10 = vector.broadcast %9 : vector<1x128xf32> to vector<72x128xf32>
    %11 = arith.addf %8, %10 : vector<72x128xf32>
    %cst_15 = arith.constant 0.000000e+00 : f32
    %12 = vector.broadcast %cst_15 : f32 to vector<72x128xf32>
    %13 = arith.maximumf %11, %12 : vector<72x128xf32>
    %14 = arith.mulf %13, %13 : vector<72x128xf32>
    %cst_16 = arith.constant dense<0.000000e+00> : vector<72x128xf32>
    %15 = tpu.matmul %14, %0, %cst_16 {dimension_numbers = #tpu.dot_dimension_numbers<[1], [0], [0], [1], [0, 0, 1, 1], [], []>, precision = #tpu.contract_precision<fp32>} : vector<72x128xf32>, vector<128x128xf32>, vector<72x128xf32> -> vector<72x128xf32>
    %cst_17 = arith.constant 1.000000e-24 : f32
    %16 = vector.broadcast %cst_17 : f32 to vector<72x128xf32>
    %17 = arith.maximumf %15, %16 : vector<72x128xf32>
    %18 = math.rsqrt %17 : vector<72x128xf32>
    %19 = arith.mulf %13, %18 : vector<72x128xf32>
    %20 = vector.extract_strided_slice %19 {offsets = [0, 0], sizes = [64, 128], strides = [1, 1]} : vector<72x128xf32> to vector<64x128xf32>
    %21 = vector.shape_cast %20 : vector<64x128xf32> to vector<8x8x128xf32>
    %22 = vector.extract_strided_slice %19 {offsets = [64, 0], sizes = [8, 128], strides = [1, 1]} : vector<72x128xf32> to vector<8x128xf32>
    %cst_18 = arith.constant dense<0.000000e+00> : vector<8x128xf32>
    %23 = vector.multi_reduction <add>, %21, %cst_18 [1] : vector<8x8x128xf32> to vector<8x128xf32>
    %cst_19 = arith.constant 2.500000e-01 : f32
    %24 = vector.broadcast %cst_19 : f32 to vector<8x128xf32>
    %25 = arith.mulf %23, %24 : vector<8x128xf32>
    %26 = arith.addf %25, %22 : vector<8x128xf32>
    %27 = arith.mulf %26, %26 : vector<8x128xf32>
    %cst_20 = arith.constant dense<0.000000e+00> : vector<8x128xf32>
    %28 = tpu.matmul %27, %0, %cst_20 {dimension_numbers = #tpu.dot_dimension_numbers<[1], [0], [0], [1], [0, 0, 1, 1], [], []>, precision = #tpu.contract_precision<fp32>} : vector<8x128xf32>, vector<128x128xf32>, vector<8x128xf32> -> vector<8x128xf32>
    %cst_21 = arith.constant 1.000000e-24 : f32
    %29 = vector.broadcast %cst_21 : f32 to vector<8x128xf32>
    %30 = arith.maximumf %28, %29 : vector<8x128xf32>
    %31 = math.rsqrt %30 : vector<8x128xf32>
    %32 = arith.mulf %26, %31 : vector<8x128xf32>
    %33 = vector.shape_cast %32 : vector<8x128xf32> to vector<8x1x128xf32>
    %34 = vector.broadcast %33 : vector<8x1x128xf32> to vector<8x8x128xf32>
    %35 = arith.mulf %21, %34 : vector<8x8x128xf32>
    %36 = vector.shape_cast %35 : vector<8x8x128xf32> to vector<64x128xf32>
    %cst_22 = arith.constant dense<0.000000e+00> : vector<64x128xf32>
    %37 = tpu.matmul %36, %0, %cst_22 {dimension_numbers = #tpu.dot_dimension_numbers<[1], [0], [0], [1], [0, 0, 1, 1], [], []>, precision = #tpu.contract_precision<fp32>} : vector<64x128xf32>, vector<128x128xf32>, vector<64x128xf32> -> vector<64x128xf32>
    %38 = math.exp %37 : vector<64x128xf32>
    %c32_i32 = arith.constant 32 : i32
    %39 = tpu.dynamic_rotate %38 by %c32_i32 dim 1 : vector<64x128xf32>, i32 -> vector<64x128xf32>
    %40 = arith.addf %38, %39 : vector<64x128xf32>
    %c64_i32 = arith.constant 64 : i32
    %41 = tpu.dynamic_rotate %40 by %c64_i32 dim 1 : vector<64x128xf32>, i32 -> vector<64x128xf32>
    %42 = arith.addf %40, %41 : vector<64x128xf32>
    %cst_23 = arith.constant 1.000000e+00 : f32
    %43 = vector.broadcast %cst_23 : f32 to vector<64x128xf32>
    %44 = arith.divf %43, %42 : vector<64x128xf32>
    %45 = arith.mulf %38, %44 : vector<64x128xf32>
    %46 = vector.shape_cast %45 : vector<64x128xf32> to vector<8x8x128xf32>
    %47 = arith.mulf %21, %46 : vector<8x8x128xf32>
    %cst_24 = arith.constant dense<0.000000e+00> : vector<8x128xf32>
    %48 = vector.multi_reduction <add>, %47, %cst_24 [1] : vector<8x8x128xf32> to vector<8x128xf32>
    %49 = arith.addf %48, %22 : vector<8x128xf32>
    %50 = arith.mulf %49, %49 : vector<8x128xf32>
    %cst_25 = arith.constant dense<0.000000e+00> : vector<8x128xf32>
    %51 = tpu.matmul %50, %0, %cst_25 {dimension_numbers = #tpu.dot_dimension_numbers<[1], [0], [0], [1], [0, 0, 1, 1], [], []>, precision = #tpu.contract_precision<fp32>} : vector<8x128xf32>, vector<128x128xf32>, vector<8x128xf32> -> vector<8x128xf32>
    %cst_26 = arith.constant 1.000000e-24 : f32
    %52 = vector.broadcast %cst_26 : f32 to vector<8x128xf32>
    %53 = arith.maximumf %51, %52 : vector<8x128xf32>
    %54 = math.rsqrt %53 : vector<8x128xf32>
    %55 = arith.mulf %49, %54 : vector<8x128xf32>
    %56 = vector.shape_cast %55 : vector<8x128xf32> to vector<8x1x128xf32>
    %57 = vector.broadcast %56 : vector<8x1x128xf32> to vector<8x8x128xf32>
    %58 = arith.mulf %21, %57 : vector<8x8x128xf32>
    %59 = vector.shape_cast %58 : vector<8x8x128xf32> to vector<64x128xf32>
    %cst_27 = arith.constant dense<0.000000e+00> : vector<64x128xf32>
    %60 = tpu.matmul %59, %0, %cst_27 {dimension_numbers = #tpu.dot_dimension_numbers<[1], [0], [0], [1], [0, 0, 1, 1], [], []>, precision = #tpu.contract_precision<fp32>} : vector<64x128xf32>, vector<128x128xf32>, vector<64x128xf32> -> vector<64x128xf32>
    %61 = math.exp %60 : vector<64x128xf32>
    %c32_i32_28 = arith.constant 32 : i32
    %62 = tpu.dynamic_rotate %61 by %c32_i32_28 dim 1 : vector<64x128xf32>, i32 -> vector<64x128xf32>
    %63 = arith.addf %61, %62 : vector<64x128xf32>
    %c64_i32_29 = arith.constant 64 : i32
    %64 = tpu.dynamic_rotate %63 by %c64_i32_29 dim 1 : vector<64x128xf32>, i32 -> vector<64x128xf32>
    %65 = arith.addf %63, %64 : vector<64x128xf32>
    %cst_30 = arith.constant 1.000000e+00 : f32
    %66 = vector.broadcast %cst_30 : f32 to vector<64x128xf32>
    %67 = arith.divf %66, %65 : vector<64x128xf32>
    %68 = arith.mulf %61, %67 : vector<64x128xf32>
    %69 = vector.shape_cast %68 : vector<64x128xf32> to vector<8x8x128xf32>
    %70 = arith.mulf %21, %69 : vector<8x8x128xf32>
    %cst_31 = arith.constant dense<0.000000e+00> : vector<8x128xf32>
    %71 = vector.multi_reduction <add>, %70, %cst_31 [1] : vector<8x8x128xf32> to vector<8x128xf32>
    %72 = arith.addf %71, %22 : vector<8x128xf32>
    %cst_32 = arith.constant 0.000000e+00 : f32
    %73 = vector.broadcast %cst_32 : f32 to vector<8x128xf32>
    %74 = arith.maximumf %72, %73 : vector<8x128xf32>
    %c0_33 = arith.constant 0 : index
    %c0_34 = arith.constant 0 : index
    %75 = vector.load %arg6[%c0_33, %c0_34] : memref<8x128xf32, #tpu.memory_space<vmem>>, vector<8x128xf32>
    tpu.vector_store %arg6[%c0_33, %c0_34], %74 {strides = array<i32>} : memref<8x128xf32, #tpu.memory_space<vmem>>, vector<8x128xf32>,
    return
  }
  func.func @transform_0(%arg0: i32) -> (i32, i32, i32) {
    %c0_i32 = arith.constant 0 : i32
    %c0_i32_0 = arith.constant 0 : i32
    %c0_i32_1 = arith.constant 0 : i32
    return %arg0, %c0_i32, %c0_i32_0 : i32, i32, i32
  }
  func.func @transform_1(%arg0: i32) -> (i32, i32) {
    %c0_i32 = arith.constant 0 : i32
    %c0_i32_0 = arith.constant 0 : i32
    return %arg0, %c0_i32 : i32, i32
  }
  func.func @transform_2(%arg0: i32) -> (i32, i32) {
    %c0_i32 = arith.constant 0 : i32
    %c0_i32_0 = arith.constant 0 : i32
    %c0_i32_1 = arith.constant 0 : i32
    return %c0_i32, %c0_i32_0 : i32, i32
  }
  func.func @transform_3(%arg0: i32) -> (i32, i32) {
    %c0_i32 = arith.constant 0 : i32
    %c0_i32_0 = arith.constant 0 : i32
    %c0_i32_1 = arith.constant 0 : i32
    return %c0_i32, %c0_i32_0 : i32, i32
  }
  func.func @transform_4(%arg0: i32) -> (i32, i32) {
    %c0_i32 = arith.constant 0 : i32
    %c0_i32_0 = arith.constant 0 : i32
    %c0_i32_1 = arith.constant 0 : i32
    return %c0_i32, %c0_i32_0 : i32, i32
  }
  func.func @transform_5(%arg0: i32) -> (i32, i32) {
    %c0_i32 = arith.constant 0 : i32
    %c0_i32_0 = arith.constant 0 : i32
    return %arg0, %c0_i32 : i32, i32
  }
}

</mosaic_0001>

<bundles_post_ra>
// kernel: tpu_custom_call.1
= control target key start
LH: loop header
LB: loop body
LE: loop exit
PB: predicated region body
PF: predicated region fallthrough
CT: control target
= control target key end

     0   :  { %10 = vsyncpa [#allocation4], 0  ;;  %s11388_s0 = inlined_call_operand.hbm [shape: f32[8,8,128], index: 0, kind: input, shape index: {}]   ;;  %s11389_s1 = inlined_call_operand.hbm [shape: f32[8,128], index: 1, kind: input, shape index: {}]   ;;  %s11390_s2 = inlined_call_operand.hbm [shape: f32[128,128], index: 2, kind: input, shape index: {}]   ;;  %s11391_s3 = inlined_call_operand.vmem [shape: f32[1,128], index: 3, kind: input, shape index: {}]   ;;  %s11392_s4 = inlined_call_operand.hbm [shape: f32[128,128], index: 4, kind: input, shape index: {}]   ;;  %s11393_s5 = inlined_call_operand.hbm [shape: f32[8,128], index: 5, kind: output, shape index: {}]  }
   0x1   :  { %11 = vsyncpa [#allocation7], 0 }
   0x2   :  { %12 = vsyncpa [#allocation10], 0 }
   0x3   :  { %13 = vsyncpa [#allocation5], 0  ;;  %s8609_s18 = smov [#allocation6]   ;;  %s8610_s20 = smov [#allocation3]  }
   0x4   :  { %s32_s19 = sshll.u32 %s8609_s18, 4  ;;  %s19_s21 = sshll.u32 %s8610_s20, 4  ;;  %s33_s19 = int_to_ptr.vmem [resolvable:$true] %s32_s19  ;;  %s20_s21 = int_to_ptr.vmem [resolvable:$true] %s19_s21 }
   0x5   :  { %s8509_s22 = scalar_lea.vmem %s33_s19, 128  ;;  %p8514_p1 = scmp.lt.s32.totalorder %s33_s19, %s33_s19 }
   0x6   :  { %p8510_p0 = scmp.ne.s32.totalorder %s33_s19, %s8509_s22  ;;  %p8515_p2 = scmp.lt.s32.totalorder %s8509_s22, %s8509_s22 }
   0x8   :  { %p8516_p3 = por %p8515_p2, %p8514_p1 }
   0xa   :  { %p8517_p4 = pnand %p8516_p3, %p8510_p0 }
   0xc   :  { %8520 = shalt.err (!%p8517_p4)
}
   0xd   :  { %35 = dma.hbm_to_vmem [thread:$0]  %s11389_s1, 128, %s33_s19, [#allocation7]  }
   0xe   :  { %s8529_s25 = scalar_lea.vmem %s20_s21, 1024  ;;  %p8534_p6 = scmp.lt.s32.totalorder %s20_s21, %s20_s21 }
   0xf   :  { %p8530_p5 = scmp.ne.s32.totalorder %s20_s21, %s8529_s25  ;;  %p8535_p7 = scmp.lt.s32.totalorder %s8529_s25, %s8529_s25 }
  0x11   :  { %p8536_p8 = por %p8535_p7, %p8534_p6 }
  0x13   :  { %p8537_p9 = pnand %p8536_p8, %p8530_p5 }
  0x15   :  { %8540 = shalt.err (!%p8537_p9)
}
  0x16   :  { %s8611_s26 = smov 128   ;;  %s8612_s27 = smov 8  }
  0x17   :  { %25 = dma.hbm_to_vmem [thread:$0]  %s11388_s0, 1024, %s20_s21, [#allocation4], %s8611_s26, %s8611_s26, %s8612_s27  }
  0x18   :  { %s8613_s30 = smov [#allocation8]   ;;  %s8614_s7 = smov [#allocation9]  }
  0x19   :  { %s41_s6 = sshll.u32 %s8613_s30, 4  ;;  %s55_s8 = sshll.u32 %s8614_s7, 4  ;;  %s42_s6 = int_to_ptr.vmem [resolvable:$true] %s41_s6  ;;  %s56_s8 = int_to_ptr.vmem [resolvable:$true] %s55_s8 }
  0x1a   :  { %s8549_s1 = scalar_lea.vmem %s42_s6, 2048  ;;  %p8554_p11 = scmp.lt.s32.totalorder %s42_s6, %s42_s6 }
  0x1b   :  { %p8550_p10 = scmp.ne.s32.totalorder %s42_s6, %s8549_s1  ;;  %p8555_p12 = scmp.lt.s32.totalorder %s8549_s1, %s8549_s1 }
  0x1d   :  { %p8556_p13 = por %p8555_p12, %p8554_p11 }
  0x1f   :  { %p8557_p0 = pnand %p8556_p13, %p8550_p10 }
  0x21   :  { %8560 = shalt.err (!%p8557_p0)
}
  0x22   :  { %47 = dma.hbm_to_vmem [thread:$0]  %s11390_s2, 2048, %s42_s6, [#allocation7], %s8611_s26, %s8611_s26, %s8612_s27  }
  0x23   :  { %s8569_s11 = scalar_lea.vmem %s56_s8, 2048  ;;  %p8574_p2 = scmp.lt.s32.totalorder %s56_s8, %s56_s8 }
  0x24   :  { %p8570_p1 = scmp.ne.s32.totalorder %s56_s8, %s8569_s11  ;;  %p8575_p3 = scmp.lt.s32.totalorder %s8569_s11, %s8569_s11 }
  0x26   :  { %p8576_p4 = por %p8575_p3, %p8574_p2 }
  0x28   :  { %p8577_p5 = pnand %p8576_p4, %p8570_p1 }
  0x2a   :  { %8580 = shalt.err (!%p8577_p5)
}
  0x2b   :  { %61 = dma.hbm_to_vmem [thread:$0]  %s11392_s4, 2048, %s56_s8, [#allocation10], %s8611_s26, %s8611_s26, %s8612_s27  }
  0x2c   :  { %8601 = dma.done.wait [#allocation4], 1024  }
  0x2d   :  { %8602 = vsyncadd [#allocation4], 4294966272 }
  0x2e   :  { %8603 = dma.done.wait [#allocation7], 2176  }
  0x2f   :  { %8604 = vsyncadd [#allocation7], 4294965120 }
  0x30   :  { %8605 = dma.done.wait [#allocation10], 2048  }
  0x31   :  { %8606 = vsyncadd [#allocation10], 4294965248  ;;  %v11442_v0 = vmov 0.0   ;;  %vm8616_vm0 = vmmov 0   ;;  %v132_v1 = vld [vmem:[#allocation8 + $0x78] sm:$0xff]  ;;  %v131_v2 = vld [vmem:[#allocation8 + $0x70] sm:$0xff] }
  0x32   :  { %6748 = vmatprep.subr.mxu0 %v11442_v0  ;;  %6807 = vmatprep.subr.mxu1 %v11442_v0  ;;  %v130_v3 = vld [vmem:[#allocation8 + $0x68] sm:$0xff]  ;;  %v8668_v4 = vand.u32 4294901760, %v132_v1  ;;  %v8670_v5 = vand.u32 4294901760, %v131_v2  ;;  %v129_v7 = vld [vmem:[#allocation8 + $0x60] sm:$0xff]  ;;  %v128_v8 = vld [vmem:[#allocation8 + $0x58] sm:$0xff]  ;;  %vm2252_vm1 = vcmask 1041409  }
  0x33   :  { %6780 = vmatprep.mubr.msk.f32.mxu0 %vm8616_vm0, %v11442_v0  ;;  %6839 = vmatprep.mubr.msk.f32.mxu1 %vm8616_vm0, %v11442_v0  ;;  %v8672_v6 = vand.u32 4294901760, %v130_v3  ;;  %v127_v9 = vld [vmem:[#allocation8 + $0x50] sm:$0xff]  ;;  %v8674_v10 = vand.u32 4294901760, %v129_v7  ;;  %v8676_v11 = vand.u32 4294901760, %v128_v8  ;;  %v126_v13 = vld [vmem:[#allocation8 + $0x48] sm:$0xff]  ;;  %v125_v14 = vld [vmem:[#allocation8 + $0x40] sm:$0xff] }
  0x34   :  { %v8678_v12 = vand.u32 4294901760, %v127_v9  ;;  %6749 = vmatpush3.msra.mxu0 %v8668_v4  ;;  %v8682_v15 = vsub.f32 %v132_v1, %v8668_v4  ;;  %v8685_v16 = vsub.f32 %v131_v2, %v8670_v5  ;;  %v8687_v17 = vand.u32 4294901760, %v126_v13  ;;  %v124_v19 = vld [vmem:[#allocation8 + $0x38] sm:$0xff]  ;;  %v123_v26 = vld [vmem:[#allocation8 + $0x30] sm:$0xff]  ;;  %v122_v36 = vld [vmem:[#allocation8 + $0x28] sm:$0xff]  ;;  %s8618_s13 = smov 64  }
  0x35   :  { %v8690_v18 = vsub.f32 %v130_v3, %v8672_v6  ;;  %6750 = vmatprep.subr.mxu0 %v11442_v0  ;;  %v8694_v20 = vsub.f32 %v129_v7, %v8674_v10  ;;  %v8697_v21 = vsub.f32 %v128_v8, %v8676_v11  ;;  %v8703_v25 = vand.u32 4294901760, %v125_v14  ;;  %v121_v41 = vld [vmem:[#allocation8 + $0x20] sm:$0xff]  ;;  %v90_v48 = vld [vmem:[#allocation3] sm:$0xff]  ;;  %v119_v54 = vld [vmem:[#allocation8 + $0x10] sm:$0xff]  ;;  %s8619_s14 = smov [#allocation11]  }
  0x36   :  { %6751 = vmatpush3.msra.mxu0 %v8670_v5  ;;  %v314_v22 = vand.u32 4294901760, %v8682_v15  ;;  %v321_v23 = vand.u32 4294901760, %v8685_v16  ;;  %v8707_v28 = vand.u32 4294901760, %v124_v19  ;;  %v8711_v30 = vsub.f32 %v127_v9, %v8678_v12  ;;  %v120_v50 = vld [vmem:[#allocation8 + $0x18] sm:$0xff]  ;;  %v118_v61 = vld [vmem:[#allocation8 + $0x8] sm:$0xff]  ;;  %v91_v63 = vld [vmem:[#allocation3 + $0x8] sm:$0xff] }
  0x37   :  { %v328_v24 = vand.u32 4294901760, %v8690_v18  ;;  %6752 = vmatprep.subr.mxu0 %v11442_v0  ;;  %v335_v27 = vand.u32 4294901760, %v8694_v20  ;;  %v342_v29 = vand.u32 4294901760, %v8697_v21  ;;  %v8724_v34 = vsub.f32 %v126_v13, %v8687_v17  ;;  %v117_v8 = vld [vmem:[#allocation8] sm:$0xff]  ;;  %s5944_s15 = sshll.u32 %s8619_s14, 4  ;;  %s5945_s15 = int_to_ptr.vmem [resolvable:$true] %s5944_s15 }
  0x38   :  { %6753 = vmatpush3.msra.mxu0 %v8672_v6  ;;  %v315_v31 = vsub.f32 %v8682_v15, %v314_v22  ;;  %v322_v32 = vsub.f32 %v8685_v16, %v321_v23  ;;  %v8727_v35 = vand.u32 4294901760, %v123_v26  ;;  %v349_v40 = vand.u32 4294901760, %v8711_v30  ;;  %s8581_s16 = scalar_lea.vmem %s5945_s15, 128  ;;  %p8586_p7 = scmp.lt.s32.totalorder %s5945_s15, %s5945_s15 }
  0x39   :  { %v329_v33 = vsub.f32 %v8690_v18, %v328_v24  ;;  %6754 = vmatprep.subr.mxu0 %v11442_v0  ;;  %v336_v39 = vsub.f32 %v8694_v20, %v335_v27  ;;  %v343_v42 = vsub.f32 %v8697_v21, %v342_v29  ;;  %v8739_v43 = vsub.f32 %v125_v14, %v8703_v25  ;;  %p8582_p6 = scmp.ne.s32.totalorder %s5945_s15, %s8581_s16  ;;  %p8587_p8 = scmp.lt.s32.totalorder %s8581_s16, %s8581_s16 }
  0x3a   :  { %6755 = vmatpush3.msra.mxu0 %v8674_v10  ;;  %v316_v37 = vand.u32 4294901760, %v315_v31  ;;  %v323_v38 = vand.u32 4294901760, %v322_v32  ;;  %v8742_v45 = vand.u32 4294901760, %v122_v36  ;;  %v11403_v46 = vand.u32 4294901760, %v8724_v34 }
  0x3b   :  { %6756 = vmatprep.subr.mxu0 %v11442_v0  ;;  %v330_v44 = vand.u32 4294901760, %v329_v33  ;;  %v8746_v47 = vsub.f32 %v124_v19, %v8707_v28  ;;  %v8750_v49 = vand.u32 4294901760, %v121_v41  ;;  %v337_v51 = vand.u32 4294901760, %v336_v39  ;;  %p8588_p9 = por %p8587_p8, %p8586_p7 }
  0x3c   :  { %6757 = vmatpush3.msra.mxu0 %v8676_v11  ;;  %6808 = vmatpush3.msra.mxu1 %v316_v37  ;;  %v350_v52 = vsub.f32 %v8711_v30, %v349_v40  ;;  %v11399_v53 = vand.u32 4294901760, %v8739_v43  ;;  %v8758_v55 = vsub.f32 %v123_v26, %v8727_v35  ;;  %v344_v56 = vand.u32 4294901760, %v343_v42 }
  0x3d   :  { %6758 = vmatprep.subr.mxu0 %v11442_v0  ;;  %6809 = vmatprep.subr.mxu1 %v11442_v0  ;;  %v8762_v57 = vand.u32 4294901760, %v90_v48  ;;  %v357_v58 = vsub.f32 %v8724_v34, %v11403_v46  ;;  %v8768_v59 = vand.u32 4294901760, %v120_v50  ;;  %v11398_v60 = vand.u32 4294901760, %v8746_v47  ;;  %p8589_p10 = pnand %p8588_p9, %p8582_p6 }
  0x3e   :  { %6759 = vmatpush3.msra.mxu0 %v8678_v12  ;;  %6810 = vmatpush3.msra.mxu1 %v323_v38  ;;  %v8772_v62 = vsub.f32 %v122_v36, %v8742_v45  ;;  %v8776_v1 = vand.u32 4294901760, %v119_v54  ;;  %v351_v2 = vand.u32 4294901760, %v350_v52  ;;  %v364_v3 = vsub.f32 %v8739_v43, %v11399_v53  ;;  %v92_v36 = vld [vmem:[#allocation3 + $0x10] sm:$0xff]  ;;  %v94_v53 = vld [vmem:[#allocation3 + $0x20] sm:$0xff] }
  0x3f   :  { %6760 = vmatprep.subr.mxu0 %v11442_v0  ;;  %6811 = vmatprep.subr.mxu1 %v11442_v0  ;;  %v11397_v7 = vand.u32 4294901760, %v8758_v55  ;;  %v8784_v9 = vsub.f32 %v121_v41, %v8750_v49  ;;  %v8788_v13 = vand.u32 4294901760, %v118_v61  ;;  %v8791_v14 = vsub.f32 %v90_v48, %v8762_v57 }
  0x40   :  { %6761 = vmatpush3.msra.mxu0 %v8687_v17  ;;  %6812 = vmatpush3.msra.mxu1 %v330_v44  ;;  %v8793_v19 = vand.u32 4294901760, %v91_v63  ;;  %v358_v26 = vand.u32 4294901760, %v357_v58  ;;  %v371_v31 = vsub.f32 %v8746_v47, %v11398_v60  ;;  %v11395_v32 = vand.u32 4294901760, %v8772_v62  ;;  %v93_v58 = vld [vmem:[#allocation3 + $0x18] sm:$0xff] }
  0x41   :  { %6762 = vmatprep.subr.mxu0 %v11442_v0  ;;  %6813 = vmatprep.subr.mxu1 %v11442_v0  ;;  %v8801_v33 = vsub.f32 %v120_v50, %v8768_v59  ;;  %v8805_v37 = vand.u32 4294901760, %v117_v8  ;;  %v365_v38 = vand.u32 4294901760, %v364_v3  ;;  %v378_v39 = vsub.f32 %v8758_v55, %v11397_v7 }
  0x42   :  { %6763 = vmatpush3.msra.mxu0 %v8703_v25  ;;  %6814 = vmatpush3.msra.mxu1 %v337_v51  ;;  %v11394_v41 = vand.u32 4294901760, %v8784_v9  ;;  %v8813_v42 = vsub.f32 %v119_v54, %v8776_v1  ;;  %v223_v44 = vand.u32 4294901760, %v8791_v14  ;;  %v8819_v48 = vsub.f32 %v91_v63, %v8793_v19 }
  0x43   :  { %6764 = vmatprep.subr.mxu0 %v11442_v0  ;;  %6815 = vmatprep.subr.mxu1 %v11442_v0  ;;  %v8821_v50 = vand.u32 4294901760, %v92_v36  ;;  %v372_v51 = vand.u32 4294901760, %v371_v31  ;;  %v385_v52 = vsub.f32 %v8772_v62, %v11395_v32  ;;  %v11396_v54 = vand.u32 4294901760, %v8801_v33 }
  0x44   :  { %6765 = vmatpush3.msra.mxu0 %v8707_v28  ;;  %6816 = vmatpush3.msra.mxu1 %v344_v56  ;;  %v8829_v56 = vsub.f32 %v118_v61, %v8788_v13  ;;  %v379_v63 = vand.u32 4294901760, %v378_v39  ;;  %v11400_v3 = vand.u32 4294901760, %v8813_v42  ;;  %v224_v61 = vsub.f32 %v8791_v14, %v223_v44 }
  0x45   :  { %6766 = vmatprep.subr.mxu0 %v11442_v0  ;;  %6817 = vmatprep.subr.mxu1 %v11442_v0  ;;  %v233_v31 = vand.u32 4294901760, %v8819_v48  ;;  %v386_v39 = vand.u32 4294901760, %v385_v52  ;;  %v8855_v32 = vand.u32 4294901760, %v93_v58  ;;  %vm2255_vm2 = vcmask 1042434  }
  0x46   :  { %6767 = vmatpush3.msra.mxu0 %v8727_v35  ;;  %6818 = vmatpush3.msra.mxu1 %v351_v2  ;;  %v392_v2 = vsub.f32 %v8784_v9, %v11394_v41  ;;  %v11401_v41 = vand.u32 4294901760, %v8829_v56  ;;  %vm2258_vm3 = vcmask 1043459   ;;  %vm2261_vm4 = vcmask 1044484  }
  0x47   :  { %6768 = vmatprep.subr.mxu0 %v11442_v0  ;;  %6819 = vmatprep.subr.mxu1 %v11442_v0  ;;  %v234_v7 = vsub.f32 %v8819_v48, %v233_v31  ;;  %vm2264_vm5 = vcmask 1045509   ;;  %vm2267_vm6 = vcmask 1046534   ;;  %vm2270_vm7 = vcmask 1047559  }
  0x48   :  { %6769 = vmatpush3.msra.mxu0 %v8742_v45  ;;  %6820 = vmatpush3.msra.mxu1 %v358_v26  ;;  %v8839_v26 = vsub.f32 %v117_v8, %v8805_v37  ;;  %v399_v8 = vsub.f32 %v8801_v33, %v11396_v54  ;;  %v225_v54 = vand.u32 4294901760, %v224_v61 }
  0x49   :  { %6770 = vmatprep.subr.mxu0 %v11442_v0  ;;  %6821 = vmatprep.subr.mxu1 %v11442_v0 }
  0x4a   :  { %6771 = vmatpush3.msra.mxu0 %v8750_v49  ;;  %6822 = vmatpush3.msra.mxu1 %v365_v38  ;;  %v8848_v38 = vsub.f32 %v92_v36, %v8821_v50  ;;  %v393_v36 = vand.u32 4294901760, %v392_v2  ;;  %v11402_v52 = vand.u32 4294901760, %v8839_v26  ;;  %v413_v2 = vsub.f32 %v8829_v56, %v11401_v41 }
  0x4b   :  { %6772 = vmatprep.subr.mxu0 %v11442_v0  ;;  %6823 = vmatprep.subr.mxu1 %v11442_v0  ;;  %v235_v41 = vand.u32 4294901760, %v234_v7 }
  0x4c   :  { %6773 = vmatpush3.msra.mxu0 %v8768_v59  ;;  %6824 = vmatpush3.msra.mxu1 %v372_v51  ;;  %v406_v51 = vsub.f32 %v8813_v42, %v11400_v3  ;;  %v11407_v60 = vand.u32 4294901760, %v8848_v38  ;;  %v8875_v3 = vsub.f32 %v93_v58, %v8855_v32 }
  0x4d   :  { %6774 = vmatprep.subr.mxu0 %v11442_v0  ;;  %6825 = vmatprep.subr.mxu1 %v11442_v0 }
  0x4e   :  { %6775 = vmatpush3.msra.mxu0 %v8776_v1  ;;  %6826 = vmatpush3.msra.mxu1 %v379_v63  ;;  %v400_v63 = vand.u32 4294901760, %v399_v8  ;;  %v407_v61 = vand.u32 4294901760, %v406_v51  ;;  %v8883_v8 = vand.u32 4294901760, %v94_v53  ;;  %v244_v58 = vsub.f32 %v8848_v38, %v11407_v60 }
  0x4f   :  { %6776 = vmatprep.subr.mxu0 %v11442_v0  ;;  %6827 = vmatprep.subr.mxu1 %v11442_v0  ;;  %v11406_v51 = vand.u32 4294901760, %v8875_v3 }
  0x50   :  { %6777 = vmatpush3.msra.mxu0 %v8788_v13  ;;  %6828 = vmatpush3.msra.mxu1 %v386_v39  ;;  %v420_v39 = vsub.f32 %v8839_v26, %v11402_v52  ;;  %v95_v52 = vld [vmem:[#allocation3 + $0x28] sm:$0xff] }
  0x51   :  { %6778 = vmatprep.subr.mxu0 %v11442_v0  ;;  %6829 = vmatprep.subr.mxu1 %v11442_v0  ;;  %v8903_v46 = vand.u32 4294901760, %v95_v52 }
  0x52   :  { %6779 = vmatpush3.msra.mxu0 %v8805_v37  ;;  %6830 = vmatpush3.msra.mxu1 %v393_v36  ;;  %v414_v36 = vand.u32 4294901760, %v413_v2  ;;  %v421_v7 = vand.u32 4294901760, %v420_v39  ;;  %v254_v2 = vsub.f32 %v8875_v3, %v11406_v51 }
  0x53   :  { %6781 = vmatmul.mubr.f32.vlgmr.msra.gmra.mxu0 %v225_v54  ;;  %6831 = vmatprep.subr.mxu1 %v11442_v0  ;;  %v8896_v54 = vsub.f32 %v94_v53, %v8883_v8  ;;  %v8914_v39 = vsub.f32 %v95_v52, %v8903_v46 }
  0x54   :  { %6832 = vmatpush3.msra.mxu1 %v400_v63  ;;  %6783 = vmatprep.mubr.msk.f32.mxu0 %vm8616_vm0, %v11442_v0  ;;  %v245_v63 = vand.u32 4294901760, %v244_v58 }
  0x55   :  { %6833 = vmatprep.subr.mxu1 %v11442_v0  ;;  %6866 = vmatprep.subr.mxu0 %v11442_v0  ;;  %v11404_v53 = vand.u32 4294901760, %v8896_v54  ;;  %v11405_v52 = vand.u32 4294901760, %v8914_v39 }
  0x56   :  { %6834 = vmatpush3.msra.mxu1 %v407_v61  ;;  %6867 = vmatpush3.msra.mxu0 %v8682_v15  ;;  %v255_v61 = vand.u32 4294901760, %v254_v2  ;;  %v11620_v15 = vand.u32 4294901760, %v8758_v55 }
  0x57   :  { %6784 = vmatmul.mubr.f32.gmra.mxu0 %v235_v41  ;;  %6835 = vmatprep.subr.mxu1 %v11442_v0  ;;  %v96_v41 = vld [vmem:[#allocation3 + $0x30] sm:$0xff]  ;;  %v264_v58 = vsub.f32 %v8896_v54, %v11404_v53 }
  0x58   :  { %6836 = vmatpush3.msra.mxu1 %v414_v36  ;;  %6868 = vmatprep.subr.mxu0 %v11442_v0  ;;  %v8924_v36 = vand.u32 4294901760, %v96_v41 }
  0x59   :  { %6837 = vmatprep.subr.mxu1 %v11442_v0  ;;  %6786 = vmatprep.mubr.msk.f32.mxu0 %vm8616_vm0, %v11442_v0 }
  0x5a   :  { %6838 = vmatpush3.msra.mxu1 %v421_v7  ;;  %6869 = vmatpush3.msra.mxu0 %v8685_v16  ;;  %v97_v7 = vld [vmem:[#allocation3 + $0x38] sm:$0xff]  ;;  %v8936_v2 = vsub.f32 %v96_v41, %v8924_v36  ;;  %v11621_v16 = vand.u32 4294901760, %v8896_v54 }
  0x5b   :  { %6787 = vmatmul.mubr.f32.gmra.mxu0 %v245_v63  ;;  %6840 = vmatmul.mubr.f32.vlgmr.msra.gmra.mxu1 %v8762_v57  ;;  %v265_v63 = vand.u32 4294901760, %v264_v58  ;;  %v8946_v53 = vand.u32 4294901760, %v97_v7  ;;  %v106_v58 = vld [vmem:[#allocation6] sm:$0xff] }
  0x5c   :  { %6870 = vmatprep.subr.mxu0 %v11442_v0  ;;  %6925 = vmatprep.subr.mxu1 %v11442_v0  ;;  %v11408_v41 = vand.u32 4294901760, %v8936_v2 }
  0x5d   :  { %6871 = vmatpush3.msra.mxu0 %v8690_v18  ;;  %6926 = vmatpush3.msra.mxu1 %v8668_v4  ;;  %v8958_v51 = vsub.f32 %v97_v7, %v8946_v53  ;;  %v11624_v18 = vand.u32 4294901760, %v8914_v39 }
  0x5e   :  { %6872 = vmatprep.subr.mxu0 %v11442_v0  ;;  %6789 = vmatprep.mubr.msk.f32.mxu0 %vm8616_vm0, %v11442_v0  ;;  %v284_v60 = vsub.f32 %v8936_v2, %v11408_v41 }
  0x5f   :  { %6842 = vmatprep.mubr.msk.f32.mxu1 %vm8616_vm0, %v11442_v0  ;;  %6873 = vmatpush3.msra.mxu0 %v8694_v20  ;;  %v11409_v7 = vand.u32 4294901760, %v8958_v51  ;;  %v11625_v20 = vand.u32 4294901760, %v8801_v33 }
  0x60   :  { %6927 = vmatprep.subr.mxu1 %v11442_v0  ;;  %6790 = vmatmul.mubr.f32.gmra.mxu0 %v255_v61  ;;  %v274_v61 = vsub.f32 %v8914_v39, %v11405_v52  ;;  %v285_v41 = vand.u32 4294901760, %v284_v60 }
  0x61   :  { %6843 = vmatmul.mubr.f32.gmra.mxu1 %v8793_v19  ;;  %6874 = vmatprep.subr.mxu0 %v11442_v0 }
  0x62   :  { %6928 = vmatpush3.msra.mxu1 %v8670_v5  ;;  %6875 = vmatpush3.msra.mxu0 %v8697_v21  ;;  %v275_v52 = vand.u32 4294901760, %v274_v61  ;;  %v11626_v21 = vand.u32 4294901760, %v8813_v42 }
  0x63   :  { %6929 = vmatprep.subr.mxu1 %v11442_v0  ;;  %6876 = vmatprep.subr.mxu0 %v11442_v0 }
  0x64   :  { %6930 = vmatpush3.msra.mxu1 %v8672_v6  ;;  %6792 = vmatprep.mubr.msk.f32.mxu0 %vm8616_vm0, %v11442_v0 }
  0x65   :  { %6845 = vmatprep.mubr.msk.f32.mxu1 %vm8616_vm0, %v11442_v0  ;;  %6877 = vmatpush3.msra.mxu0 %v8711_v30 }
  0x66   :  { %6931 = vmatprep.subr.mxu1 %v11442_v0  ;;  %6793 = vmatmul.mubr.f32.gmra.mxu0 %v265_v63  ;;  %v8962_v63 = vand.u32 4294901760, %v106_v58 }
  0x67   :  { %6846 = vmatmul.mubr.f32.gmra.mxu1 %v8821_v50  ;;  %6878 = vmatprep.subr.mxu0 %v11442_v0 }
  0x68   :  { %6932 = vmatpush3.msra.mxu1 %v8674_v10  ;;  %6879 = vmatpush3.msra.mxu0 %v8724_v34  ;;  %v8978_v61 = vsub.f32 %v106_v58, %v8962_v63 }
  0x69   :  { %6933 = vmatprep.subr.mxu1 %v11442_v0  ;;  %6880 = vmatprep.subr.mxu0 %v11442_v0 }
  0x6a   :  { %6934 = vmatpush3.msra.mxu1 %v8676_v11  ;;  %6795 = vmatprep.mubr.msk.f32.mxu0 %vm8616_vm0, %v11442_v0  ;;  %v303_v60 = vand.u32 4294901760, %v8978_v61 }
  0x6b   :  { %6848 = vmatprep.mubr.msk.f32.mxu1 %vm8616_vm0, %v11442_v0  ;;  %6881 = vmatpush3.msra.mxu0 %v8739_v43 }
  0x6c   :  { %6796 = vmatmul.mubr.f32.gmra.mxu0 %v275_v52  ;;  %6849 = vmatmul.mubr.f32.gmra.mxu1 %v8855_v32  ;;  %v294_v52 = vsub.f32 %v8958_v51, %v11409_v7  ;;  %v304_v7 = vsub.f32 %v8978_v61, %v303_v60 }
  0x6d   :  { %6882 = vmatprep.subr.mxu0 %v11442_v0  ;;  %6935 = vmatprep.subr.mxu1 %v11442_v0 }
  0x6e   :  { %6883 = vmatpush3.msra.mxu0 %v8746_v47  ;;  %6936 = vmatpush3.msra.mxu1 %v8678_v12  ;;  %v295_v58 = vand.u32 4294901760, %v294_v52 }
  0x6f   :  { %6884 = vmatprep.subr.mxu0 %v11442_v0  ;;  %6937 = vmatprep.subr.mxu1 %v11442_v0 }
  0x70   :  { %6798 = vmatprep.mubr.msk.f32.mxu0 %vm8616_vm0, %v11442_v0  ;;  %6851 = vmatprep.mubr.msk.f32.mxu1 %vm8616_vm0, %v11442_v0 }
  0x71   :  { %6885 = vmatpush3.msra.mxu0 %v8758_v55  ;;  %6938 = vmatpush3.msra.mxu1 %v8687_v17 }
  0x72   :  { %6799 = vmatmul.mubr.f32.gmra.mxu0 %v285_v41  ;;  %6852 = vmatmul.mubr.f32.gmra.mxu1 %v8883_v8  ;;  %v305_v41 = vand.u32 4294901760, %v304_v7 }
  0x73   :  { %6886 = vmatprep.subr.mxu0 %v11442_v0  ;;  %6939 = vmatprep.subr.mxu1 %v11442_v0 }
  0x74   :  { %6887 = vmatpush3.msra.mxu0 %v8772_v62  ;;  %6940 = vmatpush3.msra.mxu1 %v8703_v25 }
  0x75   :  { %6888 = vmatprep.subr.mxu0 %v11442_v0  ;;  %6941 = vmatprep.subr.mxu1 %v11442_v0 }
  0x76   :  { %6801 = vmatprep.mubr.msk.f32.mxu0 %vm8616_vm0, %v11442_v0  ;;  %6854 = vmatprep.mubr.msk.f32.mxu1 %vm8616_vm0, %v11442_v0 }
  0x77   :  { %6889 = vmatpush3.msra.mxu0 %v8784_v9  ;;  %6942 = vmatpush3.msra.mxu1 %v8707_v28 }
  0x78   :  { %6802 = vmatmul.mubr.f32.gmra.mxu0 %v295_v58  ;;  %6855 = vmatmul.mubr.f32.gmra.mxu1 %v8903_v46 }
  0x79   :  { %6890 = vmatprep.subr.mxu0 %v11442_v0  ;;  %6943 = vmatprep.subr.mxu1 %v11442_v0 }
  0x7a   :  { %6891 = vmatpush3.msra.mxu0 %v8801_v33  ;;  %6944 = vmatpush3.msra.mxu1 %v8727_v35 }
  0x7b   :  { %6892 = vmatprep.subr.mxu0 %v11442_v0  ;;  %6804 = vmatprep.mubr.msk.f32.mxu0 %vm8616_vm0, %v11442_v0 }
  0x7c   :  { %6857 = vmatprep.mubr.msk.f32.mxu1 %vm8616_vm0, %v11442_v0  ;;  %6893 = vmatpush3.msra.mxu0 %v8813_v42 }
  0x7d   :  { %6945 = vmatprep.subr.mxu1 %v11442_v0  ;;  %6805 = vmatmul.mubr.f32.gmra.mxu0 %v305_v41 }
  0x7e   :  { %6858 = vmatmul.mubr.f32.gmra.mxu1 %v8924_v36  ;;  %6894 = vmatprep.subr.mxu0 %v11442_v0 }
  0x7f   :  { %6946 = vmatpush3.msra.mxu1 %v8742_v45  ;;  %6895 = vmatpush3.msra.mxu0 %v8829_v56 }
  0x80   :  { %6947 = vmatprep.subr.mxu1 %v11442_v0  ;;  %6896 = vmatprep.subr.mxu0 %v11442_v0 }
  0x81   :  { %6948 = vmatpush3.msra.mxu1 %v8750_v49  ;;  %6860 = vmatprep.mubr.msk.f32.mxu1 %vm8616_vm0, %v11442_v0 }
  0x82   :  { %6897 = vmatpush3.msra.mxu0 %v8839_v26  ;;  %6898 = vmatprep.mubr.msk.f32.mxu0 %vm8616_vm0, %v11442_v0 }
  0x83   :  { %6949 = vmatprep.subr.mxu1 %v11442_v0  ;;  %6861 = vmatmul.mubr.f32.gmra.mxu1 %v8946_v53 }
  0x84   :  { %6899 = vmatmul.mubr.f32.vlgmr.msra.gmra.mxu0 %v8791_v14  ;;  %6950 = vmatpush3.msra.mxu1 %v8768_v59 }
  0x85   :  { %6951 = vmatprep.subr.mxu1 %v11442_v0  ;;  %6863 = vmatprep.mubr.msk.f32.mxu1 %vm8616_vm0, %v11442_v0 }
  0x86   :  { %6901 = vmatprep.mubr.msk.f32.mxu0 %vm8616_vm0, %v11442_v0  ;;  %6952 = vmatpush3.msra.mxu1 %v8776_v1 }
  0x87   :  { %6864 = vmatmul.mubr.f32.gmra.mxu1 %v8962_v63  ;;  %6953 = vmatprep.subr.mxu1 %v11442_v0 }
  0x88   :  { %6902 = vmatmul.mubr.f32.gmra.mxu0 %v8819_v48  ;;  %6984 = vmatprep.subr.mxu0 %v11442_v0  ;;  %v83_v48 = vld [vmem:[#allocation9 + $0x48] sm:$0xff] }
  0x89   :  { %6954 = vmatpush3.msra.mxu1 %v8788_v13  ;;  %6985 = vmatpush3.msra.mxu0 %v314_v22  ;;  %v11627_v22 = vand.u32 4294901760, %v8936_v2 }
  0x8a   :  { %6955 = vmatprep.subr.mxu1 %v11442_v0  ;;  %6986 = vmatprep.subr.mxu0 %v11442_v0 }
  0x8b   :  { %6904 = vmatprep.mubr.msk.f32.mxu0 %vm8616_vm0, %v11442_v0  ;;  %6956 = vmatpush3.msra.mxu1 %v8805_v37 }
  0x8c   :  { %6957 = vmatprep.mubr.msk.f32.mxu1 %vm8616_vm0, %v11442_v0  ;;  %6987 = vmatpush3.msra.mxu0 %v321_v23  ;;  %v11628_v23 = vand.u32 4294901760, %v8829_v56 }
  0x8d   :  { %6905 = vmatmul.mubr.f32.gmra.mxu0 %v8848_v38  ;;  %6958 = vmatmul.mubr.f32.vlgmr.msra.gmra.mxu1 %v223_v44 }
  0x8e   :  { %6988 = vmatprep.subr.mxu0 %v11442_v0  ;;  %7043 = vmatprep.subr.mxu1 %v11442_v0 }
  0x8f   :  { %6989 = vmatpush3.msra.mxu0 %v328_v24  ;;  %7044 = vmatpush3.msra.mxu1 %v8668_v4  ;;  %v11615_v4 = vand.u32 4294901760, %v8848_v38  ;;  %v11629_v24 = vand.u32 4294901760, %v8839_v26  ;;  %v9315_v26 = vand.u32 4294901760, %v83_v48  ;;  %v82_v38 = vld [vmem:[#allocation9 + $0x40] sm:$0xff] }
  0x90   :  { %6990 = vmatprep.subr.mxu0 %v11442_v0  ;;  %6907 = vmatprep.mubr.msk.f32.mxu0 %vm8616_vm0, %v11442_v0 }
  0x91   :  { %6960 = vmatprep.mubr.msk.f32.mxu1 %vm8616_vm0, %v11442_v0  ;;  %6991 = vmatpush3.msra.mxu0 %v335_v27  ;;  %v89_v27 = vld [vmem:[#allocation9 + $0x78] sm:$0xff]  ;;  %11646 = vst [vmem:[#allocation31_spill] sm:$0xff] %v9315_v26 }
  0x92   :  { %7045 = vmatprep.subr.mxu1 %v11442_v0  ;;  %6908 = vmatmul.mubr.f32.gmra.mxu0 %v8875_v3 }
  0x93   :  { %6961 = vmatmul.mubr.f32.gmra.mxu1 %v233_v31  ;;  %6992 = vmatprep.subr.mxu0 %v11442_v0 }
  0x94   :  { %7046 = vmatpush3.msra.mxu1 %v8670_v5  ;;  %6993 = vmatpush3.msra.mxu0 %v342_v29  ;;  %v11616_v5 = vand.u32 4294901760, %v8724_v34  ;;  %v88_v29 = vld [vmem:[#allocation9 + $0x70] sm:$0xff] }
  0x95   :  { %7047 = vmatprep.subr.mxu1 %v11442_v0  ;;  %6994 = vmatprep.subr.mxu0 %v11442_v0  ;;  %v9252_v34 = vand.u32 4294901760, %v88_v29 }
  0x96   :  { %7048 = vmatpush3.msra.mxu1 %v8672_v6  ;;  %6910 = vmatprep.mubr.msk.f32.mxu0 %vm8616_vm0, %v11442_v0  ;;  %v11617_v6 = vand.u32 4294901760, %v8739_v43 }
  0x97   :  { %6963 = vmatprep.mubr.msk.f32.mxu1 %vm8616_vm0, %v11442_v0  ;;  %6995 = vmatpush3.msra.mxu0 %v349_v40  ;;  %v9260_v43 = vsub.f32 %v88_v29, %v9252_v34 }
  0x98   :  { %7049 = vmatprep.subr.mxu1 %v11442_v0  ;;  %6911 = vmatmul.mubr.f32.gmra.mxu0 %v8896_v54  ;;  %v9330_v54 = vsub.f32 %v83_v48, %v9315_v26 }
  0x99   :  { %6964 = vmatmul.mubr.f32.gmra.mxu1 %v11615_v4  ;;  %6996 = vmatprep.subr.mxu0 %v11442_v0  ;;  %11633 = vst [vmem:[#allocation18_spill] sm:$0xff] %v9260_v43 }
  0x9a   :  { %7050 = vmatpush3.msra.mxu1 %v8674_v10  ;;  %6997 = vmatpush3.msra.mxu0 %v11616_v5  ;;  %v11618_v10 = vand.u32 4294901760, %v8875_v3  ;;  %11650 = vst [vmem:[#allocation35_spill] sm:$0xff] %v9330_v54 }
  0x9b   :  { %7051 = vmatprep.subr.mxu1 %v11442_v0  ;;  %6998 = vmatprep.subr.mxu0 %v11442_v0 }
  0x9c   :  { %7052 = vmatpush3.msra.mxu1 %v8676_v11  ;;  %6913 = vmatprep.mubr.msk.f32.mxu0 %vm8616_vm0, %v11442_v0  ;;  %v11619_v11 = vand.u32 4294901760, %v8746_v47 }
  0x9d   :  { %6966 = vmatprep.mubr.msk.f32.mxu1 %vm8616_vm0, %v11442_v0  ;;  %6999 = vmatpush3.msra.mxu0 %v11617_v6 }
  0x9e   :  { %6914 = vmatmul.mubr.f32.gmra.mxu0 %v8914_v39  ;;  %6967 = vmatmul.mubr.f32.gmra.mxu1 %v11618_v10  ;;  %v79_v10 = vld [vmem:[#allocation9 + $0x28] sm:$0xff] }
  0x9f   :  { %7000 = vmatprep.subr.mxu0 %v11442_v0  ;;  %7053 = vmatprep.subr.mxu1 %v11442_v0 }
  0xa0   :  { %7001 = vmatpush3.msra.mxu0 %v11619_v11  ;;  %7054 = vmatpush3.msra.mxu1 %v8678_v12  ;;  %v11622_v12 = vand.u32 4294901760, %v8772_v62 }
  0xa1   :  { %7002 = vmatprep.subr.mxu0 %v11442_v0  ;;  %7055 = vmatprep.subr.mxu1 %v11442_v0 }
  0xa2   :  { %6916 = vmatprep.mubr.msk.f32.mxu0 %vm8616_vm0, %v11442_v0  ;;  %6969 = vmatprep.mubr.msk.f32.mxu1 %vm8616_vm0, %v11442_v0 }
  0xa3   :  { %7003 = vmatpush3.msra.mxu0 %v11620_v15  ;;  %7056 = vmatpush3.msra.mxu1 %v8687_v17  ;;  %v11623_v17 = vand.u32 4294901760, %v8784_v9 }
  0xa4   :  { %6917 = vmatmul.mubr.f32.gmra.mxu0 %v8936_v2  ;;  %6970 = vmatmul.mubr.f32.gmra.mxu1 %v11621_v16 }
  0xa5   :  { %7004 = vmatprep.subr.mxu0 %v11442_v0  ;;  %7057 = vmatprep.subr.mxu1 %v11442_v0 }
  0xa6   :  { %7005 = vmatpush3.msra.mxu0 %v11622_v12  ;;  %7058 = vmatpush3.msra.mxu1 %v8703_v25  ;;  %v11630_v25 = vand.u32 4294901760, %v8958_v51  ;;  %v9378_v12 = vand.u32 4294901760, %v79_v10 }
  0xa7   :  { %7006 = vmatprep.subr.mxu0 %v11442_v0  ;;  %7059 = vmatprep.subr.mxu1 %v11442_v0 }
  0xa8   :  { %6919 = vmatprep.mubr.msk.f32.mxu0 %vm8616_vm0, %v11442_v0  ;;  %6972 = vmatprep.mubr.msk.f32.mxu1 %vm8616_vm0, %v11442_v0  ;;  %11662 = vst [vmem:[#allocation47_spill] sm:$0xff] %v9378_v12 }
  0xa9   :  { %7007 = vmatpush3.msra.mxu0 %v11623_v17  ;;  %7060 = vmatpush3.msra.mxu1 %v8707_v28  ;;  %v9245_v28 = vand.u32 4294901760, %v89_v27 }
  0xaa   :  { %6920 = vmatmul.mubr.f32.gmra.mxu0 %v8958_v51  ;;  %6973 = vmatmul.mubr.f32.gmra.mxu1 %v11624_v18  ;;  %v78_v18 = vld [vmem:[#allocation9 + $0x20] sm:$0xff] }
  0xab   :  { %7008 = vmatprep.subr.mxu0 %v11442_v0  ;;  %7061 = vmatprep.subr.mxu1 %v11442_v0  ;;  %v9250_v30 = vsub.f32 %v89_v27, %v9245_v28 }
  0xac   :  { %7009 = vmatpush3.msra.mxu0 %v11625_v20  ;;  %7062 = vmatpush3.msra.mxu1 %v8727_v35  ;;  %v87_v35 = vld [vmem:[#allocation9 + $0x68] sm:$0xff] }
  0xad   :  { %7010 = vmatprep.subr.mxu0 %v11442_v0  ;;  %6922 = vmatprep.mubr.msk.f32.mxu0 %vm8616_vm0, %v11442_v0  ;;  %11631 = vst [vmem:[#allocation16_spill] sm:$0xff] %v9250_v30  ;;  %v9257_v40 = vand.u32 4294901760, %v9250_v30 }
  0xae   :  { %6975 = vmatprep.mubr.msk.f32.mxu1 %vm8616_vm0, %v11442_v0  ;;  %7011 = vmatpush3.msra.mxu0 %v11626_v21 }
  0xaf   :  { %7063 = vmatprep.subr.mxu1 %v11442_v0  ;;  %6923 = vmatmul.mubr.f32.gmra.mxu0 %v8978_v61  ;;  %11632 = vst [vmem:[#allocation17_spill] sm:$0xff] %v9257_v40  ;;  %v1318_v47 = vsub.f32 %v9250_v30, %v9257_v40 }
  0xb0   :  { %6976 = vmatmul.mubr.f32.gmra.mxu1 %v11627_v22  ;;  %7012 = vmatprep.subr.mxu0 %v11442_v0  ;;  %v9392_v22 = vsub.f32 %v79_v10, %v9378_v12  ;;  %v74_v10 = vld [vmem:[#allocation9] sm:$0xff] }
  0xb1   :  { %7064 = vmatpush3.msra.mxu1 %v8742_v45  ;;  %7013 = vmatpush3.msra.mxu0 %v11628_v23  ;;  %v9262_v45 = vand.u32 4294901760, %v87_v35  ;;  %v9278_v62 = vand.u32 4294901760, %v1318_v47  ;;  %v9394_v23 = vand.u32 4294901760, %v78_v18 }
  0xb2   :  { %7065 = vmatprep.subr.mxu1 %v11442_v0  ;;  %7014 = vmatprep.subr.mxu0 %v11442_v0  ;;  %11665 = vst [vmem:[#allocation50_spill] sm:$0xff] %v9392_v22  ;;  %v9406_v29 = vand.u32 4294901760, %v9392_v22 }
  0xb3   :  { %7066 = vmatpush3.msra.mxu1 %v8750_v49  ;;  %6978 = vmatprep.mubr.msk.f32.mxu1 %vm8616_vm0, %v11442_v0  ;;  %v9269_v49 = vand.u32 4294901760, %v9260_v43  ;;  %v9272_v55 = vsub.f32 %v87_v35, %v9262_v45  ;;  %11636 = vst [vmem:[#allocation21_spill] sm:$0xff] %v9278_v62  ;;  %11666 = vst [vmem:[#allocation51_spill] sm:$0xff] %v9394_v23  ;;  %v9409_v35 = vsub.f32 %v78_v18, %v9394_v23 }
  0xb4   :  { %7015 = vmatpush3.msra.mxu0 %v11629_v24  ;;  %7016 = vmatprep.mubr.msk.f32.mxu0 %vm8616_vm0, %v11442_v0  ;;  %11669 = vst [vmem:[#allocation54_spill] sm:$0xff] %v9406_v29 }
  0xb5   :  { %7067 = vmatprep.subr.mxu1 %v11442_v0  ;;  %6979 = vmatmul.mubr.f32.gmra.mxu1 %v11630_v25  ;;  %11634 = vst [vmem:[#allocation19_spill] sm:$0xff] %v9269_v49  ;;  %11635 = vst [vmem:[#allocation20_spill] sm:$0xff] %v9272_v55  ;;  %v9283_v9 = vand.u32 4294901760, %v9272_v55  ;;  %v77_v25 = vld [vmem:[#allocation9 + $0x18] sm:$0xff] }
  0xb6   :  { %7017 = vmatmul.mubr.f32.vlgmr.msra.gmra.mxu0 %v8762_v57  ;;  %7068 = vmatpush3.msra.mxu1 %v8768_v59  ;;  %v85_v59 = vld [vmem:[#allocation9 + $0x58] sm:$0xff]  ;;  %11670 = vst [vmem:[#allocation55_spill] sm:$0xff] %v9409_v35 }
  0xb7   :  { %7069 = vmatprep.subr.mxu1 %v11442_v0  ;;  %6981 = vmatprep.mubr.msk.f32.mxu1 %vm8616_vm0, %v11442_v0  ;;  %11637 = vst [vmem:[#allocation22_spill] sm:$0xff] %v9283_v9  ;;  %v9289_v14 = vand.u32 4294901760, %v85_v59  ;;  %v1332_v33 = vsub.f32 %v9272_v55, %v9283_v9 }
  0xb8   :  { %7019 = vmatprep.mubr.msk.f32.mxu0 %vm8616_vm0, %v11442_v0  ;;  %7070 = vmatpush3.msra.mxu1 %v8776_v1  ;;  %v1325_v1 = vsub.f32 %v9260_v43, %v9269_v49 }
  0xb9   :  { %6982 = vmatmul.mubr.f32.gmra.mxu1 %v303_v60  ;;  %7071 = vmatprep.subr.mxu1 %v11442_v0  ;;  %11639 = vst [vmem:[#allocation24_spill] sm:$0xff] %v9289_v14  ;;  %v9304_v44 = vsub.f32 %v85_v59, %v9289_v14  ;;  %v80_v60 = vld [vmem:[#allocation9 + $0x30] sm:$0xff] }
  0xba   :  { %7020 = vmatmul.mubr.f32.gmra.mxu0 %v8793_v19  ;;  %7072 = vmatpush3.msra.mxu1 %v8788_v13  ;;  %v9367_v6 = vand.u32 4294901760, %v80_v60  ;;  %v76_v59 = vld [vmem:[#allocation9 + $0x10] sm:$0xff] }
  0xbb   :  { %7073 = vmatprep.subr.mxu1 %v11442_v0  ;;  %7022 = vmatprep.mubr.msk.f32.mxu0 %vm8616_vm0, %v11442_v0  ;;  %11643 = vst [vmem:[#allocation28_spill] sm:$0xff] %v9304_v44  ;;  %v9320_v31 = vand.u32 4294901760, %v9304_v44  ;;  %v9427_v48 = vand.u32 4294901760, %v76_v59 }
  0xbc   :  { %7074 = vmatpush3.msra.mxu1 %v8805_v37  ;;  %7075 = vmatprep.mubr.msk.f32.mxu1 %vm8616_vm0, %v11442_v0  ;;  %11659 = vst [vmem:[#allocation44_spill] sm:$0xff] %v9367_v6  ;;  %v9383_v17 = vsub.f32 %v80_v60, %v9367_v6 }
  0xbd   :  { %7076 = vmatmul.mubr.f32.vlgmr.msra.gmra.mxu1 %v8762_v57  ;;  %7161 = vmatprep.subr.mxu1 %v11442_v0  ;;  %11647 = vst [vmem:[#allocation32_spill] sm:$0xff] %v9320_v31  ;;  %v1346_v39 = vsub.f32 %v9304_v44, %v9320_v31  ;;  %11674 = vst [vmem:[#allocation59_spill] sm:$0xff] %v9427_v48  ;;  %v9443_v60 = vsub.f32 %v76_v59, %v9427_v48 }
  0xbe   :  { %7023 = vmatmul.mubr.f32.gmra.mxu0 %v8821_v50  ;;  %7078 = vmatprep.mubr.msk.f32.mxu1 %vm8616_vm0, %v11442_v0  ;;  %11663 = vst [vmem:[#allocation48_spill] sm:$0xff] %v9383_v17  ;;  %v9399_v24 = vand.u32 4294901760, %v9383_v17 }
  0xbf   :  { %7025 = vmatprep.mubr.msk.f32.mxu0 %vm8616_vm0, %v11442_v0  ;;  %7102 = vmatprep.subr.mxu0 %v11442_v0  ;;  %v9352_v52 = vand.u32 4294901760, %v1346_v39  ;;  %11678 = vst [vmem:[#allocation63_spill] sm:$0xff] %v9443_v60 }
  0xc0   :  { %7103 = vmatpush3.msra.mxu0 %v9245_v28  ;;  %7162 = vmatpush3.msra.mxu1 %v9278_v62  ;;  %11667 = vst [vmem:[#allocation52_spill] sm:$0xff] %v9399_v24  ;;  %v1381_v47 = vsub.f32 %v9383_v17, %v9399_v24 }
  0xc1   :  { %7079 = vmatmul.mubr.f32.gmra.mxu1 %v8793_v19  ;;  %7104 = vmatprep.subr.mxu0 %v11442_v0  ;;  %v84_v19 = vld [vmem:[#allocation9 + $0x50] sm:$0xff]  ;;  %11655 = vst [vmem:[#allocation40_spill] sm:$0xff] %v9352_v52 }
  0xc2   :  { %7026 = vmatmul.mubr.f32.gmra.mxu0 %v8855_v32  ;;  %7081 = vmatprep.mubr.msk.f32.mxu1 %vm8616_vm0, %v11442_v0  ;;  %v9300_v42 = vand.u32 4294901760, %v84_v19 }
  0xc3   :  { %7028 = vmatprep.mubr.msk.f32.mxu0 %vm8616_vm0, %v11442_v0  ;;  %7105 = vmatpush3.msra.mxu0 %v9252_v34 }
  0xc4   :  { %7106 = vmatprep.subr.mxu0 %v11442_v0  ;;  %11642 = vst [vmem:[#allocation27_spill] sm:$0xff] %v9300_v42  ;;  %7163 = vmatprep.subr.mxu1 %v11442_v0  ;;  %v9313_v3 = vsub.f32 %v84_v19, %v9300_v42  ;;  %v9422_v19 = vand.u32 4294901760, %v9409_v35 }
  0xc5   :  { %7082 = vmatmul.mubr.f32.gmra.mxu1 %v8821_v50  ;;  %7107 = vmatpush3.msra.mxu0 %v9262_v45  ;;  %v9308_v50 = vand.u32 4294901760, %v1332_v33 }
  0xc6   :  { %7029 = vmatmul.mubr.f32.gmra.mxu0 %v8883_v8  ;;  %7084 = vmatprep.mubr.msk.f32.mxu1 %vm8616_vm0, %v11442_v0  ;;  %11645 = vst [vmem:[#allocation30_spill] sm:$0xff] %v9313_v3  ;;  %v9327_v51 = vand.u32 4294901760, %v9313_v3  ;;  %11672 = vst [vmem:[#allocation57_spill] sm:$0xff] %v9422_v19 }
  0xc7   :  { %7031 = vmatprep.mubr.msk.f32.mxu0 %vm8616_vm0, %v11442_v0  ;;  %7108 = vmatprep.subr.mxu0 %v11442_v0  ;;  %11644 = vst [vmem:[#allocation29_spill] sm:$0xff] %v9308_v50 }
  0xc8   :  { %11649 = vst [vmem:[#allocation34_spill] sm:$0xff] %v9327_v51  ;;  %v1353_v2 = vsub.f32 %v9313_v3, %v9327_v51 }
  0xc9   :  { %7085 = vmatmul.mubr.f32.gmra.mxu1 %v8855_v32  ;;  %v9293_v32 = vand.u32 4294901760, %v1325_v1  ;;  %v1388_v1 = vsub.f32 %v9392_v22, %v9406_v29 }
  0xca   :  { %7032 = vmatmul.mubr.f32.gmra.mxu0 %v8903_v46  ;;  %7087 = vmatprep.mubr.msk.f32.mxu1 %vm8616_vm0, %v11442_v0  ;;  %v9355_v58 = vand.u32 4294901760, %v1353_v2 }
  0xcb   :  { %7034 = vmatprep.mubr.msk.f32.mxu0 %vm8616_vm0, %v11442_v0  ;;  %11640 = vst [vmem:[#allocation25_spill] sm:$0xff] %v9293_v32  ;;  %7164 = vmatpush3.msra.mxu1 %v9293_v32  ;;  %v9435_v39 = vand.u32 4294901760, %v1388_v1 }
  0xcc   :  { %7165 = vmatprep.subr.mxu1 %v11442_v0  ;;  %11656 = vst [vmem:[#allocation41_spill] sm:$0xff] %v9355_v58 }
  0xcd   :  { %7088 = vmatmul.mubr.f32.gmra.mxu1 %v8883_v8  ;;  %11676 = vst [vmem:[#allocation61_spill] sm:$0xff] %v9435_v39 }
  0xce   :  { %7035 = vmatmul.mubr.f32.gmra.mxu0 %v8924_v36  ;;  %7090 = vmatprep.mubr.msk.f32.mxu1 %vm8616_vm0, %v11442_v0 }
  0xcf   :  { %7037 = vmatprep.mubr.msk.f32.mxu0 %vm8616_vm0, %v11442_v0  ;;  %7166 = vmatpush3.msra.mxu1 %v9308_v50 }
  0xd0   :  { %7167 = vmatprep.subr.mxu1 %v11442_v0 }
  0xd1   :  { %7091 = vmatmul.mubr.f32.gmra.mxu1 %v8903_v46  ;;  %v86_v46 = vld [vmem:[#allocation9 + $0x60] sm:$0xff] }
  0xd2   :  { %7038 = vmatmul.mubr.f32.gmra.mxu0 %v8946_v53  ;;  %7093 = vmatprep.mubr.msk.f32.mxu1 %vm8616_vm0, %v11442_v0  ;;  %v9274_v57 = vand.u32 4294901760, %v86_v46 }
  0xd3   :  { %7040 = vmatprep.mubr.msk.f32.mxu0 %vm8616_vm0, %v11442_v0 }
  0xd4   :  { %v9286_v13 = vsub.f32 %v86_v46, %v9274_v57  ;;  %7109 = vmatpush3.msra.mxu0 %v9274_v57  ;;  %v9411_v46 = vand.u32 4294901760, %v77_v25 }
  0xd5   :  { %7094 = vmatmul.mubr.f32.gmra.mxu1 %v8924_v36  ;;  %7110 = vmatprep.subr.mxu0 %v11442_v0  ;;  %v81_v36 = vld [vmem:[#allocation9 + $0x38] sm:$0xff] }
  0xd6   :  { %7041 = vmatmul.mubr.f32.gmra.mxu0 %v8962_v63  ;;  %7096 = vmatprep.mubr.msk.f32.mxu1 %vm8616_vm0, %v11442_v0  ;;  %11638 = vst [vmem:[#allocation23_spill] sm:$0xff] %v9286_v13  ;;  %v9298_v37 = vand.u32 4294901760, %v9286_v13  ;;  %v9348_v61 = vand.u32 4294901760, %v81_v36  ;;  %11671 = vst [vmem:[#allocation56_spill] sm:$0xff] %v9411_v46  ;;  %v9425_v33 = vsub.f32 %v77_v25, %v9411_v46  ;;  %v9458_v25 = vand.u32 4294901760, %v74_v10 }
  0xd7   :  { %7134 = vmatprep.mubr.msk.f32.mxu0 %vm8616_vm0, %v11442_v0  ;;  %7111 = vmatpush3.msra.mxu0 %v9289_v14 }
  0xd8   :  { %11641 = vst [vmem:[#allocation26_spill] sm:$0xff] %v9298_v37  ;;  %v1339_v56 = vsub.f32 %v9286_v13, %v9298_v37  ;;  %7112 = vmatprep.subr.mxu0 %v11442_v0  ;;  %11654 = vst [vmem:[#allocation39_spill] sm:$0xff] %v9348_v61  ;;  %v9363_v5 = vsub.f32 %v81_v36, %v9348_v61  ;;  %v1395_v36 = vsub.f32 %v9409_v35, %v9422_v19 }
  0xd9   :  { %7097 = vmatmul.mubr.f32.gmra.mxu1 %v8946_v53  ;;  %7113 = vmatpush3.msra.mxu0 %v9300_v42  ;;  %v9332_v53 = vand.u32 4294901760, %v82_v38  ;;  %11673 = vst [vmem:[#allocation58_spill] sm:$0xff] %v9425_v33  ;;  %v9440_v2 = vand.u32 4294901760, %v9425_v33  ;;  %11682 = vst [vmem:[#allocation67_spill] sm:$0xff] %v9458_v25 }
  0xda   :  { %7099 = vmatprep.mubr.msk.f32.mxu1 %vm8616_vm0, %v11442_v0  ;;  %v9324_v8 = vand.u32 4294901760, %v1339_v56  ;;  %7114 = vmatprep.subr.mxu0 %v11442_v0  ;;  %11658 = vst [vmem:[#allocation43_spill] sm:$0xff] %v9363_v5  ;;  %v9376_v16 = vand.u32 4294901760, %v9363_v5  ;;  %v9431_v56 = vand.u32 4294901760, %v1381_v47 }
  0xdb   :  { %11651 = vst [vmem:[#allocation36_spill] sm:$0xff] %v9332_v53  ;;  %7115 = vmatpush3.msra.mxu0 %v9315_v26  ;;  %v9346_v7 = vsub.f32 %v82_v38, %v9332_v53  ;;  %v75_v38 = vld [vmem:[#allocation9 + $0x8] sm:$0xff]  ;;  %11677 = vst [vmem:[#allocation62_spill] sm:$0xff] %v9440_v2  ;;  %v1402_v18 = vsub.f32 %v9425_v33, %v9440_v2 }
  0xdc   :  { %11648 = vst [vmem:[#allocation33_spill] sm:$0xff] %v9324_v8  ;;  %7168 = vmatpush3.msra.mxu1 %v9324_v8  ;;  %7116 = vmatprep.subr.mxu0 %v11442_v0  ;;  %11661 = vst [vmem:[#allocation46_spill] sm:$0xff] %v9376_v16  ;;  %v1374_v21 = vsub.f32 %v9363_v5, %v9376_v16 }
  0xdd   :  { %7100 = vmatmul.mubr.f32.gmra.mxu1 %v8962_v63  ;;  %v9343_v63 = vand.u32 4294901760, %v9330_v54  ;;  %11653 = vst [vmem:[#allocation38_spill] sm:$0xff] %v9346_v7  ;;  %7169 = vmatprep.subr.mxu1 %v11442_v0  ;;  %v9360_v4 = vand.u32 4294901760, %v9346_v7  ;;  %11675 = vst [vmem:[#allocation60_spill] sm:$0xff] %v9431_v56  ;;  %v9467_v59 = vand.u32 4294901760, %v1402_v18 }
  0xde   :  { %7193 = vmatprep.mubr.msk.f32.mxu1 %vm8616_vm0, %v11442_v0  ;;  %7117 = vmatpush3.msra.mxu0 %v9332_v53  ;;  %v9403_v27 = vand.u32 4294901760, %v1374_v21  ;;  %v9456_v21 = vand.u32 4294901760, %v9443_v60 }
  0xdf   :  { %11652 = vst [vmem:[#allocation37_spill] sm:$0xff] %v9343_v63  ;;  %v1360_v41 = vsub.f32 %v9330_v54, %v9343_v63  ;;  %11657 = vst [vmem:[#allocation42_spill] sm:$0xff] %v9360_v4  ;;  %7118 = vmatprep.subr.mxu0 %v11442_v0  ;;  %7170 = vmatpush3.msra.mxu1 %v9352_v52  ;;  %v1367_v15 = vsub.f32 %v9346_v7, %v9360_v4 }
  0xe0   :  { %7119 = vmatpush3.msra.mxu0 %v9348_v61  ;;  %7171 = vmatprep.subr.mxu1 %v11442_v0  ;;  %11668 = vst [vmem:[#allocation53_spill] sm:$0xff] %v9403_v27  ;;  %11681 = vst [vmem:[#allocation66_spill] sm:$0xff] %v9456_v21  ;;  %v1409_v1 = vsub.f32 %v9443_v60, %v9456_v21 }
  0xe1   :  { %v9371_v11 = vand.u32 4294901760, %v1360_v41  ;;  %7120 = vmatprep.subr.mxu0 %v11442_v0  ;;  %7172 = vmatpush3.msra.mxu1 %v9355_v58  ;;  %v9387_v20 = vand.u32 4294901760, %v1367_v15  ;;  %v9447_v41 = vand.u32 4294901760, %v75_v38  ;;  %v9451_v15 = vand.u32 4294901760, %v1395_v36  ;;  %11684 = vst [vmem:[#allocation69_spill] sm:$0xff] %v9467_v59 }
  0xe2   :  { %7121 = vmatpush3.msra.mxu0 %v9367_v6  ;;  %7173 = vmatprep.subr.mxu1 %v11442_v0  ;;  %v9472_v36 = vsub.f32 %v74_v10, %v9458_v25 }
  0xe3   :  { %11660 = vst [vmem:[#allocation45_spill] sm:$0xff] %v9371_v11  ;;  %11664 = vst [vmem:[#allocation49_spill] sm:$0xff] %v9387_v20  ;;  %7122 = vmatprep.subr.mxu0 %v11442_v0  ;;  %7174 = vmatpush3.msra.mxu1 %v9371_v11  ;;  %v9463_v47 = vsub.f32 %v75_v38, %v9447_v41  ;;  %v9481_v38 = vand.u32 4294901760, %v1409_v1 }
  0xe4   :  { %7123 = vmatpush3.msra.mxu0 %v9378_v12  ;;  %7175 = vmatprep.subr.mxu1 %v11442_v0  ;;  %11679 = vst [vmem:[#allocation64_spill] sm:$0xff] %v9447_v41  ;;  %11680 = vst [vmem:[#allocation65_spill] sm:$0xff] %v9451_v15  ;;  %v9484_v18 = vand.u32 4294901760, %v9472_v36 }
  0xe5   :  { %7124 = vmatprep.subr.mxu0 %v11442_v0  ;;  %7176 = vmatpush3.msra.mxu1 %v9387_v20  ;;  %11683 = vst [vmem:[#allocation68_spill] sm:$0xff] %v9463_v47  ;;  %11685 = vst [vmem:[#allocation70_spill] sm:$0xff] %v9472_v36 }
  0xe6   :  { %7125 = vmatpush3.msra.mxu0 %v9394_v23  ;;  %7177 = vmatprep.subr.mxu1 %v11442_v0  ;;  %11687 = vst [vmem:[#allocation72_spill] sm:$0xff] %v9481_v38  ;;  %11688 = vst [vmem:[#allocation73_spill] sm:$0xff] %v9484_v18 }
  0xe7   :  { %7126 = vmatprep.subr.mxu0 %v11442_v0  ;;  %7178 = vmatpush3.msra.mxu1 %v9403_v27  ;;  %v5955_v27 = vld [vmem:[%s11391_s3] ss:$0 sm:$0xff]  ;;  %s8617_s3 = smov 32  }
  0xe8   :  { %7127 = vmatpush3.msra.mxu0 %v9411_v46  ;;  %7179 = vmatprep.subr.mxu1 %v11442_v0 }
  0xe9   :  { %7128 = vmatprep.subr.mxu0 %v11442_v0  ;;  %7180 = vmatpush3.msra.mxu1 %v9431_v56 }
  0xea   :  { %7129 = vmatpush3.msra.mxu0 %v9427_v48  ;;  %7181 = vmatprep.subr.mxu1 %v11442_v0 }
  0xeb   :  { %7130 = vmatprep.subr.mxu0 %v11442_v0  ;;  %7182 = vmatpush3.msra.mxu1 %v9435_v39  ;;  %v9477_v39 = vand.u32 4294901760, %v9463_v47 }
  0xec   :  { %7131 = vmatpush3.msra.mxu0 %v9447_v41  ;;  %7183 = vmatprep.subr.mxu1 %v11442_v0 }
  0xed   :  { %7132 = vmatprep.subr.mxu0 %v11442_v0  ;;  %7184 = vmatpush3.msra.mxu1 %v9451_v15  ;;  %11686 = vst [vmem:[#allocation71_spill] sm:$0xff] %v9477_v39  ;;  %v1416_v10 = vsub.f32 %v9463_v47, %v9477_v39  ;;  %v1423_v15 = vsub.f32 %v9472_v36, %v9484_v18 }
  0xee   :  { %7133 = vmatpush3.msra.mxu0 %v9458_v25  ;;  %7185 = vmatprep.subr.mxu1 %v11442_v0 }
  0xef   :  { %7220 = vmatprep.subr.mxu0 %v11442_v0  ;;  %7186 = vmatpush3.msra.mxu1 %v9467_v59  ;;  %v9494_v56 = vand.u32 4294901760, %v1416_v10  ;;  %v9497_v1 = vand.u32 4294901760, %v1423_v15 }
  0xf0   :  { %7187 = vmatprep.subr.mxu1 %v11442_v0 }
  0xf1   :  { %7188 = vmatpush3.msra.mxu1 %v9481_v38  ;;  %11689 = vst [vmem:[#allocation74_spill] sm:$0xff] %v9494_v56  ;;  %11690 = vst [vmem:[#allocation75_spill] sm:$0xff] %v9497_v1 }
  0xf2   :  { %7189 = vmatprep.subr.mxu1 %v11442_v0 }
  0xf3   :  { %7190 = vmatpush3.msra.mxu1 %v9494_v56 }
  0xf4   :  { %7191 = vmatprep.subr.mxu1 %v11442_v0 }
  0xf5   :  { %7192 = vmatpush3.msra.mxu1 %v9497_v1 }
  0xf6   :  { %7279 = vmatprep.subr.mxu1 %v11442_v0 }
 0x113   :  { %v227_v59 = vpop.f32.mrf.mxu0 }
 0x114   :  { %v228_v20 = vadd.f32 %v5955_v27, %v227_v59 }
 0x115   :  { %v6782_v38 = vpop.f32.mrf.mxu0 }
 0x117   :  { %v237_v10 = vpop.f32.mrf.mxu0 }
 0x118   :  { %v238_v50 = vadd.f32 %v5955_v27, %v237_v10 }
 0x119   :  { %v6785_v11 = vpop.f32.mrf.mxu0 }
 0x11b   :  { %v247_v58 = vpop.f32.mrf.mxu0  ;;  %v458_v15 = vpop.f32.mrf.mxu1 }
 0x11c   :  { %v9506_v52 = vadd.f32 %v458_v15, %v228_v20  ;;  %v248_v39 = vadd.f32 %v5955_v27, %v247_v58 }
 0x11d   :  { %v6788_v56 = vpop.f32.mrf.mxu0  ;;  %v6841_v8 = vpop.f32.mrf.mxu1 }
 0x120   :  { %v257_v32 = vpop.f32.mrf.mxu0 }
 0x121   :  { %v464_v1 = vpop.f32.mrf.mxu1  ;;  %v258_v11 = vadd.f32 %v5955_v27, %v257_v32 }
 0x122   :  { %v9508_v62 = vadd.f32 %v464_v1, %v238_v50  ;;  %v6791_v0 = vpop.f32.mrf.mxu0 }
 0x123   :  { %v6844_v18 = vpop.f32.mrf.mxu1 }
 0x126   :  { %v267_v21 = vpop.f32.mrf.mxu0 }
 0x127   :  { %v470_v2 = vpop.f32.mrf.mxu1  ;;  %v268_v10 = vadd.f32 %v5955_v27, %v267_v21 }
 0x128   :  { %v9510_v38 = vadd.f32 %v470_v2, %v248_v39  ;;  %v6794_v59 = vpop.f32.mrf.mxu0 }
 0x129   :  { %v6847_v19 = vpop.f32.mrf.mxu1 }
 0x12c   :  { %v277_v29 = vpop.f32.mrf.mxu0  ;;  %v476_v20 = vpop.f32.mrf.mxu1 }
 0x12d   :  { %v9512_v15 = vadd.f32 %v476_v20, %v258_v11  ;;  %v278_v18 = vadd.f32 %v5955_v27, %v277_v29 }
 0x12e   :  { %v6797_v8 = vpop.f32.mrf.mxu0  ;;  %v6850_v56 = vpop.f32.mrf.mxu1 }
 0x132   :  { %v287_v24 = vpop.f32.mrf.mxu0  ;;  %v482_v50 = vpop.f32.mrf.mxu1 }
 0x133   :  { %v9514_v1 = vadd.f32 %v482_v50, %v268_v10  ;;  %v288_v59 = vadd.f32 %v5955_v27, %v287_v24 }
 0x134   :  { %v6800_v0 = vpop.f32.mrf.mxu0  ;;  %v6853_v58 = vpop.f32.mrf.mxu1 }
 0x138   :  { %v297_v16 = vpop.f32.mrf.mxu0  ;;  %v488_v39 = vpop.f32.mrf.mxu1 }
 0x139   :  { %v9516_v2 = vadd.f32 %v488_v39, %v278_v18  ;;  %v298_v21 = vadd.f32 %v5955_v27, %v297_v16 }
 0x13a   :  { %v6803_v32 = vpop.f32.mrf.mxu0  ;;  %v6856_v19 = vpop.f32.mrf.mxu1 }
 0x13d   :  { %v307_v4 = vpop.f32.mrf.mxu0 }
 0x13e   :  { %v494_v11 = vpop.f32.mrf.mxu1  ;;  %v308_v10 = vadd.f32 %v5955_v27, %v307_v4 }
 0x13f   :  { %v9518_v20 = vadd.f32 %v494_v11, %v288_v59  ;;  %v6806_v8 = vpop.f32.mrf.mxu0 }
 0x140   :  { %v6859_v56 = vpop.f32.mrf.mxu1 }
 0x143   :  { %v500_v63 = vpop.f32.mrf.mxu1 }
 0x144   :  { %v9520_v50 = vadd.f32 %v500_v63, %v298_v21  ;;  %v610_v0 = vpop.f32.mrf.mxu0 }
 0x145   :  { %v6862_v29 = vpop.f32.mrf.mxu1  ;;  %v611_v60 = vadd.f32 %v610_v0, %v9506_v52 }
 0x146   :  { %v6900_v58 = vpop.f32.mrf.mxu0 }
 0x147   :  { %v506_v51 = vpop.f32.mrf.mxu1 }
 0x148   :  { %v9522_v18 = vadd.f32 %v506_v51, %v308_v10  ;;  %v617_v39 = vpop.f32.mrf.mxu0 }
 0x149   :  { %v6865_v32 = vpop.f32.mrf.mxu1 }
 0x14a   :  { %v6903_v24 = vpop.f32.mrf.mxu0 }
 0x14d   :  { %v624_v19 = vpop.f32.mrf.mxu0  ;;  %v755_v31 = vpop.f32.mrf.mxu1 }
 0x14e   :  { %v756_v33 = vadd.f32 %v755_v31, %v611_v60  ;;  %v625_v46 = vadd.f32 %v624_v19, %v9510_v38 }
 0x14f   :  { %v6906_v59 = vpop.f32.mrf.mxu0  ;;  %v6959_v11 = vpop.f32.mrf.mxu1 }
 0x152   :  { %v631_v8 = vpop.f32.mrf.mxu0 }
 0x153   :  { %v763_v16 = vpop.f32.mrf.mxu1  ;;  %v632_v60 = vadd.f32 %v631_v8, %v9512_v15 }
 0x154   :  { %v6909_v56 = vpop.f32.mrf.mxu0 }
 0x155   :  { %v6962_v37 = vpop.f32.mrf.mxu1 }
 0x158   :  { %v638_v4 = vpop.f32.mrf.mxu0 }
 0x159   :  { %v771_v63 = vpop.f32.mrf.mxu1  ;;  %v639_v15 = vadd.f32 %v638_v4, %v9514_v1 }
 0x15a   :  { %v6912_v27 = vpop.f32.mrf.mxu0 }
 0x15b   :  { %v6965_v21 = vpop.f32.mrf.mxu1 }
 0x15e   :  { %v9524_v29 = vpop.f32.mrf.mxu0  ;;  %v779_v58 = vpop.f32.mrf.mxu1 }
 0x160   :  { %v6915_v51 = vpop.f32.mrf.mxu0  ;;  %v6968_v10 = vpop.f32.mrf.mxu1 }
 0x164   :  { %v9526_v9 = vpop.f32.mrf.mxu0  ;;  %v787_v32 = vpop.f32.mrf.mxu1 }
 0x166   :  { %v6918_v24 = vpop.f32.mrf.mxu0  ;;  %v6971_v49 = vpop.f32.mrf.mxu1 }
 0x16a   :  { %v9528_v59 = vpop.f32.mrf.mxu0  ;;  %v9530_v11 = vpop.f32.mrf.mxu1 }
 0x16c   :  { %v6921_v56 = vpop.f32.mrf.mxu0  ;;  %v6974_v37 = vpop.f32.mrf.mxu1 }
 0x16d   :  { %v618_v56 = vadd.f32 %v617_v39, %v9508_v62 }
 0x16f   :  { %v9532_v40 = vpop.f32.mrf.mxu0  ;;  %v764_v48 = vadd.f32 %v763_v16, %v618_v56 }
 0x170   :  { %v9534_v27 = vpop.f32.mrf.mxu1 }
 0x171   :  { %v6924_v21 = vpop.f32.mrf.mxu0 }
 0x172   :  { %v6977_v36 = vpop.f32.mrf.mxu1 }
 0x175   :  { %v9536_v47 = vpop.f32.mrf.mxu1 }
 0x176   :  { %v938_v51 = vpop.f32.mrf.mxu0 }
 0x177   :  { %v6980_v10 = vpop.f32.mrf.mxu1  ;;  %v939_v37 = vadd.f32 %v938_v51, %v756_v33 }
 0x178   :  { %v7018_v24 = vpop.f32.mrf.mxu0 }
 0x179   :  { %v9539_v49 = vpop.f32.mrf.mxu1  ;;  %v772_v24 = vadd.f32 %v771_v63, %v625_v46  ;;  %v11691_v63 = vmov 0.0  }
 0x17a   :  { %v944_v25 = vpop.f32.mrf.mxu0 }
 0x17b   :  { %v6983_v35 = vpop.f32.mrf.mxu1  ;;  %v945_v10 = vadd.f32 %v944_v25, %v764_v48  ;;  %v780_v25 = vadd.f32 %v779_v58, %v632_v60 }
 0x17c   :  { %v7021_v41 = vpop.f32.mrf.mxu0 }
 0x17d   :  { %v1073_v22 = vpop.f32.mrf.mxu1 }
 0x17e   :  { %v950_v21 = vpop.f32.mrf.mxu0  ;;  %v1074_v36 = vadd.f32 %v1073_v22, %v939_v37 }
 0x17f   :  { %v7077_v17 = vpop.f32.mrf.mxu1  ;;  %v951_v41 = vadd.f32 %v950_v21, %v772_v24 }
 0x180   :  { %v9543_v23 = vmax.f32 %v1074_v36, 0.0  ;;  %v7024_v52 = vpop.f32.mrf.mxu0  ;;  %v788_v36 = vadd.f32 %v787_v32, %v639_v15  ;;  %v646_v32 = vadd.f32 %v9524_v29, %v9516_v2 }
 0x181   :  { %v1079_v0 = vpop.f32.mrf.mxu1 }
 0x182   :  { %v1134_v31 = vmul.f32 %v9543_v23, %v9543_v23  ;;  %v956_v35 = vpop.f32.mrf.mxu0  ;;  %v1080_v62 = vadd.f32 %v1079_v0, %v945_v10 }
 0x183   :  { %v7080_v33 = vpop.f32.mrf.mxu1  ;;  %v957_v51 = vadd.f32 %v956_v35, %v780_v25 }
 0x184   :  { %v9548_v39 = vand.u32 4294901760, %v1134_v31  ;;  %v9550_v17 = vmax.f32 %v1080_v62, 0.0  ;;  %v7027_v22 = vpop.f32.mrf.mxu0 }
 0x185   :  { %v1085_v48 = vpop.f32.mrf.mxu1 }
 0x186   :  { %v9553_v38 = vsub.f32 %v1134_v31, %v9548_v39  ;;  %v1135_v46 = vmul.f32 %v9550_v17, %v9550_v17  ;;  %v962_v19 = vpop.f32.mrf.mxu0  ;;  %v1086_v16 = vadd.f32 %v1085_v48, %v951_v41  ;;  %7194 = vmatmul.mubr.f32.vlgmr.msra.gmra.mxu1 %v9548_v39  ;;  %v796_v48 = vadd.f32 %v9530_v11, %v646_v32 }
 0x187   :  { %v7083_v8 = vpop.f32.mrf.mxu1  ;;  %7196 = vmatprep.mubr.msk.f32.mxu1 %vm8616_vm0, %v11691_v63  ;;  %7280 = vmatpush3.msra.mxu1 %v9245_v28  ;;  %v963_v31 = vadd.f32 %v962_v19, %v788_v36 }
 0x188   :  { %v1226_v58 = vand.u32 4294901760, %v9553_v38  ;;  %v9563_v56 = vand.u32 4294901760, %v1135_v46  ;;  %v9565_v37 = vmax.f32 %v1086_v16, 0.0  ;;  %v7030_v21 = vpop.f32.mrf.mxu0  ;;  %7281 = vmatprep.subr.mxu1 %v11691_v63  ;;  %v653_v16 = vadd.f32 %v9526_v9, %v9518_v20 }
 0x189   :  { %v1091_v10 = vpop.f32.mrf.mxu1  ;;  %7282 = vmatpush3.msra.mxu1 %v9252_v34 }
 0x18a   :  { %v1227_v1 = vsub.f32 %v9553_v38, %v1226_v58  ;;  %v9573_v4 = vsub.f32 %v1135_v46, %v9563_v56  ;;  %v1136_v52 = vmul.f32 %v9565_v37, %v9565_v37  ;;  %v968_v0 = vpop.f32.mrf.mxu0  ;;  %v1092_v24 = vadd.f32 %v1091_v10, %v957_v51  ;;  %7197 = vmatmul.mubr.f32.gmra.mxu1 %v9563_v56 }
 0x18b   :  { %v7086_v35 = vpop.f32.mrf.mxu1  ;;  %7199 = vmatprep.mubr.msk.f32.mxu1 %vm8616_vm0, %v11691_v63  ;;  %7283 = vmatprep.subr.mxu1 %v11691_v63  ;;  %v969_v8 = vadd.f32 %v968_v0, %v796_v48  ;;  %v804_v20 = vadd.f32 %v9534_v27, %v653_v16  ;;  %v660_v27 = vadd.f32 %v9528_v59, %v9520_v50 }
 0x18c   :  { %v1228_v62 = vand.u32 4294901760, %v1227_v1  ;;  %v9583_v33 = vand.u32 4294901760, %v1136_v52  ;;  %v9585_v60 = vmax.f32 %v1092_v24, 0.0  ;;  %v7033_v41 = vpop.f32.mrf.mxu0  ;;  %7284 = vmatpush3.msra.mxu1 %v9262_v45  ;;  %v1236_v22 = vand.u32 4294901760, %v9573_v4 }
 0x18d   :  { %v1097_v2 = vpop.f32.mrf.mxu1  ;;  %7285 = vmatprep.subr.mxu1 %v11691_v63  ;;  %v812_v59 = vadd.f32 %v9536_v47, %v660_v27  ;;  %v667_v47 = vadd.f32 %v9532_v40, %v9522_v18 }
 0x18e   :  { %v9592_v29 = vsub.f32 %v1136_v52, %v9583_v33  ;;  %v1137_v25 = vmul.f32 %v9585_v60, %v9585_v60  ;;  %v974_v46 = vpop.f32.mrf.mxu0  ;;  %v1098_v19 = vadd.f32 %v1097_v2, %v963_v31  ;;  %7135 = vmatmul.mubr.f32.vlgmr.msra.gmra.mxu0 %v1228_v62  ;;  %7200 = vmatmul.mubr.f32.gmra.mxu1 %v9583_v33 }
 0x18f   :  { %v7089_v15 = vpop.f32.mrf.mxu1  ;;  %7221 = vmatpush3.msra.mxu0 %v9250_v30  ;;  %7137 = vmatprep.mubr.msk.f32.mxu0 %vm8616_vm0, %v11691_v63  ;;  %v1237_v11 = vsub.f32 %v9573_v4, %v1236_v22  ;;  %v975_v62 = vadd.f32 %v974_v46, %v804_v20  ;;  %v820_v18 = vadd.f32 %v9539_v49, %v667_v47 }
 0x190   :  { %v9605_v51 = vand.u32 4294901760, %v1137_v25  ;;  %v9607_v21 = vmax.f32 %v1098_v19, 0.0  ;;  %v7036_v36 = vpop.f32.mrf.mxu0  ;;  %7202 = vmatprep.mubr.msk.f32.mxu1 %vm8616_vm0, %v11691_v63  ;;  %7222 = vmatprep.subr.mxu0 %v11691_v63  ;;  %v1246_v9 = vand.u32 4294901760, %v9592_v29 }
 0x191   :  { %v1103_v10 = vpop.f32.mrf.mxu1  ;;  %7286 = vmatpush3.msra.mxu1 %v9274_v57  ;;  %v1238_v1 = vand.u32 4294901760, %v1237_v11  ;;  %7223 = vmatpush3.msra.mxu0 %v9260_v43 }
 0x192   :  { %v9617_v52 = vsub.f32 %v1137_v25, %v9605_v51  ;;  %v1138_v0 = vmul.f32 %v9607_v21, %v9607_v21  ;;  %v980_v24 = vpop.f32.mrf.mxu0  ;;  %v1104_v32 = vadd.f32 %v1103_v10, %v969_v8  ;;  %7203 = vmatmul.mubr.f32.gmra.mxu1 %v9605_v51  ;;  %7287 = vmatprep.subr.mxu1 %v11691_v63 }
 0x193   :  { %7138 = vmatmul.mubr.f32.gmra.mxu0 %v1238_v1  ;;  %v7092_v31 = vpop.f32.mrf.mxu1  ;;  %7224 = vmatprep.subr.mxu0 %v11691_v63  ;;  %v1247_v35 = vsub.f32 %v9592_v29, %v1246_v9  ;;  %v981_v20 = vadd.f32 %v980_v24, %v812_v59 }
 0x194   :  { %v9629_v41 = vand.u32 4294901760, %v1138_v0  ;;  %v9631_v48 = vmax.f32 %v1104_v32, 0.0  ;;  %v7039_v2 = vpop.f32.mrf.mxu0  ;;  %7288 = vmatpush3.msra.mxu1 %v9289_v14  ;;  %7225 = vmatpush3.msra.mxu0 %v9272_v55  ;;  %v11504_v50 = vand.u32 4294901760, %v9617_v52 }
 0x195   :  { %7289 = vmatprep.subr.mxu1 %v11691_v63  ;;  %v1109_v25 = vpop.f32.mrf.mxu1  ;;  %7140 = vmatprep.mubr.msk.f32.mxu0 %vm8616_vm0, %v11691_v63  ;;  %v1248_v46 = vand.u32 4294901760, %v1247_v35 }
 0x196   :  { %v9641_v19 = vsub.f32 %v1138_v0, %v9629_v41  ;;  %v1139_v16 = vmul.f32 %v9631_v48, %v9631_v48  ;;  %v986_v15 = vpop.f32.mrf.mxu0  ;;  %v1110_v11 = vadd.f32 %v1109_v25, %v975_v62  ;;  %7205 = vmatprep.mubr.msk.f32.mxu1 %vm8616_vm0, %v11691_v63  ;;  %7226 = vmatprep.subr.mxu0 %v11691_v63 }
 0x197   :  { %7290 = vmatpush3.msra.mxu1 %v9300_v42  ;;  %7141 = vmatmul.mubr.f32.gmra.mxu0 %v1248_v46  ;;  %v7095_v8 = vpop.f32.mrf.mxu1  ;;  %v1257_v36 = vsub.f32 %v9617_v52, %v11504_v50  ;;  %v987_v2 = vadd.f32 %v986_v15, %v820_v18  ;;  %v11700_v50 = vld [vmem:[#allocation58_spill] sm:$0xff] }
 0x198   :  { %v9654_v10 = vand.u32 4294901760, %v1139_v16  ;;  %v9656_v1 = vmax.f32 %v1110_v11, 0.0  ;;  %7206 = vmatmul.mubr.f32.gmra.mxu1 %v9629_v41  ;;  %7227 = vmatpush3.msra.mxu0 %v9286_v13  ;;  %v7042_v0 = vpop.f32.mrf.mxu0  ;;  %v11503_v40 = vand.u32 4294901760, %v9641_v19 }
 0x199   :  { %7291 = vmatprep.subr.mxu1 %v11691_v63  ;;  %7228 = vmatprep.subr.mxu0 %v11691_v63  ;;  %v1115_v32 = vpop.f32.mrf.mxu1  ;;  %v1258_v27 = vand.u32 4294901760, %v1257_v36 }
 0x19a   :  { %v9665_v24 = vsub.f32 %v1139_v16, %v9654_v10  ;;  %v1140_v31 = vmul.f32 %v9656_v1, %v9656_v1  ;;  %7292 = vmatpush3.msra.mxu1 %v9315_v26  ;;  %7229 = vmatpush3.msra.mxu0 %v9304_v44  ;;  %v1116_v35 = vadd.f32 %v1115_v32, %v981_v20 }
 0x19b   :  { %7293 = vmatprep.subr.mxu1 %v11691_v63  ;;  %7143 = vmatprep.mubr.msk.f32.mxu0 %vm8616_vm0, %v11691_v63  ;;  %v7098_v49 = vpop.f32.mrf.mxu1  ;;  %v1267_v62 = vsub.f32 %v9641_v19, %v11503_v40  ;;  %v11698_v40 = vld [vmem:[#allocation55_spill] sm:$0xff] }
 0x19c   :  { %v9677_v59 = vand.u32 4294901760, %v1140_v31  ;;  %v9679_v25 = vmax.f32 %v1116_v35, 0.0  ;;  %7208 = vmatprep.mubr.msk.f32.mxu1 %vm8616_vm0, %v11691_v63  ;;  %7294 = vmatpush3.msra.mxu1 %v9332_v53  ;;  %v11502_v16 = vand.u32 4294901760, %v9665_v24 }
 0x19d   :  { %7144 = vmatmul.mubr.f32.gmra.mxu0 %v1258_v27  ;;  %7209 = vmatmul.mubr.f32.gmra.mxu1 %v9654_v10  ;;  %v1121_v46 = vpop.f32.mrf.mxu1  ;;  %v1268_v8 = vand.u32 4294901760, %v1267_v62 }
 0x19e   :  { %v9687_v11 = vsub.f32 %v1140_v31, %v9677_v59  ;;  %v1141_v15 = vmul.f32 %v9679_v25, %v9679_v25  ;;  %7230 = vmatprep.subr.mxu0 %v11691_v63  ;;  %7295 = vmatprep.subr.mxu1 %v11691_v63  ;;  %v1122_v47 = vadd.f32 %v1121_v46, %v987_v2  ;;  %v11692_v46 = vld [vmem:[#allocation51_spill] sm:$0xff] }
 0x19f   :  { %7231 = vmatpush3.msra.mxu0 %v9313_v3  ;;  %7296 = vmatpush3.msra.mxu1 %v9348_v61  ;;  %v7101_v36 = vpop.f32.mrf.mxu1  ;;  %v1277_v18 = vsub.f32 %v9665_v24, %v11502_v16  ;;  %v11697_v16 = vld [vmem:[#allocation64_spill] sm:$0xff] }
 0x1a0   :  { %v9695_v20 = vand.u32 4294901760, %v1141_v15  ;;  %7232 = vmatprep.subr.mxu0 %v11691_v63  ;;  %7297 = vmatprep.subr.mxu1 %v11691_v63  ;;  %v9699_v0 = vmax.f32 %v1122_v47, 0.0  ;;  %v11500_v27 = vand.u32 4294901760, %v9687_v11  ;;  %v11694_v36 = vld [vmem:[#allocation48_spill] sm:$0xff] }
 0x1a1   :  { %7146 = vmatprep.mubr.msk.f32.mxu0 %vm8616_vm0, %v11691_v63  ;;  %7211 = vmatprep.mubr.msk.f32.mxu1 %vm8616_vm0, %v11691_v63  ;;  %v1278_v49 = vand.u32 4294901760, %v1277_v18 }
 0x1a2   :  { %v1142_v32 = vmul.f32 %v9699_v0, %v9699_v0  ;;  %7233 = vmatpush3.msra.mxu0 %v9330_v54  ;;  %7298 = vmatpush3.msra.mxu1 %v9367_v6  ;;  %v9715_v31 = vsub.f32 %v1141_v15, %v9695_v20  ;;  %v1287_v62 = vsub.f32 %v9687_v11, %v11500_v27 }
 0x1a3   :  { %7147 = vmatmul.mubr.f32.gmra.mxu0 %v1268_v8  ;;  %7212 = vmatmul.mubr.f32.gmra.mxu1 %v9677_v59  ;;  %v11693_v8 = vld [vmem:[#allocation56_spill] sm:$0xff] }
 0x1a4   :  { %v9717_v35 = vand.u32 4294901760, %v1142_v32  ;;  %7234 = vmatprep.subr.mxu0 %v11691_v63  ;;  %7299 = vmatprep.subr.mxu1 %v11691_v63  ;;  %v11501_v15 = vand.u32 4294901760, %v9715_v31  ;;  %v1288_v47 = vand.u32 4294901760, %v1287_v62  ;;  %v11696_v62 = vld [vmem:[#allocation50_spill] sm:$0xff] }
 0x1a5   :  { %7235 = vmatpush3.msra.mxu0 %v9346_v7  ;;  %7300 = vmatpush3.msra.mxu1 %v9378_v12 }
 0x1a6   :  { %7236 = vmatprep.subr.mxu0 %v11691_v63  ;;  %7301 = vmatprep.subr.mxu1 %v11691_v63  ;;  %v9733_v2 = vsub.f32 %v1142_v32, %v9717_v35  ;;  %v1297_v18 = vsub.f32 %v9715_v31, %v11501_v15 }
 0x1a7   :  { %7149 = vmatprep.mubr.msk.f32.mxu0 %vm8616_vm0, %v11691_v63  ;;  %7214 = vmatprep.mubr.msk.f32.mxu1 %vm8616_vm0, %v11691_v63 }
 0x1a8   :  { %7237 = vmatpush3.msra.mxu0 %v9363_v5  ;;  %7302 = vmatpush3.msra.mxu1 %v11692_v46  ;;  %v11505_v32 = vand.u32 4294901760, %v9733_v2  ;;  %v1298_v27 = vand.u32 4294901760, %v1297_v18 }
 0x1a9   :  { %7150 = vmatmul.mubr.f32.gmra.mxu0 %v1278_v49  ;;  %7215 = vmatmul.mubr.f32.gmra.mxu1 %v9695_v20  ;;  %v11695_v49 = vld [vmem:[#allocation59_spill] sm:$0xff] }
 0x1aa   :  { %7303 = vmatprep.subr.mxu1 %v11691_v63  ;;  %7238 = vmatprep.subr.mxu0 %v11691_v63  ;;  %v1307_v15 = vsub.f32 %v9733_v2, %v11505_v32  ;;  %v11701_v32 = vld [vmem:[#allocation63_spill] sm:$0xff] }
 0x1ab   :  { %7304 = vmatpush3.msra.mxu1 %v11693_v8  ;;  %7239 = vmatpush3.msra.mxu0 %v11694_v36 }
 0x1ac   :  { %7305 = vmatprep.subr.mxu1 %v11691_v63  ;;  %7152 = vmatprep.mubr.msk.f32.mxu0 %vm8616_vm0, %v11691_v63  ;;  %v1308_v18 = vand.u32 4294901760, %v1307_v15  ;;  %v11707_v15 = vld [vmem:[#allocation22_spill] sm:$0xff] }
 0x1ad   :  { %7217 = vmatprep.mubr.msk.f32.mxu1 %vm8616_vm0, %v11691_v63  ;;  %7240 = vmatprep.subr.mxu0 %v11691_v63 }
 0x1ae   :  { %7306 = vmatpush3.msra.mxu1 %v11695_v49  ;;  %7153 = vmatmul.mubr.f32.gmra.mxu0 %v1288_v47  ;;  %v11699_v47 = vld [vmem:[#allocation67_spill] sm:$0xff] }
 0x1af   :  { %7218 = vmatmul.mubr.f32.gmra.mxu1 %v9717_v35  ;;  %7241 = vmatpush3.msra.mxu0 %v11696_v62 }
 0x1b0   :  { %7307 = vmatprep.subr.mxu1 %v11691_v63  ;;  %7242 = vmatprep.subr.mxu0 %v11691_v63 }
 0x1b1   :  { %7308 = vmatpush3.msra.mxu1 %v11697_v16  ;;  %7243 = vmatpush3.msra.mxu0 %v11698_v40 }
 0x1b2   :  { %7309 = vmatprep.subr.mxu1 %v11691_v63  ;;  %7155 = vmatprep.mubr.msk.f32.mxu0 %vm8616_vm0, %v11691_v63 }
 0x1b3   :  { %7244 = vmatprep.subr.mxu0 %v11691_v63  ;;  %7310 = vmatpush3.msra.mxu1 %v11699_v47 }
 0x1b4   :  { %7311 = vmatprep.mubr.msk.f32.mxu1 %vm8616_vm0, %v11691_v63  ;;  %7156 = vmatmul.mubr.f32.gmra.mxu0 %v1298_v27  ;;  %v11702_v27 = vld [vmem:[#allocation68_spill] sm:$0xff] }
 0x1b5   :  { %7245 = vmatpush3.msra.mxu0 %v11700_v50  ;;  %7312 = vmatmul.mubr.f32.vlgmr.msra.gmra.mxu1 %v1226_v58  ;;  %v11703_v58 = vld [vmem:[#allocation70_spill] sm:$0xff] }
 0x1b6   :  { %7246 = vmatprep.subr.mxu0 %v11691_v63  ;;  %7158 = vmatprep.mubr.msk.f32.mxu0 %vm8616_vm0, %v11691_v63 }
 0x1b7   :  { %7247 = vmatpush3.msra.mxu0 %v11701_v32  ;;  %7314 = vmatprep.mubr.msk.f32.mxu1 %vm8616_vm0, %v11691_v63 }
 0x1b8   :  { %7159 = vmatmul.mubr.f32.gmra.mxu0 %v1308_v18  ;;  %7248 = vmatprep.subr.mxu0 %v11691_v63  ;;  %v11709_v18 = vld [vmem:[#allocation26_spill] sm:$0xff] }
 0x1b9   :  { %7315 = vmatmul.mubr.f32.gmra.mxu1 %v1236_v22  ;;  %7397 = vmatprep.subr.mxu1 %v11691_v63  ;;  %v11704_v22 = vld [vmem:[#allocation17_spill] sm:$0xff] }
 0x1ba   :  { %7249 = vmatpush3.msra.mxu0 %v11702_v27  ;;  %7398 = vmatpush3.msra.mxu1 %v9245_v28 }
 0x1bb   :  { %7250 = vmatprep.subr.mxu0 %v11691_v63  ;;  %7399 = vmatprep.subr.mxu1 %v11691_v63 }
 0x1bc   :  { %7251 = vmatpush3.msra.mxu0 %v11703_v58  ;;  %7252 = vmatprep.mubr.msk.f32.mxu0 %vm8616_vm0, %v11691_v63 }
 0x1bd   :  { %7317 = vmatprep.mubr.msk.f32.mxu1 %vm8616_vm0, %v11691_v63  ;;  %7400 = vmatpush3.msra.mxu1 %v9252_v34 }
 0x1be   :  { %7253 = vmatmul.mubr.f32.vlgmr.msra.gmra.mxu0 %v9553_v38  ;;  %7318 = vmatmul.mubr.f32.gmra.mxu1 %v1246_v9  ;;  %v11705_v38 = vand.u32 4294901760, %v9617_v52  ;;  %v11706_v9 = vld [vmem:[#allocation19_spill] sm:$0xff] }
 0x1bf   :  { %7338 = vmatprep.subr.mxu0 %v11691_v63  ;;  %7401 = vmatprep.subr.mxu1 %v11691_v63 }
 0x1c0   :  { %7339 = vmatpush3.msra.mxu0 %v11704_v22  ;;  %7402 = vmatpush3.msra.mxu1 %v9262_v45 }
 0x1c1   :  { %7403 = vmatprep.subr.mxu1 %v11691_v63  ;;  %7255 = vmatprep.mubr.msk.f32.mxu0 %vm8616_vm0, %v11691_v63 }
 0x1c2   :  { %7320 = vmatprep.mubr.msk.f32.mxu1 %vm8616_vm0, %v11691_v63  ;;  %7340 = vmatprep.subr.mxu0 %v11691_v63 }
 0x1c3   :  { %7404 = vmatpush3.msra.mxu1 %v9274_v57  ;;  %7256 = vmatmul.mubr.f32.gmra.mxu0 %v9573_v4  ;;  %v11708_v4 = vand.u32 4294901760, %v9641_v19 }
 0x1c4   :  { %7321 = vmatmul.mubr.f32.gmra.mxu1 %v11705_v38  ;;  %7341 = vmatpush3.msra.mxu0 %v11706_v9  ;;  %v11710_v38 = vld [vmem:[#allocation32_spill] sm:$0xff] }
 0x1c5   :  { %7405 = vmatprep.subr.mxu1 %v11691_v63  ;;  %7342 = vmatprep.subr.mxu0 %v11691_v63 }
 0x1c6   :  { %7406 = vmatpush3.msra.mxu1 %v9289_v14  ;;  %7343 = vmatpush3.msra.mxu0 %v11707_v15 }
 0x1c7   :  { %7407 = vmatprep.subr.mxu1 %v11691_v63  ;;  %7258 = vmatprep.mubr.msk.f32.mxu0 %vm8616_vm0, %v11691_v63 }
 0x1c8   :  { %7323 = vmatprep.mubr.msk.f32.mxu1 %vm8616_vm0, %v11691_v63  ;;  %7344 = vmatprep.subr.mxu0 %v11691_v63 }
 0x1c9   :  { %7408 = vmatpush3.msra.mxu1 %v9300_v42  ;;  %7259 = vmatmul.mubr.f32.gmra.mxu0 %v9592_v29  ;;  %v11711_v29 = vand.u32 4294901760, %v9665_v24 }
 0x1ca   :  { %7324 = vmatmul.mubr.f32.gmra.mxu1 %v11708_v4  ;;  %7345 = vmatpush3.msra.mxu0 %v11709_v18  ;;  %v11712_v4 = vld [vmem:[#allocation34_spill] sm:$0xff] }
 0x1cb   :  { %7409 = vmatprep.subr.mxu1 %v11691_v63  ;;  %7346 = vmatprep.subr.mxu0 %v11691_v63 }
 0x1cc   :  { %7410 = vmatpush3.msra.mxu1 %v9315_v26  ;;  %7347 = vmatpush3.msra.mxu0 %v11710_v38 }
 0x1cd   :  { %7411 = vmatprep.subr.mxu1 %v11691_v63  ;;  %7261 = vmatprep.mubr.msk.f32.mxu0 %vm8616_vm0, %v11691_v63 }
 0x1ce   :  { %7326 = vmatprep.mubr.msk.f32.mxu1 %vm8616_vm0, %v11691_v63  ;;  %7412 = vmatpush3.msra.mxu1 %v9332_v53 }
 0x1cf   :  { %7262 = vmatmul.mubr.f32.gmra.mxu0 %v9617_v52  ;;  %7327 = vmatmul.mubr.f32.gmra.mxu1 %v11711_v29  ;;  %v11713_v52 = vld [vmem:[#allocation37_spill] sm:$0xff]  ;;  %v11714_v29 = vand.u32 4294901760, %v9687_v11 }
 0x1d0   :  { %7348 = vmatprep.subr.mxu0 %v11691_v63  ;;  %7413 = vmatprep.subr.mxu1 %v11691_v63 }
 0x1d1   :  { %7349 = vmatpush3.msra.mxu0 %v11712_v4  ;;  %7414 = vmatpush3.msra.mxu1 %v9348_v61  ;;  %v11715_v4 = vld [vmem:[#allocation42_spill] sm:$0xff] }
 0x1d2   :  { %7350 = vmatprep.subr.mxu0 %v11691_v63  ;;  %7415 = vmatprep.subr.mxu1 %v11691_v63 }
 0x1d3   :  { %7264 = vmatprep.mubr.msk.f32.mxu0 %vm8616_vm0, %v11691_v63  ;;  %7329 = vmatprep.mubr.msk.f32.mxu1 %vm8616_vm0, %v11691_v63 }
 0x1d4   :  { %7351 = vmatpush3.msra.mxu0 %v11713_v52  ;;  %7416 = vmatpush3.msra.mxu1 %v9367_v6 }
 0x1d5   :  { %7265 = vmatmul.mubr.f32.gmra.mxu0 %v9641_v19  ;;  %7330 = vmatmul.mubr.f32.gmra.mxu1 %v11714_v29  ;;  %v11716_v19 = vld [vmem:[#allocation46_spill] sm:$0xff]  ;;  %v11717_v29 = vand.u32 4294901760, %v9715_v31 }
 0x1d6   :  { %7352 = vmatprep.subr.mxu0 %v11691_v63  ;;  %7417 = vmatprep.subr.mxu1 %v11691_v63 }
 0x1d7   :  { %7353 = vmatpush3.msra.mxu0 %v11715_v4  ;;  %7418 = vmatpush3.msra.mxu1 %v9378_v12  ;;  %v11718_v4 = vld [vmem:[#allocation52_spill] sm:$0xff] }
 0x1d8   :  { %7354 = vmatprep.subr.mxu0 %v11691_v63  ;;  %7419 = vmatprep.subr.mxu1 %v11691_v63 }
 0x1d9   :  { %7267 = vmatprep.mubr.msk.f32.mxu0 %vm8616_vm0, %v11691_v63  ;;  %7332 = vmatprep.mubr.msk.f32.mxu1 %vm8616_vm0, %v11691_v63 }
 0x1da   :  { %7355 = vmatpush3.msra.mxu0 %v11716_v19  ;;  %7420 = vmatpush3.msra.mxu1 %v11692_v46 }
 0x1db   :  { %7268 = vmatmul.mubr.f32.gmra.mxu0 %v9665_v24  ;;  %7333 = vmatmul.mubr.f32.gmra.mxu1 %v11717_v29  ;;  %v11719_v24 = vand.u32 4294901760, %v9733_v2  ;;  %v11720_v29 = vld [vmem:[#allocation54_spill] sm:$0xff] }
 0x1dc   :  { %7421 = vmatprep.subr.mxu1 %v11691_v63  ;;  %7356 = vmatprep.subr.mxu0 %v11691_v63 }
 0x1dd   :  { %7422 = vmatpush3.msra.mxu1 %v11693_v8  ;;  %7357 = vmatpush3.msra.mxu0 %v11718_v4  ;;  %v11721_v4 = vld [vmem:[#allocation57_spill] sm:$0xff] }
 0x1de   :  { %7423 = vmatprep.subr.mxu1 %v11691_v63  ;;  %7270 = vmatprep.mubr.msk.f32.mxu0 %vm8616_vm0, %v11691_v63 }
 0x1df   :  { %7335 = vmatprep.mubr.msk.f32.mxu1 %vm8616_vm0, %v11691_v63  ;;  %7358 = vmatprep.subr.mxu0 %v11691_v63 }
 0x1e0   :  { %7424 = vmatpush3.msra.mxu1 %v11695_v49  ;;  %7271 = vmatmul.mubr.f32.gmra.mxu0 %v9687_v11  ;;  %v11722_v11 = vld [vmem:[#allocation62_spill] sm:$0xff] }
 0x1e1   :  { %7336 = vmatmul.mubr.f32.gmra.mxu1 %v11719_v24  ;;  %7359 = vmatpush3.msra.mxu0 %v11720_v29  ;;  %v11723_v24 = vld [vmem:[#allocation66_spill] sm:$0xff] }
 0x1e2   :  { %7425 = vmatprep.subr.mxu1 %v11691_v63  ;;  %7360 = vmatprep.subr.mxu0 %v11691_v63 }
 0x1e3   :  { %7426 = vmatpush3.msra.mxu1 %v11697_v16  ;;  %7361 = vmatpush3.msra.mxu0 %v11721_v4 }
 0x1e4   :  { %7427 = vmatprep.subr.mxu1 %v11691_v63  ;;  %7273 = vmatprep.mubr.msk.f32.mxu0 %vm8616_vm0, %v11691_v63 }
 0x1e5   :  { %7362 = vmatprep.subr.mxu0 %v11691_v63  ;;  %7428 = vmatpush3.msra.mxu1 %v11699_v47 }
 0x1e6   :  { %7429 = vmatprep.mubr.msk.f32.mxu1 %vm8616_vm0, %v11691_v63  ;;  %7274 = vmatmul.mubr.f32.gmra.mxu0 %v9715_v31  ;;  %v11724_v31 = vld [vmem:[#allocation71_spill] sm:$0xff] }
 0x1e7   :  { %7363 = vmatpush3.msra.mxu0 %v11722_v11  ;;  %7430 = vmatmul.mubr.f32.vlgmr.msra.gmra.mxu1 %v9548_v39  ;;  %v11725_v11 = vld [vmem:[#allocation73_spill] sm:$0xff] }
 0x1e8   :  { %7364 = vmatprep.subr.mxu0 %v11691_v63  ;;  %7276 = vmatprep.mubr.msk.f32.mxu0 %vm8616_vm0, %v11691_v63 }
 0x1e9   :  { %7365 = vmatpush3.msra.mxu0 %v11723_v24  ;;  %7432 = vmatprep.mubr.msk.f32.mxu1 %vm8616_vm0, %v11691_v63 }
 0x1ea   :  { %7277 = vmatmul.mubr.f32.gmra.mxu0 %v9733_v2  ;;  %7366 = vmatprep.subr.mxu0 %v11691_v63  ;;  %v11726_v2 = vld [vmem:[#allocation21_spill] sm:$0xff] }
 0x1eb   :  { %7433 = vmatmul.mubr.f32.gmra.mxu1 %v9563_v56  ;;  %7367 = vmatpush3.msra.mxu0 %v11724_v31 }
 0x1ec   :  { %7368 = vmatprep.subr.mxu0 %v11691_v63  ;;  %7370 = vmatprep.mubr.msk.f32.mxu0 %vm8616_vm0, %v11691_v63 }
 0x1ed   :  { %7369 = vmatpush3.msra.mxu0 %v11725_v11  ;;  %7435 = vmatprep.mubr.msk.f32.mxu1 %vm8616_vm0, %v11691_v63  ;;  %v11727_v11 = vld [vmem:[#allocation25_spill] sm:$0xff] }
 0x1ee   :  { %7371 = vmatmul.mubr.f32.vlgmr.msra.gmra.mxu0 %v9548_v39  ;;  %7491 = vmatprep.subr.mxu1 %v11691_v63  ;;  %v11728_v39 = vld [vmem:[#allocation29_spill] sm:$0xff] }
 0x1ef   :  { %7436 = vmatmul.mubr.f32.gmra.mxu1 %v9583_v33  ;;  %7373 = vmatprep.mubr.msk.f32.mxu0 %vm8616_vm0, %v11691_v63 }
 0x1f0   :  { %7438 = vmatprep.mubr.msk.f32.mxu1 %vm8616_vm0, %v11691_v63  ;;  %7492 = vmatpush3.msra.mxu1 %v11726_v2 }
 0x1f1   :  { %7493 = vmatprep.subr.mxu1 %v11691_v63  ;;  %7456 = vmatprep.subr.mxu0 %v11691_v63 }
 0x1f2   :  { %7374 = vmatmul.mubr.f32.gmra.mxu0 %v9563_v56  ;;  %7494 = vmatpush3.msra.mxu1 %v11727_v11  ;;  %v11729_v56 = vld [vmem:[#allocation33_spill] sm:$0xff] }
 0x1f3   :  { %7439 = vmatmul.mubr.f32.gmra.mxu1 %v9605_v51  ;;  %7376 = vmatprep.mubr.msk.f32.mxu0 %vm8616_vm0, %v11691_v63 }
 0x1f4   :  { %7441 = vmatprep.mubr.msk.f32.mxu1 %vm8616_vm0, %v11691_v63  ;;  %7495 = vmatprep.subr.mxu1 %v11691_v63 }
 0x1f5   :  { %7496 = vmatpush3.msra.mxu1 %v11728_v39  ;;  %7457 = vmatpush3.msra.mxu0 %v9245_v28  ;;  %v11730_v39 = vld [vmem:[#allocation40_spill] sm:$0xff] }
 0x1f6   :  { %7377 = vmatmul.mubr.f32.gmra.mxu0 %v9583_v33  ;;  %7497 = vmatprep.subr.mxu1 %v11691_v63  ;;  %v11731_v33 = vld [vmem:[#allocation41_spill] sm:$0xff] }
 0x1f7   :  { %7442 = vmatmul.mubr.f32.gmra.mxu1 %v9629_v41  ;;  %7379 = vmatprep.mubr.msk.f32.mxu0 %vm8616_vm0, %v11691_v63 }
 0x1f8   :  { %7444 = vmatprep.mubr.msk.f32.mxu1 %vm8616_vm0, %v11691_v63  ;;  %7498 = vmatpush3.msra.mxu1 %v11729_v56 }
 0x1f9   :  { %7458 = vmatprep.subr.mxu0 %v11691_v63  ;;  %7499 = vmatprep.subr.mxu1 %v11691_v63 }
 0x1fa   :  { %7380 = vmatmul.mubr.f32.gmra.mxu0 %v9605_v51  ;;  %7500 = vmatpush3.msra.mxu1 %v11730_v39  ;;  %v11732_v51 = vld [vmem:[#allocation45_spill] sm:$0xff] }
 0x1fb   :  { %7445 = vmatmul.mubr.f32.gmra.mxu1 %v9654_v10  ;;  %7382 = vmatprep.mubr.msk.f32.mxu0 %vm8616_vm0, %v11691_v63 }
 0x1fc   :  { %7447 = vmatprep.mubr.msk.f32.mxu1 %vm8616_vm0, %v11691_v63  ;;  %7459 = vmatpush3.msra.mxu0 %v9252_v34 }
 0x1fd   :  { %7460 = vmatprep.subr.mxu0 %v11691_v63  ;;  %7501 = vmatprep.subr.mxu1 %v11691_v63 }
 0x1fe   :  { %7383 = vmatmul.mubr.f32.gmra.mxu0 %v9629_v41  ;;  %7502 = vmatpush3.msra.mxu1 %v11731_v33  ;;  %v11733_v41 = vld [vmem:[#allocation49_spill] sm:$0xff] }
 0x1ff   :  { %7448 = vmatmul.mubr.f32.gmra.mxu1 %v9677_v59  ;;  %7385 = vmatprep.mubr.msk.f32.mxu0 %vm8616_vm0, %v11691_v63 }
 0x200   :  { %7450 = vmatprep.mubr.msk.f32.mxu1 %vm8616_vm0, %v11691_v63  ;;  %7461 = vmatpush3.msra.mxu0 %v9262_v45 }
 0x201   :  { %7462 = vmatprep.subr.mxu0 %v11691_v63  ;;  %7503 = vmatprep.subr.mxu1 %v11691_v63 }
 0x202   :  { %7386 = vmatmul.mubr.f32.gmra.mxu0 %v9654_v10  ;;  %7504 = vmatpush3.msra.mxu1 %v11732_v51  ;;  %v11734_v10 = vld [vmem:[#allocation53_spill] sm:$0xff] }
 0x203   :  { %7451 = vmatmul.mubr.f32.gmra.mxu1 %v9695_v20  ;;  %7388 = vmatprep.mubr.msk.f32.mxu0 %vm8616_vm0, %v11691_v63 }
 0x204   :  { %7453 = vmatprep.mubr.msk.f32.mxu1 %vm8616_vm0, %v11691_v63  ;;  %7463 = vmatpush3.msra.mxu0 %v9274_v57 }
 0x205   :  { %7464 = vmatprep.subr.mxu0 %v11691_v63  ;;  %7505 = vmatprep.subr.mxu1 %v11691_v63 }
 0x206   :  { %7389 = vmatmul.mubr.f32.gmra.mxu0 %v9677_v59  ;;  %7506 = vmatpush3.msra.mxu1 %v11733_v41  ;;  %v11735_v59 = vld [vmem:[#allocation60_spill] sm:$0xff] }
 0x207   :  { %7454 = vmatmul.mubr.f32.gmra.mxu1 %v9717_v35  ;;  %7391 = vmatprep.mubr.msk.f32.mxu0 %vm8616_vm0, %v11691_v63 }
 0x208   :  { %7465 = vmatpush3.msra.mxu0 %v9289_v14  ;;  %7507 = vmatprep.subr.mxu1 %v11691_v63 }
 0x209   :  { %7466 = vmatprep.subr.mxu0 %v11691_v63  ;;  %7508 = vmatpush3.msra.mxu1 %v11734_v10  ;;  %v11737_v10 = vld [vmem:[#allocation65_spill] sm:$0xff] }
 0x20a   :  { %7392 = vmatmul.mubr.f32.gmra.mxu0 %v9695_v20  ;;  %7509 = vmatprep.subr.mxu1 %v11691_v63  ;;  %v11736_v20 = vld [vmem:[#allocation61_spill] sm:$0xff] }
 0x20b   :  { %7394 = vmatprep.mubr.msk.f32.mxu0 %vm8616_vm0, %v11691_v63  ;;  %7467 = vmatpush3.msra.mxu0 %v9300_v42 }
 0x20c   :  { %7468 = vmatprep.subr.mxu0 %v11691_v63  ;;  %7510 = vmatpush3.msra.mxu1 %v11735_v59  ;;  %v11738_v59 = vld [vmem:[#allocation69_spill] sm:$0xff] }
 0x20d   :  { %7469 = vmatpush3.msra.mxu0 %v9315_v26  ;;  %7511 = vmatprep.subr.mxu1 %v11691_v63 }
 0x20e   :  { %7395 = vmatmul.mubr.f32.gmra.mxu0 %v9717_v35  ;;  %7470 = vmatprep.subr.mxu0 %v11691_v63  ;;  %v11739_v35 = vld [vmem:[#allocation72_spill] sm:$0xff] }
 0x20f   :  { %7512 = vmatpush3.msra.mxu1 %v11736_v20  ;;  %7471 = vmatpush3.msra.mxu0 %v9332_v53 }
 0x210   :  { %7513 = vmatprep.subr.mxu1 %v11691_v63  ;;  %7472 = vmatprep.subr.mxu0 %v11691_v63 }
 0x211   :  { %7514 = vmatpush3.msra.mxu1 %v11737_v10  ;;  %7473 = vmatpush3.msra.mxu0 %v9348_v61  ;;  %v11740_v10 = vld [vmem:[#allocation74_spill] sm:$0xff] }
 0x212   :  { %7515 = vmatprep.subr.mxu1 %v11691_v63  ;;  %7474 = vmatprep.subr.mxu0 %v11691_v63 }
 0x213   :  { %7516 = vmatpush3.msra.mxu1 %v11738_v59  ;;  %7475 = vmatpush3.msra.mxu0 %v9367_v6  ;;  %v11741_v59 = vld [vmem:[#allocation75_spill] sm:$0xff] }
 0x214   :  { %7517 = vmatprep.subr.mxu1 %v11691_v63  ;;  %7476 = vmatprep.subr.mxu0 %v11691_v63 }
 0x215   :  { %7518 = vmatpush3.msra.mxu1 %v11739_v35  ;;  %7477 = vmatpush3.msra.mxu0 %v9378_v12 }
 0x216   :  { %7519 = vmatprep.subr.mxu1 %v11691_v63  ;;  %7478 = vmatprep.subr.mxu0 %v11691_v63 }
 0x217   :  { %7520 = vmatpush3.msra.mxu1 %v11740_v10  ;;  %7479 = vmatpush3.msra.mxu0 %v11692_v46 }
 0x218   :  { %7521 = vmatprep.subr.mxu1 %v11691_v63  ;;  %7480 = vmatprep.subr.mxu0 %v11691_v63 }
 0x219   :  { %7522 = vmatpush3.msra.mxu1 %v11741_v59  ;;  %7523 = vmatprep.mubr.msk.f32.mxu1 %vm8616_vm0, %v11691_v63 }
 0x21a   :  { %7561 = vmatprep.subr.mxu1 %v11691_v63  ;;  %7481 = vmatpush3.msra.mxu0 %v11693_v8 }
 0x21b   :  { %7482 = vmatprep.subr.mxu0 %v11691_v63  ;;  %7488 = vmatprep.mubr.msk.f32.mxu0 %vm8616_vm0, %v11691_v63 }
 0x21c   :  { %7483 = vmatpush3.msra.mxu0 %v11695_v49 }
 0x21d   :  { %7484 = vmatprep.subr.mxu0 %v11691_v63 }
 0x21e   :  { %7485 = vmatpush3.msra.mxu0 %v11697_v16 }
 0x21f   :  { %7486 = vmatprep.subr.mxu0 %v11691_v63 }
 0x220   :  { %7487 = vmatpush3.msra.mxu0 %v11699_v47 }
 0x221   :  { %7526 = vmatprep.subr.mxu0 %v11691_v63 }
 0x246   :  { %v1461_v59 = vpop.f32.mrf.mxu1 }
 0x248   :  { %v7195_v10 = vpop.f32.mrf.mxu1 }
 0x24a   :  { %v1467_v35 = vpop.f32.mrf.mxu1 }
 0x24c   :  { %v7198_v20 = vpop.f32.mrf.mxu1 }
 0x24e   :  { %v1230_v41 = vpop.f32.mrf.mxu0  ;;  %v1473_v51 = vpop.f32.mrf.mxu1 }
 0x24f   :  { %v1462_v33 = vadd.f32 %v1461_v59, %v1230_v41 }
 0x250   :  { %v7136_v39 = vpop.f32.mrf.mxu0  ;;  %v7201_v56 = vpop.f32.mrf.mxu1 }
 0x252   :  { %v1479_v31 = vpop.f32.mrf.mxu1 }
 0x253   :  { %v1240_v11 = vpop.f32.mrf.mxu0 }
 0x254   :  { %v1468_v24 = vadd.f32 %v1467_v35, %v1240_v11  ;;  %v7204_v2 = vpop.f32.mrf.mxu1 }
 0x255   :  { %v7139_v4 = vpop.f32.mrf.mxu0 }
 0x257   :  { %v1250_v29 = vpop.f32.mrf.mxu0 }
 0x258   :  { %v1474_v19 = vadd.f32 %v1473_v51, %v1250_v29  ;;  %v1485_v52 = vpop.f32.mrf.mxu1 }
 0x259   :  { %v7142_v38 = vpop.f32.mrf.mxu0 }
 0x25a   :  { %v7207_v18 = vpop.f32.mrf.mxu1 }
 0x25d   :  { %v1260_v15 = vpop.f32.mrf.mxu0  ;;  %v1491_v9 = vpop.f32.mrf.mxu1 }
 0x25e   :  { %v1480_v10 = vadd.f32 %v1479_v31, %v1260_v15 }
 0x25f   :  { %v7145_v22 = vpop.f32.mrf.mxu0  ;;  %v7210_v20 = vpop.f32.mrf.mxu1 }
 0x263   :  { %v1270_v58 = vpop.f32.mrf.mxu0  ;;  %v1497_v27 = vpop.f32.mrf.mxu1 }
 0x264   :  { %v10028_v41 = vadd.f32 %v1485_v52, %v1270_v58 }
 0x265   :  { %v7148_v39 = vpop.f32.mrf.mxu0  ;;  %v7213_v56 = vpop.f32.mrf.mxu1 }
 0x269   :  { %v1280_v59 = vpop.f32.mrf.mxu0  ;;  %v1503_v11 = vpop.f32.mrf.mxu1 }
 0x26a   :  { %v10030_v2 = vadd.f32 %v1491_v9, %v1280_v59 }
 0x26b   :  { %v7151_v4 = vpop.f32.mrf.mxu0  ;;  %v7216_v29 = vpop.f32.mrf.mxu1 }
 0x26e   :  { %v1290_v51 = vpop.f32.mrf.mxu0 }
 0x26f   :  { %v10032_v38 = vadd.f32 %v1497_v27, %v1290_v51  ;;  %v1509_v18 = vpop.f32.mrf.mxu1 }
 0x270   :  { %v7154_v35 = vpop.f32.mrf.mxu0 }
 0x271   :  { %v7219_v15 = vpop.f32.mrf.mxu1 }
 0x274   :  { %v1300_v22 = vpop.f32.mrf.mxu0 }
 0x275   :  { %v10034_v31 = vadd.f32 %v1503_v11, %v1300_v22  ;;  %v1758_v20 = vpop.f32.mrf.mxu1 }
 0x276   :  { %v7157_v58 = vpop.f32.mrf.mxu0 }
 0x277   :  { %v7313_v52 = vpop.f32.mrf.mxu1 }
 0x278   :  { %v1310_v39 = vpop.f32.mrf.mxu0 }
 0x279   :  { %v10036_v56 = vadd.f32 %v1509_v18, %v1310_v39  ;;  %v1766_v32 = vpop.f32.mrf.mxu1 }
 0x27a   :  { %v7160_v9 = vpop.f32.mrf.mxu0 }
 0x27b   :  { %v7316_v59 = vpop.f32.mrf.mxu1 }
 0x27e   :  { %v1613_v4 = vpop.f32.mrf.mxu0  ;;  %v1774_v29 = vpop.f32.mrf.mxu1 }
 0x27f   :  { %v1614_v50 = vadd.f32 %v1613_v4, %v1462_v33 }
 0x280   :  { %v7254_v27 = vpop.f32.mrf.mxu0  ;;  %v7319_v51 = vpop.f32.mrf.mxu1 }
 0x281   :  { %v1759_v47 = vadd.f32 %v1758_v20, %v1614_v50 }
 0x283   :  { %v1620_v35 = vpop.f32.mrf.mxu0 }
 0x284   :  { %v1621_v15 = vadd.f32 %v1620_v35, %v1468_v24  ;;  %v1782_v40 = vpop.f32.mrf.mxu1 }
 0x285   :  { %v7257_v11 = vpop.f32.mrf.mxu0 }
 0x286   :  { %v7322_v22 = vpop.f32.mrf.mxu1  ;;  %v1767_v16 = vadd.f32 %v1766_v32, %v1621_v15 }
 0x289   :  { %v1627_v58 = vpop.f32.mrf.mxu0 }
 0x28a   :  { %v1628_v52 = vadd.f32 %v1627_v58, %v1474_v19  ;;  %v1790_v62 = vpop.f32.mrf.mxu1 }
 0x28b   :  { %v7260_v18 = vpop.f32.mrf.mxu0 }
 0x28c   :  { %v7325_v39 = vpop.f32.mrf.mxu1  ;;  %v1775_v49 = vadd.f32 %v1774_v29, %v1628_v52 }
 0x28f   :  { %v1634_v9 = vpop.f32.mrf.mxu0  ;;  %v10038_v59 = vpop.f32.mrf.mxu1 }
 0x290   :  { %v1635_v36 = vadd.f32 %v1634_v9, %v1480_v10 }
 0x291   :  { %v7263_v33 = vpop.f32.mrf.mxu0  ;;  %v7328_v4 = vpop.f32.mrf.mxu1 }
 0x292   :  { %v1783_v27 = vadd.f32 %v1782_v40, %v1635_v36 }
 0x295   :  { %v1641_v50 = vpop.f32.mrf.mxu0  ;;  %v10040_v20 = vpop.f32.mrf.mxu1 }
 0x297   :  { %v7266_v24 = vpop.f32.mrf.mxu0  ;;  %v7331_v51 = vpop.f32.mrf.mxu1 }
 0x29b   :  { %v1648_v35 = vpop.f32.mrf.mxu0  ;;  %v10042_v32 = vpop.f32.mrf.mxu1 }
 0x29d   :  { %v7269_v19 = vpop.f32.mrf.mxu0  ;;  %v7334_v15 = vpop.f32.mrf.mxu1 }
 0x2a0   :  { %v1655_v11 = vpop.f32.mrf.mxu0 }
 0x2a1   :  { %v10044_v22 = vpop.f32.mrf.mxu1 }
 0x2a2   :  { %v7272_v29 = vpop.f32.mrf.mxu0 }
 0x2a3   :  { %v7337_v58 = vpop.f32.mrf.mxu1 }
 0x2a6   :  { %v1662_v52 = vpop.f32.mrf.mxu0 }
 0x2a7   :  { %v2076_v10 = vpop.f32.mrf.mxu1 }
 0x2a8   :  { %v7275_v18 = vpop.f32.mrf.mxu0 }
 0x2a9   :  { %v7431_v39 = vpop.f32.mrf.mxu1 }
 0x2aa   :  { %v10046_v40 = vpop.f32.mrf.mxu0 }
 0x2ab   :  { %v2082_v36 = vpop.f32.mrf.mxu1 }
 0x2ac   :  { %v7278_v9 = vpop.f32.mrf.mxu0 }
 0x2ad   :  { %v7434_v33 = vpop.f32.mrf.mxu1 }
 0x2ae   :  { %v1941_v4 = vpop.f32.mrf.mxu0  ;;  %v1642_v33 = vadd.f32 %v1641_v50, %v10028_v41  ;;  %v1656_v41 = vadd.f32 %v1655_v11, %v10032_v38 }
 0x2af   :  { %v1942_v24 = vadd.f32 %v1941_v4, %v1759_v47  ;;  %v2088_v51 = vpop.f32.mrf.mxu1 }
 0x2b0   :  { %v7372_v8 = vpop.f32.mrf.mxu0 }
 0x2b1   :  { %v2077_v19 = vadd.f32 %v2076_v10, %v1942_v24  ;;  %v7437_v15 = vpop.f32.mrf.mxu1 }
 0x2b2   :  { %v1947_v5 = vpop.f32.mrf.mxu0 }
 0x2b3   :  { %v1948_v46 = vadd.f32 %v1947_v5, %v1767_v16  ;;  %v2094_v7 = vpop.f32.mrf.mxu1  ;;  %v2128_v29 = vmax.f32 %v2077_v19, 1e-24  ;;  %v1649_v19 = vadd.f32 %v1648_v35, %v10030_v2 }
 0x2b4   :  { %v7375_v58 = vpop.f32.mrf.mxu0 }
 0x2b5   :  { %v2083_v12 = vadd.f32 %v2082_v36, %v1948_v46  ;;  %v7440_v54 = vpop.f32.mrf.mxu1  ;;  %8415 = vrsqrt.f32 %v2128_v29 }
 0x2b6   :  { %v1953_v18 = vpop.f32.mrf.mxu0 }
 0x2b7   :  { %v2129_v39 = vmax.f32 %v2083_v12, 1e-24  ;;  %v1954_v6 = vadd.f32 %v1953_v18, %v1775_v49  ;;  %v2100_v3 = vpop.f32.mrf.mxu1  ;;  %v1791_v12 = vadd.f32 %v1790_v62, %v1642_v33  ;;  %v1663_v62 = vadd.f32 %v1662_v52, %v10034_v31 }
 0x2b8   :  { %v7378_v9 = vpop.f32.mrf.mxu0 }
 0x2b9   :  { %8417 = vrsqrt.f32 %v2129_v39  ;;  %v2089_v47 = vadd.f32 %v2088_v51, %v1954_v6  ;;  %v7443_v8 = vpop.f32.mrf.mxu1  ;;  %v1815_v52 = vadd.f32 %v10042_v32, %v1663_v62 }
 0x2ba   :  { %v1959_v10 = vpop.f32.mrf.mxu0 }
 0x2bb   :  { %v2130_v4 = vmax.f32 %v2089_v47, 1e-24  ;;  %v1960_v24 = vadd.f32 %v1959_v10, %v1783_v27  ;;  %v2106_v5 = vpop.f32.mrf.mxu1  ;;  %v1799_v27 = vadd.f32 %v10038_v59, %v1649_v19  ;;  %v1807_v47 = vadd.f32 %v10040_v20, %v1656_v41 }
 0x2bc   :  { %v7381_v16 = vpop.f32.mrf.mxu0  ;;  %v1670_v20 = vadd.f32 %v10046_v40, %v10036_v56 }
 0x2bd   :  { %8419 = vrsqrt.f32 %v2130_v4  ;;  %v2095_v54 = vadd.f32 %v2094_v7, %v1960_v24  ;;  %v7446_v46 = vpop.f32.mrf.mxu1 }
 0x2be   :  { %v1965_v49 = vpop.f32.mrf.mxu0 }
 0x2bf   :  { %v2131_v36 = vmax.f32 %v2095_v54, 1e-24  ;;  %v1966_v15 = vadd.f32 %v1965_v49, %v1791_v12  ;;  %v2112_v29 = vpop.f32.mrf.mxu1 }
 0x2c0   :  { %v7384_v58 = vpop.f32.mrf.mxu0 }
 0x2c1   :  { %8421 = vrsqrt.f32 %v2131_v36  ;;  %v2101_v6 = vadd.f32 %v2100_v3, %v1966_v15  ;;  %v7449_v50 = vpop.f32.mrf.mxu1 }
 0x2c2   :  { %v1971_v51 = vpop.f32.mrf.mxu0  ;;  %v8416_v7 = vpop.eup %8415 }
 0x2c3   :  { %v2132_v18 = vmax.f32 %v2101_v6, 1e-24  ;;  %v1972_v39 = vadd.f32 %v1971_v51, %v1799_v27  ;;  %v2118_v2 = vpop.f32.mrf.mxu1  ;;  %v10055_v59 = vmul.f32 %v8416_v7, %v9543_v23 }
 0x2c4   :  { %v7387_v35 = vpop.f32.mrf.mxu0 }
 0x2c5   :  { %8423 = vrsqrt.f32 %v2132_v18  ;;  %v2107_v9 = vadd.f32 %v2106_v5, %v1972_v39  ;;  %v7452_v33 = vpop.f32.mrf.mxu1  ;;  %v2155_v12 = vrot.slane %v10055_v59, 4 }
 0x2c6   :  { %v8418_v8 = vpop.eup %8417  ;;  %v1977_v38 = vpop.f32.mrf.mxu0 }
 0x2c7   :  { %v2133_v11 = vmax.f32 %v2107_v9, 1e-24  ;;  %v1978_v3 = vadd.f32 %v1977_v38, %v1807_v47  ;;  %v2124_v10 = vpop.f32.mrf.mxu1  ;;  %v10058_v4 = vmul.f32 %v8418_v8, %v9550_v17  ;;  %v2156_v40 = vadd.f32 %v2155_v12, %v10055_v59 }
 0x2c8   :  { %v7390_v24 = vpop.f32.mrf.mxu0 }
 0x2c9   :  { %8425 = vrsqrt.f32 %v2133_v11  ;;  %v2113_v16 = vadd.f32 %v2112_v29, %v1978_v3  ;;  %v7455_v31 = vpop.f32.mrf.mxu1  ;;  %v2161_v17 = vrot.slane %v10058_v4, 4  ;;  %v1823_v29 = vadd.f32 %v10044_v22, %v1670_v20 }
 0x2ca   :  { %v8420_v5 = vpop.eup %8419  ;;  %v1983_v19 = vpop.f32.mrf.mxu0 }
 0x2cb   :  { %v10064_v54 = vmul.f32 %v8420_v5, %v9565_v37  ;;  %v2134_v46 = vmax.f32 %v2113_v16, 1e-24  ;;  %v1984_v23 = vadd.f32 %v1983_v19, %v1815_v52  ;;  %v2162_v41 = vadd.f32 %v2161_v17, %v10058_v4 }
 0x2cc   :  { %v7393_v49 = vpop.f32.mrf.mxu0 }
 0x2cd   :  { %v2167_v36 = vrot.slane %v10064_v54, 4  ;;  %8427 = vrsqrt.f32 %v2134_v46  ;;  %v2119_v15 = vadd.f32 %v2118_v2, %v1984_v23  ;;  %v2157_v2 = vrot.slane %v2156_v40, 2 }
 0x2ce   :  { %v8422_v32 = vpop.eup %8421  ;;  %v1989_v58 = vpop.f32.mrf.mxu0  ;;  %v2163_v35 = vrot.slane %v2162_v41, 2 }
 0x2cf   :  { %v10071_v56 = vmul.f32 %v8422_v32, %v9585_v60  ;;  %v2135_v37 = vmax.f32 %v2119_v15, 1e-24  ;;  %v2168_v6 = vadd.f32 %v2167_v36, %v10064_v54  ;;  %v1990_v50 = vadd.f32 %v1989_v58, %v1823_v29 }
 0x2d0   :  { %v7396_v27 = vpop.f32.mrf.mxu0  ;;  %v2164_v11 = vadd.f32 %v2163_v35, %v2162_v41  ;;  %v2158_v3 = vadd.f32 %v2157_v2, %v2156_v40 }
 0x2d1   :  { %v2173_v51 = vrot.slane %v10071_v56, 4  ;;  %8429 = vrsqrt.f32 %v2135_v37  ;;  %v2125_v39 = vadd.f32 %v2124_v10, %v1990_v50  ;;  %v2169_v7 = vrot.slane %v2168_v6, 2 }
 0x2d2   :  { %v8424_v18 = vpop.eup %8423  ;;  %v2159_v19 = vrot.slane %v2158_v3, 1  ;;  %v2165_v46 = vrot.slane %v2164_v11, 1 }
 0x2d3   :  { %v10078_v22 = vmul.f32 %v8424_v18, %v9607_v21  ;;  %v2174_v60 = vadd.f32 %v2173_v51, %v10071_v56  ;;  %v2136_v62 = vmax.f32 %v2125_v39, 1e-24  ;;  %v2170_v21 = vadd.f32 %v2169_v7, %v2168_v6 }
 0x2d4   :  { %v2166_v58 = vadd.f32 %v2165_v46, %v2164_v11 }
 0x2d5   :  { %v2175_v9 = vrot.slane %v2174_v60, 2  ;;  %v2179_v33 = vrot.slane %v10078_v22, 4  ;;  %8431 = vrsqrt.f32 %v2136_v62 }
 0x2d6   :  { %v8426_v47 = vpop.eup %8425  ;;  %v2204_v35 = vmul.f32 0.25, %v2166_v58 }
 0x2d7   :  { %v10083_v8 = vmul.f32 %v8426_v47, %v9631_v48  ;;  %v2180_v38 = vadd.f32 %v2179_v33, %v10078_v22  ;;  %v2176_v10 = vadd.f32 %v2175_v9, %v2174_v60  ;;  %v2171_v48 = vrot.slane %v2170_v21, 1 }
 0x2d9   :  { %v2181_v24 = vrot.slane %v2180_v38, 2  ;;  %v2185_v16 = vrot.slane %v10083_v8, 4  ;;  %v2177_v23 = vrot.slane %v2176_v10, 1  ;;  %v2172_v37 = vadd.f32 %v2171_v48, %v2170_v21 }
 0x2da   :  { %v8428_v31 = vpop.eup %8427 }
 0x2db   :  { %v10088_v52 = vmul.f32 %v8428_v31, %v9656_v1  ;;  %v2182_v5 = vadd.f32 %v2181_v24, %v2180_v38  ;;  %v2186_v20 = vadd.f32 %v2185_v16, %v10083_v8  ;;  %v2160_v1 = vadd.f32 %v2159_v19, %v2158_v3 }
 0x2dc   :  { %v2178_v40 = vadd.f32 %v2177_v23, %v2176_v10  ;;  %v2205_v7 = vmul.f32 0.25, %v2172_v37 }
 0x2dd   :  { %v2187_v12 = vrot.slane %v2186_v20, 2  ;;  %v2191_v17 = vrot.slane %v10088_v52, 4  ;;  %v2183_v15 = vrot.slane %v2182_v5, 1  ;;  %v2203_v2 = vmul.f32 0.25, %v2160_v1 }
 0x2de   :  { %v8430_v49 = vpop.eup %8429  ;;  %v2206_v33 = vmul.f32 0.25, %v2178_v40 }
 0x2df   :  { %v10093_v36 = vmul.f32 %v8430_v49, %v9679_v25  ;;  %v2188_v32 = vadd.f32 %v2187_v12, %v2186_v20  ;;  %v2192_v29 = vadd.f32 %v2191_v17, %v10088_v52  ;;  %v2184_v51 = vadd.f32 %v2183_v15, %v2182_v5 }
 0x2e1   :  { %v2189_v41 = vrot.slane %v2188_v32, 1  ;;  %v2193_v6 = vrot.slane %v2192_v29, 2  ;;  %v2197_v50 = vrot.slane %v10093_v36, 4  ;;  %v2207_v24 = vmul.f32 0.25, %v2184_v51 }
 0x2e2   :  { %v8432_v27 = vpop.eup %8431 }
 0x2e3   :  { %v2190_v18 = vadd.f32 %v2189_v41, %v2188_v32  ;;  %v2194_v39 = vadd.f32 %v2193_v6, %v2192_v29  ;;  %v2198_v60 = vadd.f32 %v2197_v50, %v10093_v36  ;;  %v10099_v25 = vmul.f32 %v8432_v27, %v9699_v0 }
 0x2e5   :  { %11742 = vst [vmem:[#allocation76_spill] sm:$0xff] %v10099_v25  ;;  %v2195_v62 = vrot.slane %v2194_v39, 1  ;;  %v2199_v9 = vrot.slane %v2198_v60, 2  ;;  %v2208_v47 = vmul.f32 0.25, %v2190_v18  ;;  %v10102_v38 = vrot.slane %v10099_v25, 1 }
 0x2e6   :  { %v10105_v11 = vrot.slane %v10099_v25, 2  ;;  %v10108_v3 = vrot.slane %v10099_v25, 3  ;;  %v10111_v21 = vrot.slane %v10099_v25, 4  ;;  %v10114_v16 = vrot.slane %v10099_v25, 5 }
 0x2e7   :  { %11743 = vst [vmem:[#allocation77_spill] sm:$0xff] %v10102_v38  ;;  %v2196_v0 = vadd.f32 %v2195_v62, %v2194_v39  ;;  %v2200_v10 = vadd.f32 %v2199_v9, %v2198_v60  ;;  %v10117_v31 = vrot.slane %v10099_v25, 6  ;;  %v10120_v5 = vadd.f32 %v2203_v2, %v10099_v25 }
 0x2e8   :  { %11744 = vst [vmem:[#allocation78_spill] sm:$0xff] %v10105_v11  ;;  %11745 = vst [vmem:[#allocation79_spill] sm:$0xff] %v10108_v3  ;;  %v10123_v20 = vadd.f32 %v10102_v38, %v2204_v35  ;;  %v10126_v19 = vadd.f32 %v10105_v11, %v2205_v7  ;;  %v10129_v23 = vadd.f32 %v10108_v3, %v2206_v33  ;;  %v10153_v27 = vrot.slane %v10099_v25, 7  ;;  %v11778_v11 = vld [vmem:[#allocation54_spill] sm:$0xff]  ;;  %v11779_v3 = vld [vmem:[#allocation57_spill] sm:$0xff] }
 0x2e9   :  { %11746 = vst [vmem:[#allocation80_spill] sm:$0xff] %v10111_v21  ;;  %11747 = vst [vmem:[#allocation81_spill] sm:$0xff] %v10114_v16  ;;  %v2201_v46 = vrot.slane %v2200_v10, 1  ;;  %v2209_v48 = vmul.f32 0.25, %v2196_v0  ;;  %v10132_v12 = vadd.f32 %v10111_v21, %v2207_v24  ;;  %v10135_v17 = vadd.f32 %v10114_v16, %v2208_v47  ;;  %v11776_v16 = vld [vmem:[#allocation46_spill] sm:$0xff]  ;;  %v11777_v21 = vld [vmem:[#allocation52_spill] sm:$0xff] }
 0x2ea   :  { %11748 = vst [vmem:[#allocation82_spill] sm:$0xff] %v10117_v31  ;;  %v2236_v49 = vmul.f32 %v10123_v20, %v10123_v20  ;;  %v2237_v15 = vmul.f32 %v10126_v19, %v10126_v19  ;;  %v2238_v1 = vmul.f32 %v10129_v23, %v10129_v23  ;;  %v2235_v37 = vmul.f32 %v10120_v5, %v10120_v5  ;;  %v11780_v25 = vld [vmem:[#allocation62_spill] sm:$0xff]  ;;  %v11781_v38 = vld [vmem:[#allocation21_spill] sm:$0xff] }
 0x2eb   :  { %v2202_v32 = vadd.f32 %v2201_v46, %v2200_v10  ;;  %v10142_v29 = vadd.f32 %v10117_v31, %v2209_v48  ;;  %v2239_v58 = vmul.f32 %v10132_v12, %v10132_v12  ;;  %v2240_v40 = vmul.f32 %v10135_v17, %v10135_v17  ;;  %11749 = vst [vmem:[#allocation83_spill] sm:$0xff] %v10153_v27  ;;  %v11775_v31 = vld [vmem:[#allocation42_spill] sm:$0xff] }
 0x2ec   :  { %v2251_v41 = vrot.slane %v2236_v49, 7  ;;  %v2254_v6 = vrot.slane %v2237_v15, 6  ;;  %v2257_v39 = vrot.slane %v2238_v1, 5 }
 0x2ed   :  { %v2210_v50 = vmul.f32 0.25, %v2202_v32  ;;  %v2241_v51 = vmul.f32 %v10142_v29, %v10142_v29  ;;  %v2260_v35 = vrot.slane %v2239_v58, 4  ;;  %v2263_v62 = vrot.slane %v2240_v40, 3  ;;  %v11750_v58 = vld [vmem:[#allocation30_spill] sm:$0xff]  ;;  %v11752_v40 = vld [vmem:[#allocation35_spill] sm:$0xff] }
 0x2ee   :  { %v2253_v18 = vsel %vm2252_vm1, %v2251_v41, %v2235_v37  ;;  %v11751_v37 = vld [vmem:[#allocation44_spill] sm:$0xff]  ;;  %v11753_v41 = vld [vmem:[#allocation47_spill] sm:$0xff] }
 0x2ef   :  { %v10159_v60 = vadd.f32 %v10153_v27, %v2210_v50  ;;  %v2256_v2 = vsel %vm2255_vm2, %v2254_v6, %v2253_v18  ;;  %v2266_v9 = vrot.slane %v2241_v51, 2  ;;  %v11754_v6 = vld [vmem:[#allocation38_spill] sm:$0xff]  ;;  %v11755_v50 = vld [vmem:[#allocation51_spill] sm:$0xff]  ;;  %v11757_v18 = vld [vmem:[#allocation56_spill] sm:$0xff] }
 0x2f0   :  { %v2259_v7 = vsel %vm2258_vm3, %v2257_v39, %v2256_v2  ;;  %v11756_v51 = vld [vmem:[#allocation43_spill] sm:$0xff]  ;;  %v11758_v39 = vld [vmem:[#allocation48_spill] sm:$0xff]  ;;  %v11774_v27 = vld [vmem:[#allocation37_spill] sm:$0xff] }
 0x2f1   :  { %v2242_v33 = vmul.f32 %v10159_v60, %v10159_v60  ;;  %v2262_v47 = vsel %vm2261_vm4, %v2260_v35, %v2259_v7  ;;  %v11759_v2 = vld [vmem:[#allocation59_spill] sm:$0xff]  ;;  %v11760_v35 = vld [vmem:[#allocation50_spill] sm:$0xff]  ;;  %v11761_v7 = vld [vmem:[#allocation64_spill] sm:$0xff] }
 0x2f2   :  { %v2265_v0 = vsel %vm2264_vm5, %v2263_v62, %v2262_v47  ;;  %v11762_v62 = vld [vmem:[#allocation55_spill] sm:$0xff] }
 0x2f3   :  { %v2269_v10 = vrot.slane %v2242_v33, 1  ;;  %v2268_v24 = vsel %vm2267_vm6, %v2266_v9, %v2265_v0  ;;  %v11763_v9 = vld [vmem:[#allocation67_spill] sm:$0xff]  ;;  %v11764_v33 = vld [vmem:[#allocation58_spill] sm:$0xff]  ;;  %v11766_v0 = vld [vmem:[#allocation68_spill] sm:$0xff] }
 0x2f4   :  { %v11765_v47 = vld [vmem:[#allocation63_spill] sm:$0xff] }
 0x2f5   :  { %v2271_v46 = vsel %vm2270_vm7, %v2269_v10, %v2268_v24  ;;  %v11767_v10 = vld [vmem:[#allocation70_spill] sm:$0xff]  ;;  %v11768_v24 = vld [vmem:[#allocation17_spill] sm:$0xff] }
 0x2f6   :  { %v10169_v48 = vand.u32 4294901760, %v2271_v46 }
 0x2f8   :  { %v10172_v49 = vsub.f32 %v2271_v46, %v10169_v48  ;;  %7524 = vmatmul.mubr.f32.vlgmr.msra.gmra.mxu1 %v10169_v48  ;;  %v11769_v46 = vld [vmem:[#allocation19_spill] sm:$0xff] }
 0x2f9   :  { %7562 = vmatpush3.msra.mxu1 %v9245_v28  ;;  %7593 = vmatprep.mubr.msk.f32.mxu1 %vm8616_vm0, %v11691_v63 }
 0x2fa   :  { %7563 = vmatprep.subr.mxu1 %v11691_v63  ;;  %v2356_v15 = vand.u32 4294901760, %v10172_v49 }
 0x2fb   :  { %7564 = vmatpush3.msra.mxu1 %v9252_v34 }
 0x2fc   :  { %7565 = vmatprep.subr.mxu1 %v11691_v63  ;;  %v2357_v32 = vsub.f32 %v10172_v49, %v2356_v15 }
 0x2fd   :  { %7566 = vmatpush3.msra.mxu1 %v9262_v45 }
 0x2fe   :  { %7567 = vmatprep.subr.mxu1 %v11691_v63  ;;  %v2358_v1 = vand.u32 4294901760, %v2357_v32  ;;  %v11772_v32 = vld [vmem:[#allocation32_spill] sm:$0xff] }
 0x2ff   :  { %7568 = vmatpush3.msra.mxu1 %v9274_v57 }
 0x300   :  { %7569 = vmatprep.subr.mxu1 %v11691_v63  ;;  %7489 = vmatmul.mubr.f32.vlgmr.msra.gmra.mxu0 %v2358_v1  ;;  %v11773_v1 = vld [vmem:[#allocation34_spill] sm:$0xff] }
 0x301   :  { %7527 = vmatpush3.msra.mxu0 %v9250_v30  ;;  %7570 = vmatpush3.msra.mxu1 %v9289_v14 }
 0x302   :  { %7528 = vmatprep.subr.mxu0 %v11691_v63  ;;  %7571 = vmatprep.subr.mxu1 %v11691_v63 }
 0x303   :  { %7529 = vmatpush3.msra.mxu0 %v9260_v43  ;;  %7572 = vmatpush3.msra.mxu1 %v9300_v42 }
 0x304   :  { %7530 = vmatprep.subr.mxu0 %v11691_v63  ;;  %7573 = vmatprep.subr.mxu1 %v11691_v63 }
 0x305   :  { %7531 = vmatpush3.msra.mxu0 %v9272_v55  ;;  %7574 = vmatpush3.msra.mxu1 %v9315_v26 }
 0x306   :  { %7532 = vmatprep.subr.mxu0 %v11691_v63  ;;  %7575 = vmatprep.subr.mxu1 %v11691_v63 }
 0x307   :  { %7533 = vmatpush3.msra.mxu0 %v9286_v13  ;;  %7576 = vmatpush3.msra.mxu1 %v9332_v53 }
 0x308   :  { %7534 = vmatprep.subr.mxu0 %v11691_v63  ;;  %7577 = vmatprep.subr.mxu1 %v11691_v63 }
 0x309   :  { %7535 = vmatpush3.msra.mxu0 %v9304_v44  ;;  %7578 = vmatpush3.msra.mxu1 %v9348_v61 }
 0x30a   :  { %7536 = vmatprep.subr.mxu0 %v11691_v63  ;;  %7579 = vmatprep.subr.mxu1 %v11691_v63 }
 0x30b   :  { %7537 = vmatpush3.msra.mxu0 %v11750_v58  ;;  %7580 = vmatpush3.msra.mxu1 %v11751_v37 }
 0x30c   :  { %7538 = vmatprep.subr.mxu0 %v11691_v63  ;;  %7581 = vmatprep.subr.mxu1 %v11691_v63 }
 0x30d   :  { %7539 = vmatpush3.msra.mxu0 %v11752_v40  ;;  %7582 = vmatpush3.msra.mxu1 %v11753_v41 }
 0x30e   :  { %7540 = vmatprep.subr.mxu0 %v11691_v63  ;;  %7583 = vmatprep.subr.mxu1 %v11691_v63 }
 0x30f   :  { %7541 = vmatpush3.msra.mxu0 %v11754_v6  ;;  %7584 = vmatpush3.msra.mxu1 %v11755_v50 }
 0x310   :  { %7542 = vmatprep.subr.mxu0 %v11691_v63  ;;  %7585 = vmatprep.subr.mxu1 %v11691_v63 }
 0x311   :  { %7543 = vmatpush3.msra.mxu0 %v11756_v51  ;;  %7586 = vmatpush3.msra.mxu1 %v11757_v18 }
 0x312   :  { %7544 = vmatprep.subr.mxu0 %v11691_v63  ;;  %7587 = vmatprep.subr.mxu1 %v11691_v63 }
 0x313   :  { %7545 = vmatpush3.msra.mxu0 %v11758_v39  ;;  %7588 = vmatpush3.msra.mxu1 %v11759_v2 }
 0x314   :  { %7546 = vmatprep.subr.mxu0 %v11691_v63  ;;  %7589 = vmatprep.subr.mxu1 %v11691_v63 }
 0x315   :  { %7547 = vmatpush3.msra.mxu0 %v11760_v35  ;;  %7590 = vmatpush3.msra.mxu1 %v11761_v7 }
 0x316   :  { %7548 = vmatprep.subr.mxu0 %v11691_v63  ;;  %7591 = vmatprep.subr.mxu1 %v11691_v63 }
 0x317   :  { %7549 = vmatpush3.msra.mxu0 %v11762_v62  ;;  %7592 = vmatpush3.msra.mxu1 %v11763_v9 }
 0x318   :  { %7550 = vmatprep.subr.mxu0 %v11691_v63  ;;  %7594 = vmatmul.mubr.f32.vlgmr.msra.gmra.mxu1 %v2356_v15  ;;  %v11771_v15 = vld [vmem:[#allocation26_spill] sm:$0xff] }
 0x319   :  { %7631 = vmatprep.subr.mxu1 %v11691_v63  ;;  %7551 = vmatpush3.msra.mxu0 %v11764_v33 }
 0x31a   :  { %7632 = vmatpush3.msra.mxu1 %v9245_v28  ;;  %7552 = vmatprep.subr.mxu0 %v11691_v63 }
 0x31b   :  { %7633 = vmatprep.subr.mxu1 %v11691_v63  ;;  %7553 = vmatpush3.msra.mxu0 %v11765_v47  ;;  %v2940_v47 = vlaneseq }
 0x31c   :  { %7634 = vmatpush3.msra.mxu1 %v9252_v34  ;;  %7554 = vmatprep.subr.mxu0 %v11691_v63 }
 0x31d   :  { %7635 = vmatprep.subr.mxu1 %v11691_v63  ;;  %7555 = vmatpush3.msra.mxu0 %v11766_v0  ;;  %v2941_v33 = vshrl.u32 %v2940_v47, 7 }
 0x31e   :  { %7636 = vmatpush3.msra.mxu1 %v9262_v45  ;;  %7556 = vmatprep.subr.mxu0 %v11691_v63 }
 0x31f   :  { %7637 = vmatprep.subr.mxu1 %v11691_v63  ;;  %7557 = vmatpush3.msra.mxu0 %v11767_v10 }
 0x320   :  { %7558 = vmatprep.mubr.msk.f32.mxu0 %vm8616_vm0, %v11691_v63  ;;  %7638 = vmatpush3.msra.mxu1 %v9274_v57 }
 0x321   :  { %7559 = vmatmul.mubr.f32.vlgmr.msra.gmra.mxu0 %v10172_v49  ;;  %7596 = vmatprep.subr.mxu0 %v11691_v63  ;;  %v11770_v49 = vld [vmem:[#allocation22_spill] sm:$0xff] }
 0x322   :  { %7639 = vmatprep.subr.mxu1 %v11691_v63  ;;  %7597 = vmatpush3.msra.mxu0 %v11768_v24 }
 0x323   :  { %7640 = vmatpush3.msra.mxu1 %v9289_v14  ;;  %7598 = vmatprep.subr.mxu0 %v11691_v63 }
 0x324   :  { %7641 = vmatprep.subr.mxu1 %v11691_v63  ;;  %7599 = vmatpush3.msra.mxu0 %v11769_v46 }
 0x325   :  { %7642 = vmatpush3.msra.mxu1 %v9300_v42  ;;  %7600 = vmatprep.subr.mxu0 %v11691_v63 }
 0x326   :  { %7643 = vmatprep.subr.mxu1 %v11691_v63  ;;  %7601 = vmatpush3.msra.mxu0 %v11770_v49 }
 0x327   :  { %7644 = vmatpush3.msra.mxu1 %v9315_v26  ;;  %7602 = vmatprep.subr.mxu0 %v11691_v63 }
 0x328   :  { %7645 = vmatprep.subr.mxu1 %v11691_v63  ;;  %7603 = vmatpush3.msra.mxu0 %v11771_v15 }
 0x329   :  { %7646 = vmatpush3.msra.mxu1 %v9332_v53  ;;  %7604 = vmatprep.subr.mxu0 %v11691_v63 }
 0x32a   :  { %7647 = vmatprep.subr.mxu1 %v11691_v63  ;;  %7605 = vmatpush3.msra.mxu0 %v11772_v32 }
 0x32b   :  { %7648 = vmatpush3.msra.mxu1 %v9348_v61  ;;  %7606 = vmatprep.subr.mxu0 %v11691_v63 }
 0x32c   :  { %7649 = vmatprep.subr.mxu1 %v11691_v63  ;;  %7607 = vmatpush3.msra.mxu0 %v11773_v1 }
 0x32d   :  { %7650 = vmatpush3.msra.mxu1 %v11751_v37  ;;  %7608 = vmatprep.subr.mxu0 %v11691_v63 }
 0x32e   :  { %7651 = vmatprep.subr.mxu1 %v11691_v63  ;;  %7609 = vmatpush3.msra.mxu0 %v11774_v27 }
 0x32f   :  { %7652 = vmatpush3.msra.mxu1 %v11753_v41  ;;  %7610 = vmatprep.subr.mxu0 %v11691_v63 }
 0x330   :  { %7653 = vmatprep.subr.mxu1 %v11691_v63  ;;  %7611 = vmatpush3.msra.mxu0 %v11775_v31 }
 0x331   :  { %7654 = vmatpush3.msra.mxu1 %v11755_v50  ;;  %7612 = vmatprep.subr.mxu0 %v11691_v63 }
 0x332   :  { %7655 = vmatprep.subr.mxu1 %v11691_v63  ;;  %7613 = vmatpush3.msra.mxu0 %v11776_v16  ;;  %v11786_v16 = vld [vmem:[#allocation73_spill] sm:$0xff] }
 0x333   :  { %7656 = vmatpush3.msra.mxu1 %v11757_v18  ;;  %7614 = vmatprep.subr.mxu0 %v11691_v63 }
 0x334   :  { %7657 = vmatprep.subr.mxu1 %v11691_v63  ;;  %7615 = vmatpush3.msra.mxu0 %v11777_v21  ;;  %v11784_v21 = vld [vmem:[#allocation71_spill] sm:$0xff] }
 0x335   :  { %7658 = vmatpush3.msra.mxu1 %v11759_v2  ;;  %7616 = vmatprep.subr.mxu0 %v11691_v63 }
 0x336   :  { %7659 = vmatprep.subr.mxu1 %v11691_v63  ;;  %7617 = vmatpush3.msra.mxu0 %v11778_v11  ;;  %v11782_v11 = vld [vmem:[#allocation66_spill] sm:$0xff] }
 0x337   :  { %7660 = vmatpush3.msra.mxu1 %v11761_v7  ;;  %7618 = vmatprep.subr.mxu0 %v11691_v63 }
 0x338   :  { %7661 = vmatprep.subr.mxu1 %v11691_v63  ;;  %7619 = vmatpush3.msra.mxu0 %v11779_v3  ;;  %v11783_v3 = vld [vmem:[#allocation25_spill] sm:$0xff] }
 0x339   :  { %7662 = vmatpush3.msra.mxu1 %v11763_v9  ;;  %7663 = vmatprep.mubr.msk.f32.mxu1 %vm8616_vm0, %v11691_v63 }
 0x33a   :  { %7620 = vmatprep.subr.mxu0 %v11691_v63  ;;  %7664 = vmatmul.mubr.f32.vlgmr.msra.gmra.mxu1 %v10169_v48 }
 0x33b   :  { %7621 = vmatpush3.msra.mxu0 %v11780_v25  ;;  %7628 = vmatprep.mubr.msk.f32.mxu0 %vm8616_vm0, %v11691_v63  ;;  %v11785_v25 = vld [vmem:[#allocation29_spill] sm:$0xff] }
 0x33c   :  { %7622 = vmatprep.subr.mxu0 %v11691_v63  ;;  %7710 = vmatprep.subr.mxu1 %v11781_v38 }
 0x33d   :  { %7623 = vmatpush3.msra.mxu0 %v11782_v11  ;;  %7711 = vmatpush3.msra.mxu1 %v11781_v38  ;;  %v11787_v11 = vld [vmem:[#allocation33_spill] sm:$0xff]  ;;  %v11788_v38 = vld [vmem:[#allocation40_spill] sm:$0xff] }
 0x33e   :  { %7624 = vmatprep.subr.mxu0 %v11691_v63  ;;  %7712 = vmatprep.subr.mxu1 %v11783_v3 }
 0x33f   :  { %7625 = vmatpush3.msra.mxu0 %v11784_v21  ;;  %7713 = vmatpush3.msra.mxu1 %v11783_v3  ;;  %v11789_v3 = vld [vmem:[#allocation41_spill] sm:$0xff] }
 0x340   :  { %7626 = vmatprep.subr.mxu0 %v11691_v63  ;;  %7714 = vmatprep.subr.mxu1 %v11785_v25 }
 0x341   :  { %7627 = vmatpush3.msra.mxu0 %v11786_v16  ;;  %7715 = vmatpush3.msra.mxu1 %v11785_v25 }
 0x342   :  { %7629 = vmatmul.mubr.f32.vlgmr.msra.gmra.mxu0 %v10169_v48  ;;  %7716 = vmatprep.subr.mxu1 %v11787_v11  ;;  %v11790_v48 = vld [vmem:[#allocation45_spill] sm:$0xff] }
 0x343   :  { %7717 = vmatpush3.msra.mxu1 %v11787_v11  ;;  %7666 = vmatprep.subr.mxu0 %v9245_v28  ;;  %v11791_v11 = vld [vmem:[#allocation49_spill] sm:$0xff] }
 0x344   :  { %7718 = vmatprep.subr.mxu1 %v11788_v38  ;;  %7667 = vmatpush3.msra.mxu0 %v9245_v28 }
 0x345   :  { %7719 = vmatpush3.msra.mxu1 %v11788_v38  ;;  %7668 = vmatprep.subr.mxu0 %v9252_v34  ;;  %v11792_v38 = vld [vmem:[#allocation53_spill] sm:$0xff] }
 0x346   :  { %7720 = vmatprep.subr.mxu1 %v11789_v3  ;;  %7669 = vmatpush3.msra.mxu0 %v9252_v34 }
 0x347   :  { %7721 = vmatpush3.msra.mxu1 %v11789_v3  ;;  %7670 = vmatprep.subr.mxu0 %v9262_v45  ;;  %v11793_v3 = vld [vmem:[#allocation60_spill] sm:$0xff] }
 0x348   :  { %7722 = vmatprep.subr.mxu1 %v11790_v48  ;;  %7671 = vmatpush3.msra.mxu0 %v9262_v45 }
 0x349   :  { %7723 = vmatpush3.msra.mxu1 %v11790_v48  ;;  %7672 = vmatprep.subr.mxu0 %v9274_v57  ;;  %v11794_v48 = vld [vmem:[#allocation61_spill] sm:$0xff] }
 0x34a   :  { %7724 = vmatprep.subr.mxu1 %v11791_v11  ;;  %7673 = vmatpush3.msra.mxu0 %v9274_v57 }
 0x34b   :  { %7725 = vmatpush3.msra.mxu1 %v11791_v11  ;;  %7674 = vmatprep.subr.mxu0 %v9289_v14  ;;  %v11795_v11 = vld [vmem:[#allocation65_spill] sm:$0xff] }
 0x34c   :  { %7726 = vmatprep.subr.mxu1 %v11792_v38  ;;  %7675 = vmatpush3.msra.mxu0 %v9289_v14 }
 0x34d   :  { %7727 = vmatpush3.msra.mxu1 %v11792_v38  ;;  %7676 = vmatprep.subr.mxu0 %v9300_v42  ;;  %v11796_v38 = vld [vmem:[#allocation69_spill] sm:$0xff] }
 0x34e   :  { %7728 = vmatprep.subr.mxu1 %v11793_v3  ;;  %7677 = vmatpush3.msra.mxu0 %v9300_v42 }
 0x34f   :  { %7729 = vmatpush3.msra.mxu1 %v11793_v3  ;;  %7678 = vmatprep.subr.mxu0 %v9315_v26  ;;  %v11797_v3 = vld [vmem:[#allocation72_spill] sm:$0xff] }
 0x350   :  { %7730 = vmatprep.subr.mxu1 %v11794_v48  ;;  %7679 = vmatpush3.msra.mxu0 %v9315_v26 }
 0x351   :  { %7731 = vmatpush3.msra.mxu1 %v11794_v48  ;;  %7680 = vmatprep.subr.mxu0 %v9332_v53  ;;  %v11798_v48 = vld [vmem:[#allocation74_spill] sm:$0xff] }
 0x352   :  { %7732 = vmatprep.subr.mxu1 %v11795_v11  ;;  %7681 = vmatpush3.msra.mxu0 %v9332_v53 }
 0x353   :  { %7733 = vmatpush3.msra.mxu1 %v11795_v11  ;;  %7682 = vmatprep.subr.mxu0 %v9348_v61  ;;  %v11799_v11 = vld [vmem:[#allocation75_spill] sm:$0xff] }
 0x354   :  { %7734 = vmatprep.subr.mxu1 %v11796_v38  ;;  %7683 = vmatpush3.msra.mxu0 %v9348_v61 }
 0x355   :  { %7735 = vmatpush3.msra.mxu1 %v11796_v38  ;;  %7684 = vmatprep.subr.mxu0 %v11751_v37 }
 0x356   :  { %7736 = vmatprep.subr.mxu1 %v11797_v3  ;;  %7685 = vmatpush3.msra.mxu0 %v11751_v37 }
 0x357   :  { %7737 = vmatpush3.msra.mxu1 %v11797_v3  ;;  %7686 = vmatprep.subr.mxu0 %v11753_v41 }
 0x358   :  { %7738 = vmatprep.subr.mxu1 %v11798_v48  ;;  %7687 = vmatpush3.msra.mxu0 %v11753_v41 }
 0x359   :  { %7739 = vmatpush3.msra.mxu1 %v11798_v48  ;;  %7688 = vmatprep.subr.mxu0 %v11755_v50 }
 0x35a   :  { %7740 = vmatprep.subr.mxu1 %v11799_v11  ;;  %7689 = vmatpush3.msra.mxu0 %v11755_v50 }
 0x35b   :  { %7741 = vmatpush3.msra.mxu1 %v11799_v11  ;;  %7690 = vmatprep.subr.mxu0 %v11757_v18 }
 0x35c   :  { %7798 = vmatprep.subr.mxu1 %v9245_v28  ;;  %7691 = vmatpush3.msra.mxu0 %v11757_v18 }
 0x35d   :  { %7692 = vmatprep.subr.mxu0 %v11759_v2 }
 0x35e   :  { %7693 = vmatpush3.msra.mxu0 %v11759_v2 }
 0x35f   :  { %7694 = vmatprep.subr.mxu0 %v11761_v7 }
 0x360   :  { %7695 = vmatpush3.msra.mxu0 %v11761_v7 }
 0x361   :  { %7696 = vmatprep.subr.mxu0 %v11763_v9 }
 0x362   :  { %7697 = vmatpush3.msra.mxu0 %v11763_v9 }
 0x363   :  { %7754 = vmatprep.subr.mxu0 %v9250_v30 }
 0x3b8   :  { %v2511_v11 = vpop.f32.mrf.mxu1 }
 0x3ba   :  { %v7525_v48 = vpop.f32.mrf.mxu1 }
 0x3bb   :  { %v10380_v48 = vsub.s32 0, %v2941_v33 }
 0x3bd   :  { %11800 = vst [vmem:[#allocation84_spill] sm:$0xff] %v10380_v48 }
 0x3c0   :  { %v2360_v3 = vpop.f32.mrf.mxu0 }
 0x3c1   :  { %v2512_v27 = vadd.f32 %v2511_v11, %v2360_v3 }
 0x3c2   :  { %v7490_v38 = vpop.f32.mrf.mxu0 }
 0x3d8   :  { %v2704_v25 = vpop.f32.mrf.mxu1 }
 0x3da   :  { %v7595_v16 = vpop.f32.mrf.mxu1 }
 0x3e1   :  { %v2615_v21 = vpop.f32.mrf.mxu0 }
 0x3e2   :  { %v2616_v32 = vadd.f32 %v2615_v21, %v2512_v27 }
 0x3e3   :  { %v7560_v63 = vpop.f32.mrf.mxu0 }
 0x3e4   :  { %v2705_v15 = vadd.f32 %v2704_v25, %v2616_v32 }
 0x3fa   :  { %v2910_v31 = vpop.f32.mrf.mxu1 }
 0x3fc   :  { %v7665_v1 = vpop.f32.mrf.mxu1 }
 0x402   :  { %v2823_v49 = vpop.f32.mrf.mxu0 }
 0x403   :  { %v2824_v46 = vadd.f32 %v2823_v49, %v2705_v15 }
 0x404   :  { %v7630_v24 = vpop.f32.mrf.mxu0 }
 0x405   :  { %v2911_v10 = vadd.f32 %v2910_v31, %v2824_v46 }
 0x407   :  { %v2914_v0 = vmax.f32 %v2911_v10, 1e-24 }
 0x409   :  { %8433 = vrsqrt.f32 %v2914_v0 }
 0x416   :  { %v8434_v38 = vpop.eup %8433 }
 0x417   :  { %v2932_v16 = vmul.f32 %v8434_v38, %v10120_v5  ;;  %v2917_v9 = vrot.slane %v8434_v38, 1  ;;  %v2918_v63 = vrot.slane %v8434_v38, 2  ;;  %v2919_v62 = vrot.slane %v8434_v38, 3 }
 0x418   :  { %v2920_v11 = vrot.slane %v8434_v38, 4  ;;  %v2921_v3 = vrot.slane %v8434_v38, 5  ;;  %v2922_v21 = vrot.slane %v8434_v38, 6  ;;  %v2923_v25 = vrot.slane %v8434_v38, 7 }
 0x419   :  { %v2943_v27 = vrot.slane %v2932_v16, %v10380_v48  ;;  %v2933_v31 = vmul.f32 %v2917_v9, %v10123_v20  ;;  %v2934_v0 = vmul.f32 %v2918_v63, %v10126_v19  ;;  %v2935_v47 = vmul.f32 %v2919_v62, %v10129_v23 }
 0x41a   :  { %v2936_v33 = vmul.f32 %v2920_v11, %v10132_v12  ;;  %v2937_v10 = vmul.f32 %v2921_v3, %v10135_v17  ;;  %v2938_v5 = vmul.f32 %v2922_v21, %v10142_v29  ;;  %v2939_v12 = vmul.f32 %v2923_v25, %v10159_v60 }
 0x41b   :  { %v2972_v24 = vmul.f32 %v2943_v27, %v10055_v59  ;;  %v2947_v46 = vrot.slane %v2933_v31, %v10380_v48  ;;  %v2951_v49 = vrot.slane %v2934_v0, %v10380_v48  ;;  %v2955_v15 = vrot.slane %v2935_v47, %v10380_v48 }
 0x41c   :  { %v2959_v20 = vrot.slane %v2936_v33, %v10380_v48  ;;  %v2963_v19 = vrot.slane %v2937_v10, %v10380_v48  ;;  %v2967_v23 = vrot.slane %v2938_v5, %v10380_v48  ;;  %v2971_v21 = vrot.slane %v2939_v12, %v10380_v48  ;;  %v11823_v48 = vld [vmem:[#allocation21_spill] sm:$0xff] }
 0x41d   :  { %v10398_v62 = vand.u32 4294901760, %v2972_v24  ;;  %v2973_v17 = vmul.f32 %v2947_v46, %v10058_v4  ;;  %v2974_v29 = vmul.f32 %v2951_v49, %v10064_v54  ;;  %v2975_v9 = vmul.f32 %v2955_v15, %v10071_v56 }
 0x41e   :  { %v2976_v32 = vmul.f32 %v2959_v20, %v10078_v22  ;;  %v2977_v1 = vmul.f32 %v2963_v19, %v10083_v8  ;;  %v2978_v3 = vmul.f32 %v2967_v23, %v10088_v52  ;;  %v2979_v49 = vmul.f32 %v2971_v21, %v10093_v36 }
 0x41f   :  { %7742 = vmatprep.mubr.f32.mxu1 %v10398_v62  ;;  %v10406_v38 = vand.u32 4294901760, %v2973_v17  ;;  %v10408_v16 = vand.u32 4294901760, %v2974_v29  ;;  %v10410_v63 = vand.u32 4294901760, %v2975_v9  ;;  %v10413_v60 = vsub.f32 %v2972_v24, %v10398_v62 }
 0x420   :  { %v10415_v11 = vand.u32 4294901760, %v2976_v32  ;;  %v10432_v47 = vand.u32 4294901760, %v2977_v1  ;;  %v10442_v46 = vand.u32 4294901760, %v2978_v3 }
 0x421   :  { %v10420_v25 = vsub.f32 %v2973_v17, %v10406_v38  ;;  %7743 = vmatmul.mubr.f32.vlgmr.msra.gmra.mxu1 %v10406_v38  ;;  %v10424_v27 = vsub.f32 %v2975_v9, %v10410_v63  ;;  %v3063_v31 = vand.u32 4294901760, %v10413_v60  ;;  %v10428_v0 = vsub.f32 %v2974_v29, %v10408_v16 }
 0x422   :  { %7799 = vmatpush3.msra.mxu1 %v9245_v28  ;;  %7745 = vmatprep.mubr.f32.mxu1 %v10408_v16  ;;  %v10439_v24 = vsub.f32 %v2976_v32, %v10415_v11  ;;  %v10458_v17 = vsub.f32 %v2977_v1, %v10432_v47  ;;  %v10462_v32 = vand.u32 4294901760, %v2979_v49 }
 0x423   :  { %7800 = vmatprep.subr.mxu1 %v9252_v34  ;;  %v3064_v33 = vsub.f32 %v10413_v60, %v3063_v31  ;;  %v3073_v10 = vand.u32 4294901760, %v10420_v25  ;;  %v3083_v5 = vand.u32 4294901760, %v10428_v0  ;;  %v3093_v23 = vand.u32 4294901760, %v10424_v27 }
 0x424   :  { %7801 = vmatpush3.msra.mxu1 %v9252_v34  ;;  %v3103_v9 = vand.u32 4294901760, %v10439_v24 }
 0x425   :  { %7802 = vmatprep.subr.mxu1 %v9262_v45  ;;  %7746 = vmatmul.mubr.f32.gmra.mxu1 %v10410_v63  ;;  %v3065_v15 = vand.u32 4294901760, %v3064_v33  ;;  %v3074_v20 = vsub.f32 %v10420_v25, %v3073_v10  ;;  %v3084_v19 = vsub.f32 %v10428_v0, %v3083_v5  ;;  %v3094_v21 = vsub.f32 %v10424_v27, %v3093_v23 }
 0x426   :  { %7803 = vmatpush3.msra.mxu1 %v9262_v45  ;;  %7748 = vmatprep.mubr.f32.mxu1 %v10415_v11  ;;  %v10469_v33 = vsub.f32 %v2978_v3, %v10442_v46  ;;  %v3104_v1 = vsub.f32 %v10439_v24, %v3103_v9  ;;  %v10481_v3 = vsub.f32 %v2979_v49, %v10462_v32 }
 0x427   :  { %7804 = vmatprep.subr.mxu1 %v9274_v57  ;;  %7698 = vmatprep.mubr.f32.mxu0 %v3065_v15  ;;  %v3075_v12 = vand.u32 4294901760, %v3074_v20  ;;  %v3085_v29 = vand.u32 4294901760, %v3084_v19  ;;  %v3113_v15 = vand.u32 4294901760, %v10458_v17  ;;  %v3095_v20 = vand.u32 4294901760, %v3094_v21 }
 0x428   :  { %7805 = vmatpush3.msra.mxu1 %v9274_v57  ;;  %v3123_v19 = vand.u32 4294901760, %v10469_v33 }
 0x429   :  { %7806 = vmatprep.subr.mxu1 %v9289_v14  ;;  %7699 = vmatmul.mubr.f32.vlgmr.msra.gmra.mxu0 %v3075_v12  ;;  %v3105_v12 = vand.u32 4294901760, %v3104_v1  ;;  %v3114_v49 = vsub.f32 %v10458_v17, %v3113_v15 }
 0x42a   :  { %7749 = vmatmul.mubr.f32.gmra.mxu1 %v10432_v47  ;;  %7755 = vmatpush3.msra.mxu0 %v9250_v30  ;;  %v3124_v21 = vsub.f32 %v10469_v33, %v3123_v19 }
 0x42b   :  { %7807 = vmatpush3.msra.mxu1 %v9289_v14  ;;  %7701 = vmatprep.mubr.f32.mxu0 %v3085_v29  ;;  %v3133_v29 = vand.u32 4294901760, %v10481_v3  ;;  %v3115_v1 = vand.u32 4294901760, %v3114_v49  ;;  %v11802_v49 = vld [vmem:[#allocation67_spill] sm:$0xff] }
 0x42c   :  { %7751 = vmatprep.mubr.f32.mxu1 %v10442_v46  ;;  %7756 = vmatprep.subr.mxu0 %v9260_v43 }
 0x42d   :  { %7808 = vmatprep.subr.mxu1 %v9300_v42  ;;  %7757 = vmatpush3.msra.mxu0 %v9260_v43 }
 0x42e   :  { %7809 = vmatpush3.msra.mxu1 %v9300_v42  ;;  %7758 = vmatprep.subr.mxu0 %v9272_v55 }
 0x42f   :  { %7810 = vmatprep.subr.mxu1 %v9315_v26  ;;  %7702 = vmatmul.mubr.f32.gmra.mxu0 %v3095_v20  ;;  %v3134_v20 = vsub.f32 %v10481_v3, %v3133_v29 }
 0x430   :  { %7752 = vmatmul.mubr.f32.gmra.mxu1 %v10462_v32  ;;  %7759 = vmatpush3.msra.mxu0 %v9272_v55 }
 0x431   :  { %7811 = vmatpush3.msra.mxu1 %v9315_v26  ;;  %7704 = vmatprep.mubr.f32.mxu0 %v3105_v12  ;;  %v3125_v12 = vand.u32 4294901760, %v3124_v21  ;;  %v11803_v21 = vld [vmem:[#allocation58_spill] sm:$0xff] }
 0x432   :  { %7760 = vmatprep.subr.mxu0 %v9286_v13  ;;  %7812 = vmatprep.subr.mxu1 %v9332_v53 }
 0x433   :  { %7830 = vmatprep.mubr.f32.mxu1 %v3063_v31  ;;  %7761 = vmatpush3.msra.mxu0 %v9286_v13  ;;  %v3135_v31 = vand.u32 4294901760, %v3134_v20  ;;  %v11805_v20 = vld [vmem:[#allocation68_spill] sm:$0xff] }
 0x434   :  { %7813 = vmatpush3.msra.mxu1 %v9332_v53  ;;  %7762 = vmatprep.subr.mxu0 %v9304_v44 }
 0x435   :  { %7814 = vmatprep.subr.mxu1 %v9348_v61  ;;  %7705 = vmatmul.mubr.f32.gmra.mxu0 %v3115_v1  ;;  %v11804_v1 = vld [vmem:[#allocation63_spill] sm:$0xff] }
 0x436   :  { %7763 = vmatpush3.msra.mxu0 %v9304_v44  ;;  %7815 = vmatpush3.msra.mxu1 %v9348_v61 }
 0x437   :  { %7707 = vmatprep.mubr.f32.mxu0 %v3125_v12  ;;  %7764 = vmatprep.subr.mxu0 %v11750_v58  ;;  %v11821_v12 = vmov 0.0  }
 0x438   :  { %7816 = vmatprep.subr.mxu1 %v11751_v37  ;;  %7765 = vmatpush3.msra.mxu0 %v11750_v58 }
 0x439   :  { %7817 = vmatpush3.msra.mxu1 %v11751_v37  ;;  %7766 = vmatprep.subr.mxu0 %v11752_v40 }
 0x43a   :  { %7818 = vmatprep.subr.mxu1 %v11753_v41  ;;  %7708 = vmatmul.mubr.f32.gmra.mxu0 %v3135_v31  ;;  %v11822_v31 = vld [vmem:[#allocation71_spill] sm:$0xff] }
 0x43b   :  { %7767 = vmatpush3.msra.mxu0 %v11752_v40  ;;  %7819 = vmatpush3.msra.mxu1 %v11753_v41 }
 0x43c   :  { %7768 = vmatprep.subr.mxu0 %v11754_v6  ;;  %7786 = vmatprep.mubr.f32.mxu0 %v10413_v60  ;;  %v11801_v60 = vld [vmem:[#allocation55_spill] sm:$0xff] }
 0x43d   :  { %7820 = vmatprep.subr.mxu1 %v11755_v50  ;;  %7769 = vmatpush3.msra.mxu0 %v11754_v6 }
 0x43e   :  { %7821 = vmatpush3.msra.mxu1 %v11755_v50  ;;  %7770 = vmatprep.subr.mxu0 %v11756_v51 }
 0x43f   :  { %7822 = vmatprep.subr.mxu1 %v11757_v18  ;;  %7771 = vmatpush3.msra.mxu0 %v11756_v51 }
 0x440   :  { %7823 = vmatpush3.msra.mxu1 %v11757_v18  ;;  %7772 = vmatprep.subr.mxu0 %v11758_v39 }
 0x441   :  { %7824 = vmatprep.subr.mxu1 %v11759_v2  ;;  %7773 = vmatpush3.msra.mxu0 %v11758_v39 }
 0x442   :  { %7825 = vmatpush3.msra.mxu1 %v11759_v2  ;;  %7774 = vmatprep.subr.mxu0 %v11760_v35 }
 0x443   :  { %7826 = vmatprep.subr.mxu1 %v11761_v7  ;;  %7775 = vmatpush3.msra.mxu0 %v11760_v35 }
 0x444   :  { %7827 = vmatpush3.msra.mxu1 %v11761_v7  ;;  %7776 = vmatprep.subr.mxu0 %v11801_v60 }
 0x445   :  { %7828 = vmatprep.subr.mxu1 %v11802_v49  ;;  %7777 = vmatpush3.msra.mxu0 %v11801_v60 }
 0x446   :  { %7829 = vmatpush3.msra.mxu1 %v11802_v49  ;;  %7778 = vmatprep.subr.mxu0 %v11803_v21 }
 0x447   :  { %7831 = vmatmul.mubr.f32.vlgmr.msra.gmra.mxu1 %v3073_v10  ;;  %7886 = vmatprep.subr.mxu1 %v9245_v28  ;;  %v11806_v10 = vld [vmem:[#allocation70_spill] sm:$0xff] }
 0x448   :  { %7779 = vmatpush3.msra.mxu0 %v11803_v21  ;;  %7833 = vmatprep.mubr.f32.mxu1 %v3083_v5  ;;  %v11807_v5 = vld [vmem:[#allocation17_spill] sm:$0xff] }
 0x449   :  { %7887 = vmatpush3.msra.mxu1 %v9245_v28  ;;  %7780 = vmatprep.subr.mxu0 %v11804_v1 }
 0x44a   :  { %7888 = vmatprep.subr.mxu1 %v9252_v34  ;;  %7781 = vmatpush3.msra.mxu0 %v11804_v1 }
 0x44b   :  { %7889 = vmatpush3.msra.mxu1 %v9252_v34  ;;  %7782 = vmatprep.subr.mxu0 %v11805_v20 }
 0x44c   :  { %7834 = vmatmul.mubr.f32.gmra.mxu1 %v3093_v23  ;;  %7890 = vmatprep.subr.mxu1 %v9262_v45  ;;  %v11808_v23 = vld [vmem:[#allocation19_spill] sm:$0xff] }
 0x44d   :  { %7783 = vmatpush3.msra.mxu0 %v11805_v20  ;;  %7836 = vmatprep.mubr.f32.mxu1 %v3103_v9  ;;  %v11814_v9 = vld [vmem:[#allocation42_spill] sm:$0xff] }
 0x44e   :  { %7891 = vmatpush3.msra.mxu1 %v9262_v45  ;;  %7784 = vmatprep.subr.mxu0 %v11806_v10 }
 0x44f   :  { %7892 = vmatprep.subr.mxu1 %v9274_v57  ;;  %7785 = vmatpush3.msra.mxu0 %v11806_v10 }
 0x450   :  { %7893 = vmatpush3.msra.mxu1 %v9274_v57  ;;  %7787 = vmatmul.mubr.f32.vlgmr.msra.gmra.mxu0 %v10420_v25  ;;  %v11809_v25 = vld [vmem:[#allocation22_spill] sm:$0xff] }
 0x451   :  { %7837 = vmatmul.mubr.f32.gmra.mxu1 %v3113_v15  ;;  %7842 = vmatprep.subr.mxu0 %v11807_v5  ;;  %v11816_v15 = vld [vmem:[#allocation52_spill] sm:$0xff] }
 0x452   :  { %7894 = vmatprep.subr.mxu1 %v9289_v14  ;;  %7789 = vmatprep.mubr.f32.mxu0 %v10428_v0  ;;  %v11810_v0 = vld [vmem:[#allocation26_spill] sm:$0xff] }
 0x453   :  { %7839 = vmatprep.mubr.f32.mxu1 %v3123_v19  ;;  %7843 = vmatpush3.msra.mxu0 %v11807_v5  ;;  %v11819_v19 = vld [vmem:[#allocation62_spill] sm:$0xff] }
 0x454   :  { %7895 = vmatpush3.msra.mxu1 %v9289_v14  ;;  %7844 = vmatprep.subr.mxu0 %v11808_v23 }
 0x455   :  { %7896 = vmatprep.subr.mxu1 %v9300_v42  ;;  %7845 = vmatpush3.msra.mxu0 %v11808_v23 }
 0x456   :  { %7897 = vmatpush3.msra.mxu1 %v9300_v42  ;;  %7790 = vmatmul.mubr.f32.gmra.mxu0 %v10424_v27  ;;  %v11811_v27 = vld [vmem:[#allocation32_spill] sm:$0xff] }
 0x457   :  { %7840 = vmatmul.mubr.f32.gmra.mxu1 %v3133_v29  ;;  %7846 = vmatprep.subr.mxu0 %v11809_v25  ;;  %v11820_v29 = vld [vmem:[#allocation66_spill] sm:$0xff] }
 0x458   :  { %7898 = vmatprep.subr.mxu1 %v9315_v26  ;;  %7792 = vmatprep.mubr.f32.mxu0 %v10439_v24  ;;  %v11812_v24 = vld [vmem:[#allocation34_spill] sm:$0xff] }
 0x459   :  { %7847 = vmatpush3.msra.mxu0 %v11809_v25  ;;  %7899 = vmatpush3.msra.mxu1 %v9315_v26 }
 0x45a   :  { %7918 = vmatprep.mubr.f32.mxu1 %v10398_v62  ;;  %7848 = vmatprep.subr.mxu0 %v11810_v0 }
 0x45b   :  { %7900 = vmatprep.subr.mxu1 %v9332_v53  ;;  %7849 = vmatpush3.msra.mxu0 %v11810_v0 }
 0x45c   :  { %7901 = vmatpush3.msra.mxu1 %v9332_v53  ;;  %7793 = vmatmul.mubr.f32.gmra.mxu0 %v10458_v17  ;;  %v11813_v17 = vld [vmem:[#allocation37_spill] sm:$0xff] }
 0x45d   :  { %7850 = vmatprep.subr.mxu0 %v11811_v27  ;;  %7902 = vmatprep.subr.mxu1 %v9348_v61 }
 0x45e   :  { %7795 = vmatprep.mubr.f32.mxu0 %v10469_v33  ;;  %7851 = vmatpush3.msra.mxu0 %v11811_v27  ;;  %v11815_v33 = vld [vmem:[#allocation46_spill] sm:$0xff] }
 0x45f   :  { %7903 = vmatpush3.msra.mxu1 %v9348_v61  ;;  %7852 = vmatprep.subr.mxu0 %v11812_v24 }
 0x460   :  { %7904 = vmatprep.subr.mxu1 %v11751_v37  ;;  %7853 = vmatpush3.msra.mxu0 %v11812_v24 }
 0x461   :  { %7905 = vmatpush3.msra.mxu1 %v11751_v37  ;;  %7796 = vmatmul.mubr.f32.gmra.mxu0 %v10481_v3  ;;  %v11818_v3 = vld [vmem:[#allocation57_spill] sm:$0xff] }
 0x462   :  { %7854 = vmatprep.subr.mxu0 %v11813_v17  ;;  %7906 = vmatprep.subr.mxu1 %v11753_v41 }
 0x463   :  { %7855 = vmatpush3.msra.mxu0 %v11813_v17  ;;  %7874 = vmatprep.mubr.f32.mxu0 %v10398_v62  ;;  %v11817_v62 = vld [vmem:[#allocation54_spill] sm:$0xff] }
 0x464   :  { %7907 = vmatpush3.msra.mxu1 %v11753_v41  ;;  %7856 = vmatprep.subr.mxu0 %v11814_v9 }
 0x465   :  { %7908 = vmatprep.subr.mxu1 %v11755_v50  ;;  %7857 = vmatpush3.msra.mxu0 %v11814_v9 }
 0x466   :  { %7909 = vmatpush3.msra.mxu1 %v11755_v50  ;;  %7858 = vmatprep.subr.mxu0 %v11815_v33 }
 0x467   :  { %7910 = vmatprep.subr.mxu1 %v11757_v18  ;;  %7859 = vmatpush3.msra.mxu0 %v11815_v33 }
 0x468   :  { %7911 = vmatpush3.msra.mxu1 %v11757_v18  ;;  %7860 = vmatprep.subr.mxu0 %v11816_v15 }
 0x469   :  { %7912 = vmatprep.subr.mxu1 %v11759_v2  ;;  %7861 = vmatpush3.msra.mxu0 %v11816_v15 }
 0x46a   :  { %7913 = vmatpush3.msra.mxu1 %v11759_v2  ;;  %7862 = vmatprep.subr.mxu0 %v11817_v62 }
 0x46b   :  { %7914 = vmatprep.subr.mxu1 %v11761_v7  ;;  %7863 = vmatpush3.msra.mxu0 %v11817_v62 }
 0x46c   :  { %7915 = vmatpush3.msra.mxu1 %v11761_v7  ;;  %7864 = vmatprep.subr.mxu0 %v11818_v3 }
 0x46d   :  { %7916 = vmatprep.subr.mxu1 %v11802_v49  ;;  %7865 = vmatpush3.msra.mxu0 %v11818_v3  ;;  %v11824_v3 = vld [vmem:[#allocation73_spill] sm:$0xff] }
 0x46e   :  { %7917 = vmatpush3.msra.mxu1 %v11802_v49  ;;  %7866 = vmatprep.subr.mxu0 %v11819_v19 }
 0x46f   :  { %7919 = vmatmul.mubr.f32.vlgmr.msra.gmra.mxu1 %v10406_v38  ;;  %7867 = vmatpush3.msra.mxu0 %v11819_v19 }
 0x470   :  { %7921 = vmatprep.mubr.f32.mxu1 %v10408_v16  ;;  %7868 = vmatprep.subr.mxu0 %v11820_v29 }
 0x471   :  { %7869 = vmatpush3.msra.mxu0 %v11820_v29  ;;  %7965 = vmatprep.subr.mxu1 %v11821_v12  ;;  %v11825_v29 = vld [vmem:[#allocation25_spill] sm:$0xff] }
 0x472   :  { %7870 = vmatprep.subr.mxu0 %v11822_v31  ;;  %7966 = vmatpush3.msra.mxu1 %v11823_v48 }
 0x473   :  { %7922 = vmatmul.mubr.f32.gmra.mxu1 %v10410_v63  ;;  %7871 = vmatpush3.msra.mxu0 %v11822_v31  ;;  %v11826_v31 = vld [vmem:[#allocation29_spill] sm:$0xff] }
 0x474   :  { %7924 = vmatprep.mubr.f32.mxu1 %v10415_v11  ;;  %7872 = vmatprep.subr.mxu0 %v11824_v3 }
 0x475   :  { %7873 = vmatpush3.msra.mxu0 %v11824_v3  ;;  %7967 = vmatprep.subr.mxu1 %v11821_v12 }
 0x476   :  { %7875 = vmatmul.mubr.f32.vlgmr.msra.gmra.mxu0 %v10406_v38  ;;  %7968 = vmatpush3.msra.mxu1 %v11825_v29  ;;  %v11827_v38 = vld [vmem:[#allocation33_spill] sm:$0xff] }
 0x477   :  { %7925 = vmatmul.mubr.f32.gmra.mxu1 %v10432_v47  ;;  %7877 = vmatprep.mubr.f32.mxu0 %v10408_v16  ;;  %v11828_v16 = vld [vmem:[#allocation40_spill] sm:$0xff] }
 0x478   :  { %7927 = vmatprep.mubr.f32.mxu1 %v10442_v46  ;;  %7969 = vmatprep.subr.mxu1 %v11821_v12 }
 0x479   :  { %7970 = vmatpush3.msra.mxu1 %v11826_v31  ;;  %7930 = vmatprep.subr.mxu0 %v11821_v12 }
 0x47a   :  { %7878 = vmatmul.mubr.f32.gmra.mxu0 %v10410_v63  ;;  %7971 = vmatprep.subr.mxu1 %v11821_v12  ;;  %v11829_v63 = vld [vmem:[#allocation41_spill] sm:$0xff] }
 0x47b   :  { %7928 = vmatmul.mubr.f32.gmra.mxu1 %v10462_v32  ;;  %7880 = vmatprep.mubr.f32.mxu0 %v10415_v11  ;;  %v11830_v11 = vld [vmem:[#allocation45_spill] sm:$0xff] }
 0x47c   :  { %7972 = vmatpush3.msra.mxu1 %v11827_v38  ;;  %7931 = vmatpush3.msra.mxu0 %v9245_v28 }
 0x47d   :  { %7973 = vmatprep.subr.mxu1 %v11821_v12  ;;  %7932 = vmatprep.subr.mxu0 %v11821_v12 }
 0x47e   :  { %7881 = vmatmul.mubr.f32.gmra.mxu0 %v10432_v47  ;;  %7974 = vmatpush3.msra.mxu1 %v11828_v16  ;;  %v11831_v47 = vld [vmem:[#allocation49_spill] sm:$0xff] }
 0x47f   :  { %7883 = vmatprep.mubr.f32.mxu0 %v10442_v46  ;;  %7975 = vmatprep.subr.mxu1 %v11821_v12  ;;  %v11832_v46 = vld [vmem:[#allocation53_spill] sm:$0xff] }
 0x480   :  { %7933 = vmatpush3.msra.mxu0 %v9252_v34  ;;  %7976 = vmatpush3.msra.mxu1 %v11829_v63 }
 0x481   :  { %7934 = vmatprep.subr.mxu0 %v11821_v12  ;;  %7977 = vmatprep.subr.mxu1 %v11821_v12 }
 0x482   :  { %7884 = vmatmul.mubr.f32.gmra.mxu0 %v10462_v32  ;;  %7978 = vmatpush3.msra.mxu1 %v11830_v11  ;;  %v11833_v32 = vld [vmem:[#allocation60_spill] sm:$0xff] }
 0x483   :  { %7935 = vmatpush3.msra.mxu0 %v9262_v45  ;;  %7979 = vmatprep.subr.mxu1 %v11821_v12 }
 0x484   :  { %7936 = vmatprep.subr.mxu0 %v11821_v12  ;;  %7980 = vmatpush3.msra.mxu1 %v11831_v47  ;;  %v11834_v47 = vld [vmem:[#allocation61_spill] sm:$0xff] }
 0x485   :  { %7937 = vmatpush3.msra.mxu0 %v9274_v57  ;;  %7981 = vmatprep.subr.mxu1 %v11821_v12 }
 0x486   :  { %7938 = vmatprep.subr.mxu0 %v11821_v12  ;;  %7982 = vmatpush3.msra.mxu1 %v11832_v46  ;;  %v11835_v46 = vld [vmem:[#allocation65_spill] sm:$0xff] }
 0x487   :  { %7939 = vmatpush3.msra.mxu0 %v9289_v14  ;;  %7983 = vmatprep.subr.mxu1 %v11821_v12 }
 0x488   :  { %7940 = vmatprep.subr.mxu0 %v11821_v12  ;;  %7984 = vmatpush3.msra.mxu1 %v11833_v32  ;;  %v11836_v32 = vld [vmem:[#allocation69_spill] sm:$0xff] }
 0x489   :  { %7941 = vmatpush3.msra.mxu0 %v9300_v42  ;;  %7985 = vmatprep.subr.mxu1 %v11821_v12 }
 0x48a   :  { %7942 = vmatprep.subr.mxu0 %v11821_v12  ;;  %7986 = vmatpush3.msra.mxu1 %v11834_v47  ;;  %v11837_v47 = vld [vmem:[#allocation72_spill] sm:$0xff] }
 0x48b   :  { %7943 = vmatpush3.msra.mxu0 %v9315_v26  ;;  %7987 = vmatprep.subr.mxu1 %v11821_v12 }
 0x48c   :  { %7944 = vmatprep.subr.mxu0 %v11821_v12  ;;  %7988 = vmatpush3.msra.mxu1 %v11835_v46  ;;  %v11838_v46 = vld [vmem:[#allocation74_spill] sm:$0xff] }
 0x48d   :  { %7945 = vmatpush3.msra.mxu0 %v9332_v53  ;;  %7989 = vmatprep.subr.mxu1 %v11821_v12 }
 0x48e   :  { %7946 = vmatprep.subr.mxu0 %v11821_v12  ;;  %7990 = vmatpush3.msra.mxu1 %v11836_v32  ;;  %v11839_v32 = vld [vmem:[#allocation75_spill] sm:$0xff] }
 0x48f   :  { %7947 = vmatpush3.msra.mxu0 %v9348_v61  ;;  %7991 = vmatprep.subr.mxu1 %v11821_v12 }
 0x490   :  { %7948 = vmatprep.subr.mxu0 %v11821_v12  ;;  %7992 = vmatpush3.msra.mxu1 %v11837_v47 }
 0x491   :  { %7949 = vmatpush3.msra.mxu0 %v11751_v37  ;;  %7993 = vmatprep.subr.mxu1 %v11821_v12 }
 0x492   :  { %7950 = vmatprep.subr.mxu0 %v11821_v12  ;;  %7994 = vmatpush3.msra.mxu1 %v11838_v46 }
 0x493   :  { %7951 = vmatpush3.msra.mxu0 %v11753_v41  ;;  %7995 = vmatprep.subr.mxu1 %v11821_v12 }
 0x494   :  { %7952 = vmatprep.subr.mxu0 %v11821_v12  ;;  %7996 = vmatpush3.msra.mxu1 %v11839_v32 }
 0x495   :  { %7953 = vmatpush3.msra.mxu0 %v11755_v50  ;;  %7997 = vmatprep.mubr.msk.f32.mxu1 %vm8616_vm0, %v11821_v12 }
 0x496   :  { %7954 = vmatprep.subr.mxu0 %v11821_v12  ;;  %8035 = vmatprep.subr.mxu1 %v11821_v12 }
 0x497   :  { %7955 = vmatpush3.msra.mxu0 %v11757_v18  ;;  %7962 = vmatprep.mubr.msk.f32.mxu0 %vm8616_vm0, %v11821_v12 }
 0x498   :  { %7956 = vmatprep.subr.mxu0 %v11821_v12 }
 0x499   :  { %7957 = vmatpush3.msra.mxu0 %v11759_v2 }
 0x49a   :  { %7958 = vmatprep.subr.mxu0 %v11821_v12 }
 0x49b   :  { %7959 = vmatpush3.msra.mxu0 %v11761_v7 }
 0x49c   :  { %7960 = vmatprep.subr.mxu0 %v11821_v12 }
 0x49d   :  { %7961 = vmatpush3.msra.mxu0 %v11802_v49 }
 0x49e   :  { %8000 = vmatprep.subr.mxu0 %v11821_v12 }
 0x4e1   :  { %v7744_v32 = vpop.f32.mrf.mxu1 }
 0x4e3   :  { %v3288_v46 = vpop.f32.mrf.mxu1 }
 0x4e5   :  { %v7747_v11 = vpop.f32.mrf.mxu1 }
 0x4e7   :  { %v3300_v16 = vpop.f32.mrf.mxu1 }
 0x4e9   :  { %v7700_v47 = vpop.f32.mrf.mxu0 }
 0x4ea   :  { %v7750_v3 = vpop.f32.mrf.mxu1  ;;  %v3295_v35 = vadd.f32 %v7744_v32, %v7700_v47 }
 0x4eb   :  { %v3067_v63 = vpop.f32.mrf.mxu0 }
 0x4ec   :  { %v3312_v29 = vpop.f32.mrf.mxu1  ;;  %v3289_v18 = vadd.f32 %v3288_v46, %v3067_v63 }
 0x4ef   :  { %v7703_v38 = vpop.f32.mrf.mxu0 }
 0x4f0   :  { %v7753_v19 = vpop.f32.mrf.mxu1  ;;  %v3307_v6 = vadd.f32 %v7747_v11, %v7703_v38 }
 0x4f1   :  { %v3087_v31 = vpop.f32.mrf.mxu0 }
 0x4f2   :  { %v3324_v15 = vpop.f32.mrf.mxu1  ;;  %v3301_v58 = vadd.f32 %v3300_v16, %v3087_v31 }
 0x4f5   :  { %v7706_v48 = vpop.f32.mrf.mxu0 }
 0x4f6   :  { %v3319_v53 = vadd.f32 %v7750_v3, %v7706_v48 }
 0x4f7   :  { %v3107_v62 = vpop.f32.mrf.mxu0 }
 0x4f8   :  { %v3313_v14 = vadd.f32 %v3312_v29, %v3107_v62 }
 0x4fa   :  { %v7709_v9 = vpop.f32.mrf.mxu0 }
 0x4fc   :  { %v3127_v24 = vpop.f32.mrf.mxu0 }
 0x4fd   :  { %v3325_v48 = vadd.f32 %v3324_v15, %v3127_v24 }
 0x507   :  { %v7832_v33 = vpop.f32.mrf.mxu1 }
 0x509   :  { %v3572_v17 = vpop.f32.mrf.mxu1 }
 0x50c   :  { %v7835_v0 = vpop.f32.mrf.mxu1 }
 0x50e   :  { %v3588_v23 = vpop.f32.mrf.mxu1 }
 0x510   :  { %v7788_v27 = vpop.f32.mrf.mxu0 }
 0x511   :  { %v7838_v10 = vpop.f32.mrf.mxu1  ;;  %v3442_v51 = vadd.f32 %v7788_v27, %v3295_v35  ;;  %v3331_v27 = vadd.f32 %v7753_v19, %v7709_v9 }
 0x512   :  { %v3434_v25 = vpop.f32.mrf.mxu0 }
 0x513   :  { %v3604_v1 = vpop.f32.mrf.mxu1  ;;  %v3435_v41 = vadd.f32 %v3434_v25, %v3289_v18  ;;  %v3581_v44 = vadd.f32 %v7832_v33, %v3442_v51 }
 0x515   :  { %v3573_v43 = vadd.f32 %v3572_v17, %v3435_v41 }
 0x516   :  { %v7791_v5 = vpop.f32.mrf.mxu0 }
 0x517   :  { %v7841_v49 = vpop.f32.mrf.mxu1  ;;  %v3456_v61 = vadd.f32 %v7791_v5, %v3307_v6 }
 0x518   :  { %v3448_v20 = vpop.f32.mrf.mxu0 }
 0x519   :  { %v3620_v7 = vpop.f32.mrf.mxu1  ;;  %v3449_v55 = vadd.f32 %v3448_v20, %v3301_v58  ;;  %v3597_v35 = vadd.f32 %v7835_v0, %v3456_v61 }
 0x51b   :  { %v3589_v51 = vadd.f32 %v3588_v23, %v3449_v55 }
 0x51c   :  { %v7794_v21 = vpop.f32.mrf.mxu0 }
 0x51d   :  { %v3470_v47 = vadd.f32 %v7794_v21, %v3319_v53 }
 0x51e   :  { %v3462_v60 = vpop.f32.mrf.mxu0 }
 0x51f   :  { %v3463_v38 = vadd.f32 %v3462_v60, %v3313_v14  ;;  %v3613_v58 = vadd.f32 %v7838_v10, %v3470_v47 }
 0x521   :  { %v7797_v39 = vpop.f32.mrf.mxu0  ;;  %v3605_v61 = vadd.f32 %v3604_v1, %v3463_v38 }
 0x522   :  { %v3484_v5 = vadd.f32 %v7797_v39, %v3331_v27 }
 0x523   :  { %v3476_v37 = vpop.f32.mrf.mxu0 }
 0x524   :  { %v3477_v41 = vadd.f32 %v3476_v37, %v3325_v48  ;;  %v3629_v20 = vadd.f32 %v7841_v49, %v3484_v5 }
 0x526   :  { %v3621_v23 = vadd.f32 %v3620_v7, %v3477_v41 }
 0x52f   :  { %v7920_v2 = vpop.f32.mrf.mxu1 }
 0x531   :  { %v3876_v50 = vpop.f32.mrf.mxu1 }
 0x533   :  { %v7923_v40 = vpop.f32.mrf.mxu1 }
 0x535   :  { %v3888_v13 = vpop.f32.mrf.mxu1 }
 0x536   :  { %v7876_v26 = vpop.f32.mrf.mxu0 }
 0x537   :  { %v3754_v42 = vadd.f32 %v7876_v26, %v3581_v44  ;;  %v7926_v18 = vpop.f32.mrf.mxu1 }
 0x538   :  { %v3747_v32 = vpop.f32.mrf.mxu0 }
 0x539   :  { %v3883_v30 = vadd.f32 %v7920_v2, %v3754_v42  ;;  %v3748_v63 = vadd.f32 %v3747_v32, %v3573_v43  ;;  %v3900_v42 = vpop.f32.mrf.mxu1 }
 0x53a   :  { %v7879_v25 = vpop.f32.mrf.mxu0 }
 0x53b   :  { %v3924_v11 = vmul.f32 1.442695, %v3883_v30  ;;  %v3877_v31 = vadd.f32 %v3876_v50, %v3748_v63  ;;  %v3766_v6 = vadd.f32 %v7879_v25, %v3597_v35  ;;  %v7929_v39 = vpop.f32.mrf.mxu1 }
 0x53c   :  { %v3759_v33 = vpop.f32.mrf.mxu0 }
 0x53d   :  { %8435 = vpow2.f32 %v3924_v11  ;;  %v3922_v44 = vmul.f32 1.442695, %v3877_v31  ;;  %v3895_v26 = vadd.f32 %v7923_v40, %v3766_v6  ;;  %v3760_v53 = vadd.f32 %v3759_v33, %v3589_v51  ;;  %v3912_v15 = vpop.f32.mrf.mxu1 }
 0x53e   :  { %v7882_v43 = vpop.f32.mrf.mxu0 }
 0x53f   :  { %8437 = vpow2.f32 %v3922_v44  ;;  %v3928_v14 = vmul.f32 1.442695, %v3895_v26  ;;  %v3889_v2 = vadd.f32 %v3888_v13, %v3760_v53  ;;  %v3778_v60 = vadd.f32 %v7882_v43, %v3613_v58 }
 0x540   :  { %v3771_v30 = vpop.f32.mrf.mxu0 }
 0x541   :  { %v3926_v50 = vmul.f32 1.442695, %v3889_v2  ;;  %v3907_v21 = vadd.f32 %v7926_v18, %v3778_v60  ;;  %v3772_v55 = vadd.f32 %v3771_v30, %v3605_v61  ;;  %8439 = vpow2.f32 %v3928_v14 }
 0x542   :  { %v7885_v10 = vpop.f32.mrf.mxu0 }
 0x543   :  { %8441 = vpow2.f32 %v3926_v50  ;;  %v3932_v40 = vmul.f32 1.442695, %v3907_v21  ;;  %v3901_v0 = vadd.f32 %v3900_v42, %v3772_v55  ;;  %v3790_v37 = vadd.f32 %v7885_v10, %v3629_v20 }
 0x544   :  { %v3783_v24 = vpop.f32.mrf.mxu0 }
 0x545   :  { %v3930_v17 = vmul.f32 1.442695, %v3901_v0  ;;  %v3919_v1 = vadd.f32 %v7929_v39, %v3790_v37  ;;  %v3784_v9 = vadd.f32 %v3783_v24, %v3621_v23  ;;  %8443 = vpow2.f32 %v3932_v40 }
 0x547   :  { %8445 = vpow2.f32 %v3930_v17  ;;  %v3936_v13 = vmul.f32 1.442695, %v3919_v1  ;;  %v3913_v62 = vadd.f32 %v3912_v15, %v3784_v9 }
 0x549   :  { %v3934_v3 = vmul.f32 1.442695, %v3913_v62  ;;  %8447 = vpow2.f32 %v3936_v13 }
 0x54a   :  { %v10718_v19 = vpop.eup %8435 }
 0x54b   :  { %8449 = vpow2.f32 %v3934_v3  ;;  %3940 = vrot.lane.b32.xlu0 %v10718_v19, %s8617_s3 }
 0x54c   :  { %v10722_v7 = vpop.eup %8437 }
 0x54d   :  { %3938 = vrot.lane.b32.xlu1 %v10722_v7, %s8617_s3 }
 0x54e   :  { %v10726_v49 = vpop.eup %8439 }
 0x550   :  { %v10728_v29 = vpop.eup %8441 }
 0x551   :  { %3942 = vrot.lane.b32.xlu0 %v10728_v29, %s8617_s3  ;;  %3944 = vrot.lane.b32.xlu1 %v10726_v49, %s8617_s3 }
 0x552   :  { %v10734_v16 = vpop.eup %8443 }
 0x554   :  { %v10736_v46 = vpop.eup %8445 }
 0x555   :  { %3946 = vrot.lane.b32.xlu0 %v10736_v46, %s8617_s3  ;;  %3948 = vrot.lane.b32.xlu1 %v10734_v16, %s8617_s3 }
 0x556   :  { %v10742_v47 = vpop.eup %8447 }
 0x558   :  { %v10744_v32 = vpop.eup %8449 }
 0x559   :  { %3952 = vrot.lane.b32.xlu1 %v10742_v47, %s8617_s3  ;;  %3950 = vrot.lane.b32.xlu0 %v10744_v32, %s8617_s3 }
 0x5bd   :  { %v3941_v63 = vpop.permute.xlu0 %3940 }
 0x5be   :  { %v3955_v35 = vadd.f32 %v10718_v19, %v3941_v63 }
 0x5bf   :  { %v3939_v27 = vpop.permute.xlu1 %3938 }
 0x5c0   :  { %3964 = vrot.lane.b32.xlu0 %v3955_v35, %s8618_s13  ;;  %v3954_v38 = vadd.f32 %v10722_v7, %v3939_v27 }
 0x5c3   :  { %v3943_v18 = vpop.permute.xlu0 %3942  ;;  %v3945_v25 = vpop.permute.xlu1 %3944 }
 0x5c4   :  { %v3957_v11 = vadd.f32 %v10726_v49, %v3945_v25  ;;  %3962 = vrot.lane.b32.xlu0 %v3954_v38, %s8618_s13  ;;  %v3956_v51 = vadd.f32 %v10728_v29, %v3943_v18 }
 0x5c6   :  { %3968 = vrot.lane.b32.xlu1 %v3957_v11, %s8618_s13 }
 0x5c7   :  { %v3947_v31 = vpop.permute.xlu0 %3946  ;;  %v3949_v6 = vpop.permute.xlu1 %3948 }
 0x5c8   :  { %v3958_v48 = vadd.f32 %v10736_v46, %v3947_v31  ;;  %v3959_v33 = vadd.f32 %v10734_v16, %v3949_v6 }
 0x5ca   :  { %3966 = vrot.lane.b32.xlu1 %v3956_v51, %s8618_s13  ;;  %3970 = vrot.lane.b32.xlu0 %v3958_v48, %s8618_s13 }
 0x5cb   :  { %v3951_v5 = vpop.permute.xlu0 %3950  ;;  %v3953_v44 = vpop.permute.xlu1 %3952 }
 0x5cc   :  { %v3960_v58 = vadd.f32 %v10744_v32, %v3951_v5  ;;  %v3961_v26 = vadd.f32 %v10742_v47, %v3953_v44 }
 0x5ce   :  { %3972 = vrot.lane.b32.xlu1 %v3959_v33, %s8618_s13  ;;  %3974 = vrot.lane.b32.xlu0 %v3960_v58, %s8618_s13 }
 0x5d2   :  { %3976 = vrot.lane.b32.xlu1 %v3961_v26, %s8618_s13 }
 0x632   :  { %v3965_v53 = vpop.permute.xlu0 %3964 }
 0x633   :  { %v3979_v41 = vadd.f32 %v3965_v53, %v3955_v35 }
 0x635   :  { %8451 = vrcp.f32 %v3979_v41 }
 0x636   :  { %v3963_v42 = vpop.permute.xlu0 %3962 }
 0x637   :  { %v3978_v43 = vadd.f32 %v3963_v42, %v3954_v38 }
 0x638   :  { %v3969_v61 = vpop.permute.xlu1 %3968 }
 0x639   :  { %8453 = vrcp.f32 %v3978_v43  ;;  %v3981_v14 = vadd.f32 %v3969_v61, %v3957_v11 }
 0x63b   :  { %8455 = vrcp.f32 %v3981_v14 }
 0x63c   :  { %v3967_v2 = vpop.permute.xlu1 %3966  ;;  %v3971_v60 = vpop.permute.xlu0 %3970 }
 0x63d   :  { %v3980_v30 = vadd.f32 %v3967_v2, %v3956_v51  ;;  %v3982_v50 = vadd.f32 %v3971_v60, %v3958_v48 }
 0x63f   :  { %8457 = vrcp.f32 %v3980_v30 }
 0x640   :  { %8459 = vrcp.f32 %v3982_v50  ;;  %v3973_v21 = vpop.permute.xlu1 %3972  ;;  %v3975_v55 = vpop.permute.xlu0 %3974 }
 0x641   :  { %v3983_v20 = vadd.f32 %v3973_v21, %v3959_v33  ;;  %v3984_v39 = vadd.f32 %v3975_v55, %v3960_v58 }
 0x642   :  { %v8452_v10 = vpop.eup %8451 }
 0x643   :  { %v4003_v23 = vmul.f32 %v8452_v10, %v10718_v19  ;;  %8461 = vrcp.f32 %v3983_v20 }
 0x644   :  { %8463 = vrcp.f32 %v3984_v39  ;;  %v3977_v40 = vpop.permute.xlu1 %3976 }
 0x645   :  { %v4011_v0 = vmul.f32 %v4003_v23, %v10058_v4  ;;  %v3985_v37 = vadd.f32 %v3977_v40, %v3961_v26  ;;  %v11840_v23 = vld [vmem:[#allocation77_spill] sm:$0xff] }
 0x646   :  { %v8454_v24 = vpop.eup %8453 }
 0x647   :  { %v4024_v17 = vrot.slane %v4011_v0, 4  ;;  %v4002_v1 = vmul.f32 %v8454_v24, %v10722_v7  ;;  %8465 = vrcp.f32 %v3985_v37 }
 0x648   :  { %v8456_v9 = vpop.eup %8455 }
 0x649   :  { %v4025_v15 = vadd.f32 %v4024_v17, %v4011_v0  ;;  %v4010_v13 = vmul.f32 %v4002_v1, %v10055_v59  ;;  %v4005_v62 = vmul.f32 %v8456_v9, %v10726_v49  ;;  %v11841_v9 = vld [vmem:[#allocation76_spill] sm:$0xff] }
 0x64b   :  { %v4026_v3 = vrot.slane %v4025_v15, 2  ;;  %v4018_v63 = vrot.slane %v4010_v13, 4  ;;  %v4013_v19 = vmul.f32 %v4005_v62, %v10071_v56 }
 0x64c   :  { %v8458_v35 = vpop.eup %8457 }
 0x64d   :  { %v8460_v27 = vpop.eup %8459  ;;  %v4027_v38 = vadd.f32 %v4026_v3, %v4025_v15  ;;  %v4019_v18 = vadd.f32 %v4018_v63, %v4010_v13  ;;  %v4036_v25 = vrot.slane %v4013_v19, 4  ;;  %v4004_v11 = vmul.f32 %v8458_v35, %v10728_v29  ;;  %v11842_v13 = vld [vmem:[#allocation79_spill] sm:$0xff] }
 0x64e   :  { %v4006_v7 = vmul.f32 %v8460_v27, %v10736_v46 }
 0x64f   :  { %v4028_v31 = vrot.slane %v4027_v38, 1  ;;  %v4020_v6 = vrot.slane %v4019_v18, 2  ;;  %v4037_v51 = vadd.f32 %v4036_v25, %v4013_v19  ;;  %v4012_v48 = vmul.f32 %v4004_v11, %v10064_v54 }
 0x650   :  { %v8462_v5 = vpop.eup %8461  ;;  %v4014_v49 = vmul.f32 %v4006_v7, %v10078_v22 }
 0x651   :  { %v8464_v33 = vpop.eup %8463  ;;  %v4021_v58 = vadd.f32 %v4020_v6, %v4019_v18  ;;  %v4038_v44 = vrot.slane %v4037_v51, 2  ;;  %v4030_v26 = vrot.slane %v4012_v48, 4  ;;  %v4007_v41 = vmul.f32 %v8462_v5, %v10734_v16  ;;  %v11844_v5 = vld [vmem:[#allocation80_spill] sm:$0xff] }
 0x652   :  { %v4042_v53 = vrot.slane %v4014_v49, 4  ;;  %v4008_v42 = vmul.f32 %v8464_v33, %v10744_v32  ;;  %v4029_v29 = vadd.f32 %v4028_v31, %v4027_v38 }
 0x653   :  { %v4022_v43 = vrot.slane %v4021_v58, 1  ;;  %v4039_v46 = vadd.f32 %v4038_v44, %v4037_v51  ;;  %v4031_v61 = vadd.f32 %v4030_v26, %v4012_v48  ;;  %v4015_v60 = vmul.f32 %v4007_v41, %v10083_v8  ;;  %v11843_v51 = vld [vmem:[#allocation78_spill] sm:$0xff] }
 0x654   :  { %v8466_v14 = vpop.eup %8465  ;;  %v4043_v2 = vadd.f32 %v4042_v53, %v4014_v49  ;;  %v4016_v30 = vmul.f32 %v4008_v42, %v10088_v52  ;;  %v10782_v32 = vadd.f32 %v4029_v29, %v11840_v23  ;;  %v11889_v23 = vld [vmem:[#allocation21_spill] sm:$0xff] }
 0x655   :  { %v4023_v50 = vadd.f32 %v4022_v43, %v4021_v58  ;;  %v4040_v21 = vrot.slane %v4039_v46, 1  ;;  %v4032_v55 = vrot.slane %v4031_v61, 2  ;;  %v4048_v39 = vrot.slane %v4015_v60, 4 }
 0x656   :  { %v4044_v20 = vrot.slane %v4043_v2, 2  ;;  %v4054_v10 = vrot.slane %v4016_v30, 4  ;;  %v4009_v16 = vmul.f32 %v8466_v14, %v10742_v47  ;;  %v4075_v27 = vmul.f32 %v10782_v32, %v10782_v32 }
 0x657   :  { %v4041_v40 = vadd.f32 %v4040_v21, %v4039_v46  ;;  %v4033_v0 = vadd.f32 %v4032_v55, %v4031_v61  ;;  %v4049_v24 = vadd.f32 %v4048_v39, %v4015_v60  ;;  %v10786_v15 = vadd.f32 %v4023_v50, %v11841_v9  ;;  %v11888_v9 = vld [vmem:[#allocation62_spill] sm:$0xff] }
 0x658   :  { %v4045_v37 = vadd.f32 %v4044_v20, %v4043_v2  ;;  %v4055_v17 = vadd.f32 %v4054_v10, %v4016_v30  ;;  %v4017_v1 = vmul.f32 %v4009_v16, %v10093_v36  ;;  %v4090_v26 = vrot.slane %v4075_v27, 7  ;;  %v11845_v2 = vld [vmem:[#allocation81_spill] sm:$0xff]  ;;  %v11846_v30 = vld [vmem:[#allocation82_spill] sm:$0xff] }
 0x659   :  { %v10789_v62 = vadd.f32 %v4041_v40, %v11842_v13  ;;  %v4034_v3 = vrot.slane %v4033_v0, 1  ;;  %v4050_v19 = vrot.slane %v4049_v24, 2  ;;  %v4074_v31 = vmul.f32 %v10786_v15, %v10786_v15  ;;  %v11887_v13 = vld [vmem:[#allocation57_spill] sm:$0xff] }
 0x65a   :  { %v4046_v63 = vrot.slane %v4045_v37, 1  ;;  %v4056_v47 = vrot.slane %v4055_v17, 2  ;;  %v4060_v35 = vrot.slane %v4017_v1, 4 }
 0x65b   :  { %v4035_v38 = vadd.f32 %v4034_v3, %v4033_v0  ;;  %v4051_v25 = vadd.f32 %v4050_v19, %v4049_v24  ;;  %v4077_v6 = vmul.f32 %v10789_v62, %v10789_v62  ;;  %v4091_v46 = vsel %vm2252_vm1, %v4090_v26, %v4074_v31  ;;  %v11849_v31 = vld [vmem:[#allocation24_spill] sm:$0xff]  ;;  %v11854_v26 = vld [vmem:[#allocation23_spill] sm:$0xff] }
 0x65c   :  { %v4047_v18 = vadd.f32 %v4046_v63, %v4045_v37  ;;  %v4057_v11 = vadd.f32 %v4056_v47, %v4055_v17  ;;  %v4061_v7 = vadd.f32 %v4060_v35, %v4017_v1  ;;  %v11847_v37 = vld [vmem:[#allocation83_spill] sm:$0xff] }
 0x65d   :  { %v10798_v48 = vadd.f32 %v4035_v38, %v11843_v51  ;;  %v4052_v33 = vrot.slane %v4051_v25, 1  ;;  %v4094_v14 = vrot.slane %v4077_v6, 5  ;;  %v11850_v6 = vld [vmem:[#allocation18_spill] sm:$0xff] }
 0x65e   :  { %v10801_v49 = vadd.f32 %v4047_v18, %v11844_v5  ;;  %v4058_v58 = vrot.slane %v4057_v11, 1  ;;  %v4062_v44 = vrot.slane %v4061_v7, 2  ;;  %v11885_v5 = vld [vmem:[#allocation52_spill] sm:$0xff]  ;;  %v11886_v51 = vld [vmem:[#allocation54_spill] sm:$0xff] }
 0x65f   :  { %v4076_v53 = vmul.f32 %v10798_v48, %v10798_v48  ;;  %v4053_v42 = vadd.f32 %v4052_v33, %v4051_v25  ;;  %v11851_v33 = vld [vmem:[#allocation27_spill] sm:$0xff] }
 0x660   :  { %v4078_v41 = vmul.f32 %v10801_v49, %v10801_v49  ;;  %v4059_v29 = vadd.f32 %v4058_v58, %v4057_v11  ;;  %v4063_v43 = vadd.f32 %v4062_v44, %v4061_v7  ;;  %v11848_v7 = vld [vmem:[#allocation16_spill] sm:$0xff]  ;;  %v11853_v44 = vld [vmem:[#allocation31_spill] sm:$0xff] }
 0x661   :  { %v4092_v61 = vrot.slane %v4076_v53, 6  ;;  %v10809_v60 = vadd.f32 %v4053_v42, %v11845_v2  ;;  %v11852_v58 = vld [vmem:[#allocation20_spill] sm:$0xff]  ;;  %v11857_v42 = vld [vmem:[#allocation39_spill] sm:$0xff]  ;;  %v11884_v2 = vld [vmem:[#allocation46_spill] sm:$0xff] }
 0x662   :  { %v10812_v50 = vadd.f32 %v4059_v29, %v11846_v30  ;;  %v4064_v21 = vrot.slane %v4063_v43, 1  ;;  %v4096_v55 = vrot.slane %v4078_v41, 4  ;;  %v11855_v53 = vld [vmem:[#allocation36_spill] sm:$0xff]  ;;  %v11858_v29 = vld [vmem:[#allocation30_spill] sm:$0xff] }
 0x663   :  { %v4093_v20 = vsel %vm2255_vm2, %v4092_v61, %v4091_v46  ;;  %v4079_v39 = vmul.f32 %v10809_v60, %v10809_v60  ;;  %v11856_v41 = vld [vmem:[#allocation28_spill] sm:$0xff]  ;;  %v11860_v46 = vld [vmem:[#allocation35_spill] sm:$0xff]  ;;  %v11883_v30 = vld [vmem:[#allocation42_spill] sm:$0xff] }
 0x664   :  { %v4065_v10 = vadd.f32 %v4064_v21, %v4063_v43  ;;  %v4080_v16 = vmul.f32 %v10812_v50, %v10812_v50  ;;  %v4095_v40 = vsel %vm2258_vm3, %v4094_v14, %v4093_v20  ;;  %v11859_v43 = vld [vmem:[#allocation44_spill] sm:$0xff]  ;;  %v11861_v61 = vld [vmem:[#allocation47_spill] sm:$0xff]  ;;  %v11862_v14 = vld [vmem:[#allocation38_spill] sm:$0xff] }
 0x665   :  { %v4097_v0 = vsel %vm2261_vm4, %v4096_v55, %v4095_v40  ;;  %v4098_v17 = vrot.slane %v4079_v39, 3  ;;  %v11863_v21 = vld [vmem:[#allocation51_spill] sm:$0xff]  ;;  %v11865_v20 = vld [vmem:[#allocation56_spill] sm:$0xff] }
 0x666   :  { %v10822_v24 = vadd.f32 %v4065_v10, %v11847_v37  ;;  %v4100_v1 = vrot.slane %v4080_v16, 2  ;;  %v11864_v55 = vld [vmem:[#allocation43_spill] sm:$0xff]  ;;  %v11866_v39 = vld [vmem:[#allocation48_spill] sm:$0xff]  ;;  %v11868_v16 = vld [vmem:[#allocation50_spill] sm:$0xff] }
 0x667   :  { %v4099_v63 = vsel %vm2264_vm5, %v4098_v17, %v4097_v0  ;;  %v11867_v10 = vld [vmem:[#allocation59_spill] sm:$0xff]  ;;  %v11869_v40 = vld [vmem:[#allocation64_spill] sm:$0xff]  ;;  %v11882_v37 = vld [vmem:[#allocation37_spill] sm:$0xff] }
 0x668   :  { %v4081_v3 = vmul.f32 %v10822_v24, %v10822_v24  ;;  %v4101_v47 = vsel %vm2267_vm6, %v4100_v1, %v4099_v63  ;;  %v11870_v0 = vld [vmem:[#allocation55_spill] sm:$0xff]  ;;  %v11872_v1 = vld [vmem:[#allocation58_spill] sm:$0xff]  ;;  %v11874_v63 = vld [vmem:[#allocation68_spill] sm:$0xff] }
 0x669   :  { %v11871_v17 = vld [vmem:[#allocation67_spill] sm:$0xff] }
 0x66a   :  { %v4102_v19 = vrot.slane %v4081_v3, 1  ;;  %v11873_v3 = vld [vmem:[#allocation63_spill] sm:$0xff] }
 0x66c   :  { %v4103_v35 = vsel %vm2270_vm7, %v4102_v19, %v4101_v47  ;;  %v11875_v19 = vld [vmem:[#allocation70_spill] sm:$0xff]  ;;  %v11876_v47 = vld [vmem:[#allocation17_spill] sm:$0xff] }
 0x66d   :  { %v10829_v27 = vand.u32 4294901760, %v4103_v35 }
 0x66f   :  { %v10832_v38 = vsub.f32 %v4103_v35, %v10829_v27  ;;  %7998 = vmatmul.mubr.f32.vlgmr.msra.gmra.mxu1 %v10829_v27  ;;  %v11877_v35 = vld [vmem:[#allocation19_spill] sm:$0xff] }
 0x670   :  { %8036 = vmatpush3.msra.mxu1 %v9245_v28  ;;  %8067 = vmatprep.mubr.msk.f32.mxu1 %vm8616_vm0, %v11821_v12 }
 0x671   :  { %8037 = vmatprep.subr.mxu1 %v11821_v12  ;;  %v4188_v18 = vand.u32 4294901760, %v10832_v38 }
 0x672   :  { %8038 = vmatpush3.msra.mxu1 %v9252_v34 }
 0x673   :  { %8039 = vmatprep.subr.mxu1 %v11821_v12  ;;  %v4189_v25 = vsub.f32 %v10832_v38, %v4188_v18 }
 0x674   :  { %8040 = vmatpush3.msra.mxu1 %v9262_v45 }
 0x675   :  { %8041 = vmatprep.subr.mxu1 %v11821_v12  ;;  %v4190_v11 = vand.u32 4294901760, %v4189_v25  ;;  %v11880_v25 = vld [vmem:[#allocation32_spill] sm:$0xff] }
 0x676   :  { %8042 = vmatpush3.msra.mxu1 %v9274_v57 }
 0x677   :  { %8043 = vmatprep.subr.mxu1 %v11821_v12  ;;  %7963 = vmatmul.mubr.f32.vlgmr.msra.gmra.mxu0 %v4190_v11  ;;  %v11881_v11 = vld [vmem:[#allocation34_spill] sm:$0xff] }
 0x678   :  { %8001 = vmatpush3.msra.mxu0 %v11848_v7  ;;  %8044 = vmatpush3.msra.mxu1 %v11849_v31 }
 0x679   :  { %8002 = vmatprep.subr.mxu0 %v11821_v12  ;;  %8045 = vmatprep.subr.mxu1 %v11821_v12 }
 0x67a   :  { %8003 = vmatpush3.msra.mxu0 %v11850_v6  ;;  %8046 = vmatpush3.msra.mxu1 %v11851_v33 }
 0x67b   :  { %8004 = vmatprep.subr.mxu0 %v11821_v12  ;;  %8047 = vmatprep.subr.mxu1 %v11821_v12 }
 0x67c   :  { %8005 = vmatpush3.msra.mxu0 %v11852_v58  ;;  %8048 = vmatpush3.msra.mxu1 %v11853_v44 }
 0x67d   :  { %8006 = vmatprep.subr.mxu0 %v11821_v12  ;;  %8049 = vmatprep.subr.mxu1 %v11821_v12 }
 0x67e   :  { %8007 = vmatpush3.msra.mxu0 %v11854_v26  ;;  %8050 = vmatpush3.msra.mxu1 %v11855_v53 }
 0x67f   :  { %8008 = vmatprep.subr.mxu0 %v11821_v12  ;;  %8051 = vmatprep.subr.mxu1 %v11821_v12 }
 0x680   :  { %8009 = vmatpush3.msra.mxu0 %v11856_v41  ;;  %8052 = vmatpush3.msra.mxu1 %v11857_v42 }
 0x681   :  { %8010 = vmatprep.subr.mxu0 %v11821_v12  ;;  %8053 = vmatprep.subr.mxu1 %v11821_v12 }
 0x682   :  { %8011 = vmatpush3.msra.mxu0 %v11858_v29  ;;  %8054 = vmatpush3.msra.mxu1 %v11859_v43 }
 0x683   :  { %8012 = vmatprep.subr.mxu0 %v11821_v12  ;;  %8055 = vmatprep.subr.mxu1 %v11821_v12 }
 0x684   :  { %8013 = vmatpush3.msra.mxu0 %v11860_v46  ;;  %8056 = vmatpush3.msra.mxu1 %v11861_v61 }
 0x685   :  { %8014 = vmatprep.subr.mxu0 %v11821_v12  ;;  %8057 = vmatprep.subr.mxu1 %v11821_v12 }
 0x686   :  { %8015 = vmatpush3.msra.mxu0 %v11862_v14  ;;  %8058 = vmatpush3.msra.mxu1 %v11863_v21 }
 0x687   :  { %8016 = vmatprep.subr.mxu0 %v11821_v12  ;;  %8059 = vmatprep.subr.mxu1 %v11821_v12 }
 0x688   :  { %8017 = vmatpush3.msra.mxu0 %v11864_v55  ;;  %8060 = vmatpush3.msra.mxu1 %v11865_v20 }
 0x689   :  { %8018 = vmatprep.subr.mxu0 %v11821_v12  ;;  %8061 = vmatprep.subr.mxu1 %v11821_v12 }
 0x68a   :  { %8019 = vmatpush3.msra.mxu0 %v11866_v39  ;;  %8062 = vmatpush3.msra.mxu1 %v11867_v10 }
 0x68b   :  { %8020 = vmatprep.subr.mxu0 %v11821_v12  ;;  %8063 = vmatprep.subr.mxu1 %v11821_v12 }
 0x68c   :  { %8021 = vmatpush3.msra.mxu0 %v11868_v16  ;;  %8064 = vmatpush3.msra.mxu1 %v11869_v40 }
 0x68d   :  { %8022 = vmatprep.subr.mxu0 %v11821_v12  ;;  %8065 = vmatprep.subr.mxu1 %v11821_v12 }
 0x68e   :  { %8023 = vmatpush3.msra.mxu0 %v11870_v0  ;;  %8066 = vmatpush3.msra.mxu1 %v11871_v17 }
 0x68f   :  { %8024 = vmatprep.subr.mxu0 %v11821_v12  ;;  %8068 = vmatmul.mubr.f32.vlgmr.msra.gmra.mxu1 %v4188_v18  ;;  %v11879_v18 = vld [vmem:[#allocation26_spill] sm:$0xff] }
 0x690   :  { %8105 = vmatprep.subr.mxu1 %v11821_v12  ;;  %8025 = vmatpush3.msra.mxu0 %v11872_v1 }
 0x691   :  { %8106 = vmatpush3.msra.mxu1 %v9245_v28  ;;  %8026 = vmatprep.subr.mxu0 %v11821_v12 }
 0x692   :  { %8107 = vmatprep.subr.mxu1 %v11821_v12  ;;  %8027 = vmatpush3.msra.mxu0 %v11873_v3 }
 0x693   :  { %8108 = vmatpush3.msra.mxu1 %v9252_v34  ;;  %8028 = vmatprep.subr.mxu0 %v11821_v12 }
 0x694   :  { %8109 = vmatprep.subr.mxu1 %v11821_v12  ;;  %8029 = vmatpush3.msra.mxu0 %v11874_v63 }
 0x695   :  { %8110 = vmatpush3.msra.mxu1 %v9262_v45  ;;  %8030 = vmatprep.subr.mxu0 %v11821_v12 }
 0x696   :  { %8111 = vmatprep.subr.mxu1 %v11821_v12  ;;  %8031 = vmatpush3.msra.mxu0 %v11875_v19 }
 0x697   :  { %8032 = vmatprep.mubr.msk.f32.mxu0 %vm8616_vm0, %v11821_v12  ;;  %8112 = vmatpush3.msra.mxu1 %v9274_v57 }
 0x698   :  { %8033 = vmatmul.mubr.f32.vlgmr.msra.gmra.mxu0 %v10832_v38  ;;  %8070 = vmatprep.subr.mxu0 %v11821_v12  ;;  %v11878_v38 = vld [vmem:[#allocation22_spill] sm:$0xff] }
 0x699   :  { %8113 = vmatprep.subr.mxu1 %v11821_v12  ;;  %8071 = vmatpush3.msra.mxu0 %v11876_v47 }
 0x69a   :  { %8114 = vmatpush3.msra.mxu1 %v11849_v31  ;;  %8072 = vmatprep.subr.mxu0 %v11821_v12 }
 0x69b   :  { %8115 = vmatprep.subr.mxu1 %v11821_v12  ;;  %8073 = vmatpush3.msra.mxu0 %v11877_v35 }
 0x69c   :  { %8116 = vmatpush3.msra.mxu1 %v11851_v33  ;;  %8074 = vmatprep.subr.mxu0 %v11821_v12 }
 0x69d   :  { %8117 = vmatprep.subr.mxu1 %v11821_v12  ;;  %8075 = vmatpush3.msra.mxu0 %v11878_v38 }
 0x69e   :  { %8118 = vmatpush3.msra.mxu1 %v11853_v44  ;;  %8076 = vmatprep.subr.mxu0 %v11821_v12 }
 0x69f   :  { %8119 = vmatprep.subr.mxu1 %v11821_v12  ;;  %8077 = vmatpush3.msra.mxu0 %v11879_v18 }
 0x6a0   :  { %8120 = vmatpush3.msra.mxu1 %v11855_v53  ;;  %8078 = vmatprep.subr.mxu0 %v11821_v12 }
 0x6a1   :  { %8121 = vmatprep.subr.mxu1 %v11821_v12  ;;  %8079 = vmatpush3.msra.mxu0 %v11880_v25 }
 0x6a2   :  { %8122 = vmatpush3.msra.mxu1 %v11857_v42  ;;  %8080 = vmatprep.subr.mxu0 %v11821_v12 }
 0x6a3   :  { %8123 = vmatprep.subr.mxu1 %v11821_v12  ;;  %8081 = vmatpush3.msra.mxu0 %v11881_v11 }
 0x6a4   :  { %8124 = vmatpush3.msra.mxu1 %v11859_v43  ;;  %8082 = vmatprep.subr.mxu0 %v11821_v12 }
 0x6a5   :  { %8125 = vmatprep.subr.mxu1 %v11821_v12  ;;  %8083 = vmatpush3.msra.mxu0 %v11882_v37 }
 0x6a6   :  { %8126 = vmatpush3.msra.mxu1 %v11861_v61  ;;  %8084 = vmatprep.subr.mxu0 %v11821_v12 }
 0x6a7   :  { %8127 = vmatprep.subr.mxu1 %v11821_v12  ;;  %8085 = vmatpush3.msra.mxu0 %v11883_v30 }
 0x6a8   :  { %8128 = vmatpush3.msra.mxu1 %v11863_v21  ;;  %8086 = vmatprep.subr.mxu0 %v11821_v12 }
 0x6a9   :  { %8129 = vmatprep.subr.mxu1 %v11821_v12  ;;  %8087 = vmatpush3.msra.mxu0 %v11884_v2  ;;  %v11894_v2 = vld [vmem:[#allocation73_spill] sm:$0xff] }
 0x6aa   :  { %8130 = vmatpush3.msra.mxu1 %v11865_v20  ;;  %8088 = vmatprep.subr.mxu0 %v11821_v12 }
 0x6ab   :  { %8131 = vmatprep.subr.mxu1 %v11821_v12  ;;  %8089 = vmatpush3.msra.mxu0 %v11885_v5  ;;  %v11892_v5 = vld [vmem:[#allocation71_spill] sm:$0xff] }
 0x6ac   :  { %8132 = vmatpush3.msra.mxu1 %v11867_v10  ;;  %8090 = vmatprep.subr.mxu0 %v11821_v12 }
 0x6ad   :  { %8133 = vmatprep.subr.mxu1 %v11821_v12  ;;  %8091 = vmatpush3.msra.mxu0 %v11886_v51  ;;  %v11890_v51 = vld [vmem:[#allocation66_spill] sm:$0xff] }
 0x6ae   :  { %8134 = vmatpush3.msra.mxu1 %v11869_v40  ;;  %8092 = vmatprep.subr.mxu0 %v11821_v12 }
 0x6af   :  { %8135 = vmatprep.subr.mxu1 %v11821_v12  ;;  %8093 = vmatpush3.msra.mxu0 %v11887_v13  ;;  %v11891_v13 = vld [vmem:[#allocation25_spill] sm:$0xff] }
 0x6b0   :  { %8136 = vmatpush3.msra.mxu1 %v11871_v17  ;;  %8137 = vmatprep.mubr.msk.f32.mxu1 %vm8616_vm0, %v11821_v12 }
 0x6b1   :  { %8094 = vmatprep.subr.mxu0 %v11821_v12  ;;  %8138 = vmatmul.mubr.f32.vlgmr.msra.gmra.mxu1 %v10829_v27 }
 0x6b2   :  { %8095 = vmatpush3.msra.mxu0 %v11888_v9  ;;  %8102 = vmatprep.mubr.msk.f32.mxu0 %vm8616_vm0, %v11821_v12  ;;  %v11893_v9 = vld [vmem:[#allocation29_spill] sm:$0xff] }
 0x6b3   :  { %8096 = vmatprep.subr.mxu0 %v11821_v12  ;;  %8184 = vmatprep.subr.mxu1 %v11889_v23 }
 0x6b4   :  { %8097 = vmatpush3.msra.mxu0 %v11890_v51  ;;  %8185 = vmatpush3.msra.mxu1 %v11889_v23  ;;  %v11895_v51 = vld [vmem:[#allocation33_spill] sm:$0xff]  ;;  %v11896_v23 = vld [vmem:[#allocation40_spill] sm:$0xff] }
 0x6b5   :  { %8098 = vmatprep.subr.mxu0 %v11821_v12  ;;  %8186 = vmatprep.subr.mxu1 %v11891_v13 }
 0x6b6   :  { %8099 = vmatpush3.msra.mxu0 %v11892_v5  ;;  %8187 = vmatpush3.msra.mxu1 %v11891_v13  ;;  %v11899_v13 = vld [vmem:[#allocation49_spill] sm:$0xff] }
 0x6b7   :  { %8100 = vmatprep.subr.mxu0 %v11821_v12  ;;  %8188 = vmatprep.subr.mxu1 %v11893_v9  ;;  %v11897_v12 = vld [vmem:[#allocation41_spill] sm:$0xff] }
 0x6b8   :  { %8101 = vmatpush3.msra.mxu0 %v11894_v2  ;;  %8189 = vmatpush3.msra.mxu1 %v11893_v9  ;;  %v11898_v9 = vld [vmem:[#allocation45_spill] sm:$0xff] }
 0x6b9   :  { %8103 = vmatmul.mubr.f32.vlgmr.msra.gmra.mxu0 %v10829_v27  ;;  %8190 = vmatprep.subr.mxu1 %v11895_v51  ;;  %v11901_v27 = vld [vmem:[#allocation60_spill] sm:$0xff] }
 0x6ba   :  { %8191 = vmatpush3.msra.mxu1 %v11895_v51  ;;  %8140 = vmatprep.subr.mxu0 %v9245_v28  ;;  %v11900_v51 = vld [vmem:[#allocation53_spill] sm:$0xff] }
 0x6bb   :  { %8192 = vmatprep.subr.mxu1 %v11896_v23  ;;  %8141 = vmatpush3.msra.mxu0 %v9245_v28 }
 0x6bc   :  { %8193 = vmatpush3.msra.mxu1 %v11896_v23  ;;  %8142 = vmatprep.subr.mxu0 %v9252_v34  ;;  %v11902_v23 = vld [vmem:[#allocation61_spill] sm:$0xff] }
 0x6bd   :  { %8194 = vmatprep.subr.mxu1 %v11897_v12  ;;  %8143 = vmatpush3.msra.mxu0 %v9252_v34 }
 0x6be   :  { %8195 = vmatpush3.msra.mxu1 %v11897_v12  ;;  %8144 = vmatprep.subr.mxu0 %v9262_v45  ;;  %v11903_v12 = vld [vmem:[#allocation65_spill] sm:$0xff] }
 0x6bf   :  { %8196 = vmatprep.subr.mxu1 %v11898_v9  ;;  %8145 = vmatpush3.msra.mxu0 %v9262_v45 }
 0x6c0   :  { %8197 = vmatpush3.msra.mxu1 %v11898_v9  ;;  %8146 = vmatprep.subr.mxu0 %v9274_v57  ;;  %v11904_v9 = vld [vmem:[#allocation69_spill] sm:$0xff] }
 0x6c1   :  { %8198 = vmatprep.subr.mxu1 %v11899_v13  ;;  %8147 = vmatpush3.msra.mxu0 %v9274_v57 }
 0x6c2   :  { %8199 = vmatpush3.msra.mxu1 %v11899_v13  ;;  %8148 = vmatprep.subr.mxu0 %v11849_v31  ;;  %v11905_v13 = vld [vmem:[#allocation72_spill] sm:$0xff] }
 0x6c3   :  { %8200 = vmatprep.subr.mxu1 %v11900_v51  ;;  %8149 = vmatpush3.msra.mxu0 %v11849_v31 }
 0x6c4   :  { %8201 = vmatpush3.msra.mxu1 %v11900_v51  ;;  %8150 = vmatprep.subr.mxu0 %v11851_v33  ;;  %v11906_v51 = vld [vmem:[#allocation74_spill] sm:$0xff] }
 0x6c5   :  { %8202 = vmatprep.subr.mxu1 %v11901_v27  ;;  %8151 = vmatpush3.msra.mxu0 %v11851_v33 }
 0x6c6   :  { %8203 = vmatpush3.msra.mxu1 %v11901_v27  ;;  %8152 = vmatprep.subr.mxu0 %v11853_v44  ;;  %v11907_v27 = vld [vmem:[#allocation75_spill] sm:$0xff] }
 0x6c7   :  { %8204 = vmatprep.subr.mxu1 %v11902_v23  ;;  %8153 = vmatpush3.msra.mxu0 %v11853_v44 }
 0x6c8   :  { %8205 = vmatpush3.msra.mxu1 %v11902_v23  ;;  %8154 = vmatprep.subr.mxu0 %v11855_v53 }
 0x6c9   :  { %8206 = vmatprep.subr.mxu1 %v11903_v12  ;;  %8155 = vmatpush3.msra.mxu0 %v11855_v53 }
 0x6ca   :  { %8207 = vmatpush3.msra.mxu1 %v11903_v12  ;;  %8156 = vmatprep.subr.mxu0 %v11857_v42 }
 0x6cb   :  { %8208 = vmatprep.subr.mxu1 %v11904_v9  ;;  %8157 = vmatpush3.msra.mxu0 %v11857_v42 }
 0x6cc   :  { %8209 = vmatpush3.msra.mxu1 %v11904_v9  ;;  %8158 = vmatprep.subr.mxu0 %v11859_v43 }
 0x6cd   :  { %8210 = vmatprep.subr.mxu1 %v11905_v13  ;;  %8159 = vmatpush3.msra.mxu0 %v11859_v43 }
 0x6ce   :  { %8211 = vmatpush3.msra.mxu1 %v11905_v13  ;;  %8160 = vmatprep.subr.mxu0 %v11861_v61 }
 0x6cf   :  { %8212 = vmatprep.subr.mxu1 %v11906_v51  ;;  %8161 = vmatpush3.msra.mxu0 %v11861_v61 }
 0x6d0   :  { %8213 = vmatpush3.msra.mxu1 %v11906_v51  ;;  %8162 = vmatprep.subr.mxu0 %v11863_v21 }
 0x6d1   :  { %8214 = vmatprep.subr.mxu1 %v11907_v27  ;;  %8163 = vmatpush3.msra.mxu0 %v11863_v21 }
 0x6d2   :  { %8215 = vmatpush3.msra.mxu1 %v11907_v27  ;;  %8164 = vmatprep.subr.mxu0 %v11865_v20 }
 0x6d3   :  { %8272 = vmatprep.subr.mxu1 %v9245_v28  ;;  %8165 = vmatpush3.msra.mxu0 %v11865_v20 }
 0x6d4   :  { %8166 = vmatprep.subr.mxu0 %v11867_v10 }
 0x6d5   :  { %8167 = vmatpush3.msra.mxu0 %v11867_v10 }
 0x6d6   :  { %8168 = vmatprep.subr.mxu0 %v11869_v40 }
 0x6d7   :  { %8169 = vmatpush3.msra.mxu0 %v11869_v40 }
 0x6d8   :  { %8170 = vmatprep.subr.mxu0 %v11871_v17 }
 0x6d9   :  { %8171 = vmatpush3.msra.mxu0 %v11871_v17 }
 0x6da   :  { %8228 = vmatprep.subr.mxu0 %v11848_v7 }
 0x72f   :  { %v4343_v23 = vpop.f32.mrf.mxu1 }
 0x731   :  { %v7999_v12 = vpop.f32.mrf.mxu1 }
 0x737   :  { %v4192_v9 = vpop.f32.mrf.mxu0 }
 0x738   :  { %v4344_v37 = vadd.f32 %v4343_v23, %v4192_v9  ;;  %v11908_v23 = vld [vmem:[#allocation84_spill] sm:$0xff] }
 0x739   :  { %v7964_v13 = vpop.f32.mrf.mxu0 }
 0x74f   :  { %v4536_v51 = vpop.f32.mrf.mxu1 }
 0x751   :  { %v8069_v27 = vpop.f32.mrf.mxu1 }
 0x758   :  { %v4447_v2 = vpop.f32.mrf.mxu0 }
 0x759   :  { %v4448_v25 = vadd.f32 %v4447_v2, %v4344_v37 }
 0x75a   :  { %v8034_v5 = vpop.f32.mrf.mxu0 }
 0x75b   :  { %v4537_v18 = vadd.f32 %v4536_v51, %v4448_v25 }
 0x771   :  { %v4742_v30 = vpop.f32.mrf.mxu1 }
 0x773   :  { %v8139_v11 = vpop.f32.mrf.mxu1 }
 0x779   :  { %v4655_v38 = vpop.f32.mrf.mxu0 }
 0x77a   :  { %v4656_v35 = vadd.f32 %v4655_v38, %v4537_v18 }
 0x77b   :  { %v8104_v47 = vpop.f32.mrf.mxu0 }
 0x77c   :  { %v4743_v19 = vadd.f32 %v4742_v30, %v4656_v35 }
 0x77e   :  { %v4746_v63 = vmax.f32 %v4743_v19, 1e-24 }
 0x780   :  { %8467 = vrsqrt.f32 %v4746_v63 }
 0x78d   :  { %v8468_v3 = vpop.eup %8467 }
 0x78e   :  { %v4764_v12 = vmul.f32 %v8468_v3, %v10786_v15  ;;  %v4749_v1 = vrot.slane %v8468_v3, 1  ;;  %v4750_v13 = vrot.slane %v8468_v3, 2  ;;  %v4751_v17 = vrot.slane %v8468_v3, 3 }
 0x78f   :  { %v4752_v27 = vrot.slane %v8468_v3, 4  ;;  %v4753_v0 = vrot.slane %v8468_v3, 5  ;;  %v4754_v5 = vrot.slane %v8468_v3, 6  ;;  %v4755_v40 = vrot.slane %v8468_v3, 7 }
 0x790   :  { %v4775_v11 = vrot.slane %v4764_v12, %v11908_v23  ;;  %v4765_v2 = vmul.f32 %v4749_v1, %v10782_v32  ;;  %v4766_v37 = vmul.f32 %v4750_v13, %v10798_v48  ;;  %v4767_v30 = vmul.f32 %v4751_v17, %v10789_v62 }
 0x791   :  { %v4768_v63 = vmul.f32 %v4752_v27, %v10801_v49  ;;  %v4769_v19 = vmul.f32 %v4753_v0, %v10809_v60  ;;  %v4770_v15 = vmul.f32 %v4754_v5, %v10812_v50  ;;  %v4771_v49 = vmul.f32 %v4755_v40, %v10822_v24 }
 0x792   :  { %v4804_v47 = vmul.f32 %v4775_v11, %v10055_v59  ;;  %v4779_v35 = vrot.slane %v4765_v2, %v11908_v23  ;;  %v4783_v3 = vrot.slane %v4766_v37, %v11908_v23  ;;  %v4787_v38 = vrot.slane %v4767_v30, %v11908_v23 }
 0x793   :  { %v4791_v32 = vrot.slane %v4768_v63, %v11908_v23  ;;  %v4795_v48 = vrot.slane %v4769_v19, %v11908_v23  ;;  %v4799_v62 = vrot.slane %v4770_v15, %v11908_v23  ;;  %v4803_v13 = vrot.slane %v4771_v49, %v11908_v23 }
 0x794   :  { %v11056_v17 = vand.u32 4294901760, %v4804_v47  ;;  %v4805_v60 = vmul.f32 %v4779_v35, %v10058_v4  ;;  %v4806_v50 = vmul.f32 %v4783_v3, %v10064_v54  ;;  %v4807_v0 = vmul.f32 %v4787_v38, %v10071_v56 }
 0x795   :  { %v4808_v1 = vmul.f32 %v4791_v32, %v10078_v22  ;;  %v4809_v18 = vmul.f32 %v4795_v48, %v10083_v8  ;;  %v4810_v12 = vmul.f32 %v4799_v62, %v10088_v52 }
 0x796   :  { %8216 = vmatprep.mubr.f32.mxu1 %v11056_v17  ;;  %v11064_v25 = vand.u32 4294901760, %v4805_v60  ;;  %v11066_v9 = vand.u32 4294901760, %v4806_v50  ;;  %v11068_v51 = vand.u32 4294901760, %v4807_v0  ;;  %v11071_v24 = vsub.f32 %v4804_v47, %v11056_v17 }
 0x797   :  { %v11073_v40 = vand.u32 4294901760, %v4808_v1  ;;  %v11090_v37 = vand.u32 4294901760, %v4809_v18  ;;  %v11100_v15 = vand.u32 4294901760, %v4810_v12  ;;  %v4811_v47 = vmul.f32 %v4803_v13, %v10093_v36 }
 0x798   :  { %v11078_v27 = vsub.f32 %v4805_v60, %v11064_v25  ;;  %8217 = vmatmul.mubr.f32.vlgmr.msra.gmra.mxu1 %v11064_v25  ;;  %v11082_v5 = vsub.f32 %v4807_v0, %v11068_v51  ;;  %v4895_v11 = vand.u32 4294901760, %v11071_v24  ;;  %v11086_v2 = vsub.f32 %v4806_v50, %v11066_v9 }
 0x799   :  { %8273 = vmatpush3.msra.mxu1 %v9245_v28  ;;  %8219 = vmatprep.mubr.f32.mxu1 %v11066_v9  ;;  %v11097_v19 = vsub.f32 %v4808_v1, %v11073_v40  ;;  %v11116_v62 = vsub.f32 %v4809_v18, %v11090_v37  ;;  %v11120_v50 = vand.u32 4294901760, %v4811_v47  ;;  %v11127_v1 = vsub.f32 %v4810_v12, %v11100_v15 }
 0x79a   :  { %8274 = vmatprep.subr.mxu1 %v9252_v34  ;;  %v4896_v23 = vsub.f32 %v11071_v24, %v4895_v11  ;;  %v4905_v30 = vand.u32 4294901760, %v11078_v27  ;;  %v4915_v63 = vand.u32 4294901760, %v11086_v2  ;;  %v4925_v32 = vand.u32 4294901760, %v11082_v5 }
 0x79b   :  { %8275 = vmatpush3.msra.mxu1 %v9252_v34  ;;  %v4935_v60 = vand.u32 4294901760, %v11097_v19  ;;  %v4945_v13 = vand.u32 4294901760, %v11116_v62  ;;  %v11139_v12 = vsub.f32 %v4811_v47, %v11120_v50 }
 0x79c   :  { %8276 = vmatprep.subr.mxu1 %v9262_v45  ;;  %8220 = vmatmul.mubr.f32.gmra.mxu1 %v11068_v51  ;;  %v4897_v35 = vand.u32 4294901760, %v4896_v23  ;;  %v4906_v3 = vsub.f32 %v11078_v27, %v4905_v30  ;;  %v4916_v38 = vsub.f32 %v11086_v2, %v4915_v63  ;;  %v4926_v0 = vsub.f32 %v11082_v5, %v4925_v32 }
 0x79d   :  { %8277 = vmatpush3.msra.mxu1 %v9262_v45  ;;  %8222 = vmatprep.mubr.f32.mxu1 %v11073_v40  ;;  %v4936_v18 = vsub.f32 %v11097_v19, %v4935_v60  ;;  %v4955_v23 = vand.u32 4294901760, %v11127_v1  ;;  %v4946_v47 = vsub.f32 %v11116_v62, %v4945_v13 }
 0x79e   :  { %8278 = vmatprep.subr.mxu1 %v9274_v57  ;;  %8172 = vmatprep.mubr.f32.mxu0 %v4897_v35  ;;  %v4907_v48 = vand.u32 4294901760, %v4906_v3  ;;  %v4917_v49 = vand.u32 4294901760, %v4916_v38 }
 0x79f   :  { %8279 = vmatpush3.msra.mxu1 %v9274_v57  ;;  %v4937_v35 = vand.u32 4294901760, %v4936_v18  ;;  %v4956_v3 = vsub.f32 %v11127_v1, %v4955_v23  ;;  %v4947_v38 = vand.u32 4294901760, %v4946_v47 }
 0x7a0   :  { %8280 = vmatprep.subr.mxu1 %v11849_v31  ;;  %8173 = vmatmul.mubr.f32.vlgmr.msra.gmra.mxu0 %v4907_v48 }
 0x7a1   :  { %8223 = vmatmul.mubr.f32.gmra.mxu1 %v11090_v37  ;;  %8229 = vmatpush3.msra.mxu0 %v11848_v7  ;;  %v4927_v7 = vand.u32 4294901760, %v4926_v0  ;;  %v4957_v48 = vand.u32 4294901760, %v4956_v3 }
 0x7a2   :  { %8281 = vmatpush3.msra.mxu1 %v11849_v31  ;;  %8175 = vmatprep.mubr.f32.mxu0 %v4917_v49 }
 0x7a3   :  { %8225 = vmatprep.mubr.f32.mxu1 %v11100_v15  ;;  %8230 = vmatprep.subr.mxu0 %v11850_v6 }
 0x7a4   :  { %8282 = vmatprep.subr.mxu1 %v11851_v33  ;;  %8231 = vmatpush3.msra.mxu0 %v11850_v6  ;;  %v4965_v6 = vand.u32 4294901760, %v11139_v12 }
 0x7a5   :  { %8283 = vmatpush3.msra.mxu1 %v11851_v33  ;;  %8232 = vmatprep.subr.mxu0 %v11852_v58 }
 0x7a6   :  { %8284 = vmatprep.subr.mxu1 %v11853_v44  ;;  %8176 = vmatmul.mubr.f32.gmra.mxu0 %v4927_v7 }
 0x7a7   :  { %8226 = vmatmul.mubr.f32.gmra.mxu1 %v11120_v50  ;;  %8233 = vmatpush3.msra.mxu0 %v11852_v58  ;;  %v4966_v58 = vsub.f32 %v11139_v12, %v4965_v6 }
 0x7a8   :  { %8285 = vmatpush3.msra.mxu1 %v11853_v44  ;;  %8178 = vmatprep.mubr.f32.mxu0 %v4937_v35 }
 0x7a9   :  { %8234 = vmatprep.subr.mxu0 %v11854_v26  ;;  %8286 = vmatprep.subr.mxu1 %v11855_v53 }
 0x7aa   :  { %8304 = vmatprep.mubr.f32.mxu1 %v4895_v11  ;;  %8235 = vmatpush3.msra.mxu0 %v11854_v26  ;;  %v4967_v26 = vand.u32 4294901760, %v4966_v58 }
 0x7ab   :  { %8287 = vmatpush3.msra.mxu1 %v11855_v53  ;;  %8236 = vmatprep.subr.mxu0 %v11856_v41 }
 0x7ac   :  { %8288 = vmatprep.subr.mxu1 %v11857_v42  ;;  %8179 = vmatmul.mubr.f32.gmra.mxu0 %v4947_v38 }
 0x7ad   :  { %8237 = vmatpush3.msra.mxu0 %v11856_v41  ;;  %8289 = vmatpush3.msra.mxu1 %v11857_v42  ;;  %v11909_v41 = vld [vmem:[#allocation64_spill] sm:$0xff] }
 0x7ae   :  { %8181 = vmatprep.mubr.f32.mxu0 %v4957_v48  ;;  %8238 = vmatprep.subr.mxu0 %v11858_v29 }
 0x7af   :  { %8290 = vmatprep.subr.mxu1 %v11859_v43  ;;  %8239 = vmatpush3.msra.mxu0 %v11858_v29  ;;  %v11910_v29 = vld [vmem:[#allocation55_spill] sm:$0xff] }
 0x7b0   :  { %8291 = vmatpush3.msra.mxu1 %v11859_v43  ;;  %8240 = vmatprep.subr.mxu0 %v11860_v46 }
 0x7b1   :  { %8292 = vmatprep.subr.mxu1 %v11861_v61  ;;  %8182 = vmatmul.mubr.f32.gmra.mxu0 %v4967_v26 }
 0x7b2   :  { %8241 = vmatpush3.msra.mxu0 %v11860_v46  ;;  %8293 = vmatpush3.msra.mxu1 %v11861_v61  ;;  %v11911_v46 = vld [vmem:[#allocation67_spill] sm:$0xff] }
 0x7b3   :  { %8242 = vmatprep.subr.mxu0 %v11862_v14  ;;  %8260 = vmatprep.mubr.f32.mxu0 %v11071_v24  ;;  %v11931_v24 = vld [vmem:[#allocation73_spill] sm:$0xff] }
 0x7b4   :  { %8294 = vmatprep.subr.mxu1 %v11863_v21  ;;  %8243 = vmatpush3.msra.mxu0 %v11862_v14  ;;  %v11912_v14 = vld [vmem:[#allocation58_spill] sm:$0xff] }
 0x7b5   :  { %8295 = vmatpush3.msra.mxu1 %v11863_v21  ;;  %8244 = vmatprep.subr.mxu0 %v11864_v55 }
 0x7b6   :  { %8296 = vmatprep.subr.mxu1 %v11865_v20  ;;  %8245 = vmatpush3.msra.mxu0 %v11864_v55  ;;  %v11913_v55 = vld [vmem:[#allocation63_spill] sm:$0xff] }
 0x7b7   :  { %8297 = vmatpush3.msra.mxu1 %v11865_v20  ;;  %8246 = vmatprep.subr.mxu0 %v11866_v39 }
 0x7b8   :  { %8298 = vmatprep.subr.mxu1 %v11867_v10  ;;  %8247 = vmatpush3.msra.mxu0 %v11866_v39  ;;  %v11914_v39 = vld [vmem:[#allocation68_spill] sm:$0xff] }
 0x7b9   :  { %8299 = vmatpush3.msra.mxu1 %v11867_v10  ;;  %8248 = vmatprep.subr.mxu0 %v11868_v16 }
 0x7ba   :  { %8300 = vmatprep.subr.mxu1 %v11909_v41  ;;  %8249 = vmatpush3.msra.mxu0 %v11868_v16  ;;  %v11925_v16 = vld [vmem:[#allocation52_spill] sm:$0xff] }
 0x7bb   :  { %8301 = vmatpush3.msra.mxu1 %v11909_v41  ;;  %8250 = vmatprep.subr.mxu0 %v11910_v29 }
 0x7bc   :  { %8302 = vmatprep.subr.mxu1 %v11911_v46  ;;  %8251 = vmatpush3.msra.mxu0 %v11910_v29 }
 0x7bd   :  { %8303 = vmatpush3.msra.mxu1 %v11911_v46  ;;  %8252 = vmatprep.subr.mxu0 %v11912_v14 }
 0x7be   :  { %8305 = vmatmul.mubr.f32.vlgmr.msra.gmra.mxu1 %v4905_v30  ;;  %8360 = vmatprep.subr.mxu1 %v9245_v28 }
 0x7bf   :  { %8253 = vmatpush3.msra.mxu0 %v11912_v14  ;;  %8307 = vmatprep.mubr.f32.mxu1 %v4915_v63 }
 0x7c0   :  { %8361 = vmatpush3.msra.mxu1 %v9245_v28  ;;  %8254 = vmatprep.subr.mxu0 %v11913_v55  ;;  %v11915_v28 = vld [vmem:[#allocation70_spill] sm:$0xff] }
 0x7c1   :  { %8362 = vmatprep.subr.mxu1 %v9252_v34  ;;  %8255 = vmatpush3.msra.mxu0 %v11913_v55 }
 0x7c2   :  { %8363 = vmatpush3.msra.mxu1 %v9252_v34  ;;  %8256 = vmatprep.subr.mxu0 %v11914_v39  ;;  %v11916_v34 = vld [vmem:[#allocation17_spill] sm:$0xff] }
 0x7c3   :  { %8308 = vmatmul.mubr.f32.gmra.mxu1 %v4925_v32  ;;  %8364 = vmatprep.subr.mxu1 %v9262_v45 }
 0x7c4   :  { %8257 = vmatpush3.msra.mxu0 %v11914_v39  ;;  %8310 = vmatprep.mubr.f32.mxu1 %v4935_v60 }
 0x7c5   :  { %8365 = vmatpush3.msra.mxu1 %v9262_v45  ;;  %8258 = vmatprep.subr.mxu0 %v11915_v28  ;;  %v11917_v45 = vld [vmem:[#allocation19_spill] sm:$0xff] }
 0x7c6   :  { %8366 = vmatprep.subr.mxu1 %v9274_v57  ;;  %8259 = vmatpush3.msra.mxu0 %v11915_v28 }
 0x7c7   :  { %8367 = vmatpush3.msra.mxu1 %v9274_v57  ;;  %8261 = vmatmul.mubr.f32.vlgmr.msra.gmra.mxu0 %v11078_v27  ;;  %v11918_v57 = vld [vmem:[#allocation22_spill] sm:$0xff] }
 0x7c8   :  { %8311 = vmatmul.mubr.f32.gmra.mxu1 %v4945_v13  ;;  %8316 = vmatprep.subr.mxu0 %v11916_v34 }
 0x7c9   :  { %8368 = vmatprep.subr.mxu1 %v11849_v31  ;;  %8263 = vmatprep.mubr.f32.mxu0 %v11086_v2 }
 0x7ca   :  { %8313 = vmatprep.mubr.f32.mxu1 %v4955_v23  ;;  %8317 = vmatpush3.msra.mxu0 %v11916_v34 }
 0x7cb   :  { %8369 = vmatpush3.msra.mxu1 %v11849_v31  ;;  %8318 = vmatprep.subr.mxu0 %v11917_v45  ;;  %v11919_v31 = vld [vmem:[#allocation26_spill] sm:$0xff] }
 0x7cc   :  { %8370 = vmatprep.subr.mxu1 %v11851_v33  ;;  %8319 = vmatpush3.msra.mxu0 %v11917_v45 }
 0x7cd   :  { %8371 = vmatpush3.msra.mxu1 %v11851_v33  ;;  %8264 = vmatmul.mubr.f32.gmra.mxu0 %v11082_v5  ;;  %v11920_v33 = vld [vmem:[#allocation32_spill] sm:$0xff] }
 0x7ce   :  { %8314 = vmatmul.mubr.f32.gmra.mxu1 %v4965_v6  ;;  %8320 = vmatprep.subr.mxu0 %v11918_v57 }
 0x7cf   :  { %8372 = vmatprep.subr.mxu1 %v11853_v44  ;;  %8266 = vmatprep.mubr.f32.mxu0 %v11097_v19 }
 0x7d0   :  { %8321 = vmatpush3.msra.mxu0 %v11918_v57  ;;  %8373 = vmatpush3.msra.mxu1 %v11853_v44  ;;  %v11921_v44 = vld [vmem:[#allocation34_spill] sm:$0xff] }
 0x7d1   :  { %8392 = vmatprep.mubr.f32.mxu1 %v11056_v17  ;;  %8322 = vmatprep.subr.mxu0 %v11919_v31 }
 0x7d2   :  { %8374 = vmatprep.subr.mxu1 %v11855_v53  ;;  %8323 = vmatpush3.msra.mxu0 %v11919_v31 }
 0x7d3   :  { %8375 = vmatpush3.msra.mxu1 %v11855_v53  ;;  %8267 = vmatmul.mubr.f32.gmra.mxu0 %v11116_v62  ;;  %v11922_v53 = vld [vmem:[#allocation37_spill] sm:$0xff] }
 0x7d4   :  { %8324 = vmatprep.subr.mxu0 %v11920_v33  ;;  %8376 = vmatprep.subr.mxu1 %v11857_v42 }
 0x7d5   :  { %8269 = vmatprep.mubr.f32.mxu0 %v11127_v1  ;;  %8325 = vmatpush3.msra.mxu0 %v11920_v33 }
 0x7d6   :  { %8377 = vmatpush3.msra.mxu1 %v11857_v42  ;;  %8326 = vmatprep.subr.mxu0 %v11921_v44  ;;  %v11923_v42 = vld [vmem:[#allocation42_spill] sm:$0xff] }
 0x7d7   :  { %8378 = vmatprep.subr.mxu1 %v11859_v43  ;;  %8327 = vmatpush3.msra.mxu0 %v11921_v44 }
 0x7d8   :  { %8379 = vmatpush3.msra.mxu1 %v11859_v43  ;;  %8270 = vmatmul.mubr.f32.gmra.mxu0 %v11139_v12  ;;  %v11924_v43 = vld [vmem:[#allocation46_spill] sm:$0xff] }
 0x7d9   :  { %8328 = vmatprep.subr.mxu0 %v11922_v53  ;;  %8380 = vmatprep.subr.mxu1 %v11861_v61 }
 0x7da   :  { %8329 = vmatpush3.msra.mxu0 %v11922_v53  ;;  %8348 = vmatprep.mubr.f32.mxu0 %v11056_v17  ;;  %v11930_v17 = vld [vmem:[#allocation71_spill] sm:$0xff] }
 0x7db   :  { %8381 = vmatpush3.msra.mxu1 %v11861_v61  ;;  %8330 = vmatprep.subr.mxu0 %v11923_v42  ;;  %v11926_v61 = vld [vmem:[#allocation54_spill] sm:$0xff] }
 0x7dc   :  { %8382 = vmatprep.subr.mxu1 %v11863_v21  ;;  %8331 = vmatpush3.msra.mxu0 %v11923_v42 }
 0x7dd   :  { %8383 = vmatpush3.msra.mxu1 %v11863_v21  ;;  %8332 = vmatprep.subr.mxu0 %v11924_v43  ;;  %v11927_v21 = vld [vmem:[#allocation57_spill] sm:$0xff] }
 0x7de   :  { %8384 = vmatprep.subr.mxu1 %v11865_v20  ;;  %8333 = vmatpush3.msra.mxu0 %v11924_v43 }
 0x7df   :  { %8385 = vmatpush3.msra.mxu1 %v11865_v20  ;;  %8334 = vmatprep.subr.mxu0 %v11925_v16  ;;  %v11928_v20 = vld [vmem:[#allocation62_spill] sm:$0xff] }
 0x7e0   :  { %8386 = vmatprep.subr.mxu1 %v11867_v10  ;;  %8335 = vmatpush3.msra.mxu0 %v11925_v16 }
 0x7e1   :  { %8387 = vmatpush3.msra.mxu1 %v11867_v10  ;;  %8336 = vmatprep.subr.mxu0 %v11926_v61  ;;  %v11929_v10 = vld [vmem:[#allocation66_spill] sm:$0xff] }
 0x7e2   :  { %8388 = vmatprep.subr.mxu1 %v11909_v41  ;;  %8337 = vmatpush3.msra.mxu0 %v11926_v61 }
 0x7e3   :  { %8389 = vmatpush3.msra.mxu1 %v11909_v41  ;;  %8338 = vmatprep.subr.mxu0 %v11927_v21 }
 0x7e4   :  { %8390 = vmatprep.subr.mxu1 %v11911_v46  ;;  %8339 = vmatpush3.msra.mxu0 %v11927_v21 }
 0x7e5   :  { %8391 = vmatpush3.msra.mxu1 %v11911_v46  ;;  %8340 = vmatprep.subr.mxu0 %v11928_v20 }
 0x7e6   :  { %8393 = vmatmul.mubr.f32.vlgmr.msra.gmra.mxu1 %v11064_v25  ;;  %8341 = vmatpush3.msra.mxu0 %v11928_v20 }
 0x7e7   :  { %8395 = vmatprep.mubr.f32.mxu1 %v11066_v9  ;;  %8342 = vmatprep.subr.mxu0 %v11929_v10 }
 0x7e8   :  { %8343 = vmatpush3.msra.mxu0 %v11929_v10 }
 0x7e9   :  { %8344 = vmatprep.subr.mxu0 %v11930_v17 }
 0x7ea   :  { %8396 = vmatmul.mubr.f32.gmra.mxu1 %v11068_v51  ;;  %8345 = vmatpush3.msra.mxu0 %v11930_v17 }
 0x7eb   :  { %8398 = vmatprep.mubr.f32.mxu1 %v11073_v40  ;;  %8346 = vmatprep.subr.mxu0 %v11931_v24 }
 0x7ec   :  { %8347 = vmatpush3.msra.mxu0 %v11931_v24 }
 0x7ed   :  { %8349 = vmatmul.mubr.f32.vlgmr.msra.gmra.mxu0 %v11064_v25 }
 0x7ee   :  { %8399 = vmatmul.mubr.f32.gmra.mxu1 %v11090_v37  ;;  %8351 = vmatprep.mubr.f32.mxu0 %v11066_v9 }
 0x7ef   :  { %8401 = vmatprep.mubr.f32.mxu1 %v11100_v15 }
 0x7f1   :  { %8352 = vmatmul.mubr.f32.gmra.mxu0 %v11068_v51 }
 0x7f2   :  { %8402 = vmatmul.mubr.f32.gmra.mxu1 %v11120_v50  ;;  %8354 = vmatprep.mubr.f32.mxu0 %v11073_v40 }
 0x7f5   :  { %8355 = vmatmul.mubr.f32.gmra.mxu0 %v11090_v37 }
 0x7f6   :  { %8357 = vmatprep.mubr.f32.mxu0 %v11100_v15 }
 0x7f9   :  { %8358 = vmatmul.mubr.f32.gmra.mxu0 %v11120_v50 }
 0x858   :  { %v8218_v27 = vpop.f32.mrf.mxu1 }
 0x85a   :  { %v5120_v25 = vpop.f32.mrf.mxu1 }
 0x85c   :  { %v8221_v11 = vpop.f32.mrf.mxu1 }
 0x85e   :  { %v5132_v9 = vpop.f32.mrf.mxu1 }
 0x860   :  { %v8174_v5 = vpop.f32.mrf.mxu0 }
 0x861   :  { %v8224_v63 = vpop.f32.mrf.mxu1  ;;  %v5127_v58 = vadd.f32 %v8218_v27, %v8174_v5 }
 0x862   :  { %v4899_v2 = vpop.f32.mrf.mxu0 }
 0x863   :  { %v5144_v51 = vpop.f32.mrf.mxu1  ;;  %v5121_v41 = vadd.f32 %v5120_v25, %v4899_v2 }
 0x866   :  { %v8177_v30 = vpop.f32.mrf.mxu0 }
 0x867   :  { %v8227_v62 = vpop.f32.mrf.mxu1  ;;  %v5139_v14 = vadd.f32 %v8221_v11, %v8177_v30 }
 0x868   :  { %v4919_v19 = vpop.f32.mrf.mxu0 }
 0x869   :  { %v5156_v40 = vpop.f32.mrf.mxu1  ;;  %v5133_v34 = vadd.f32 %v5132_v9, %v4919_v19 }
 0x86c   :  { %v8180_v32 = vpop.f32.mrf.mxu0 }
 0x86d   :  { %v5151_v31 = vadd.f32 %v8224_v63, %v8180_v32 }
 0x86e   :  { %v4939_v49 = vpop.f32.mrf.mxu0 }
 0x86f   :  { %v5145_v16 = vadd.f32 %v5144_v51, %v4939_v49 }
 0x871   :  { %v8183_v37 = vpop.f32.mrf.mxu0 }
 0x872   :  { %v5163_v24 = vadd.f32 %v8227_v62, %v8183_v37 }
 0x873   :  { %v4959_v15 = vpop.f32.mrf.mxu0 }
 0x874   :  { %v5157_v63 = vadd.f32 %v5156_v40, %v4959_v15 }
 0x87e   :  { %v8306_v60 = vpop.f32.mrf.mxu1 }
 0x880   :  { %v5404_v0 = vpop.f32.mrf.mxu1 }
 0x883   :  { %v8309_v50 = vpop.f32.mrf.mxu1 }
 0x885   :  { %v5420_v13 = vpop.f32.mrf.mxu1 }
 0x887   :  { %v8262_v1 = vpop.f32.mrf.mxu0 }
 0x888   :  { %v8312_v7 = vpop.f32.mrf.mxu1  ;;  %v5274_v29 = vadd.f32 %v8262_v1, %v5127_v58 }
 0x889   :  { %v5266_v18 = vpop.f32.mrf.mxu0 }
 0x88a   :  { %v5436_v35 = vpop.f32.mrf.mxu1  ;;  %v5267_v55 = vadd.f32 %v5266_v18, %v5121_v41  ;;  %v5413_v57 = vadd.f32 %v8306_v60, %v5274_v29 }
 0x88c   :  { %v5405_v43 = vadd.f32 %v5404_v0, %v5267_v55 }
 0x88d   :  { %v8265_v12 = vpop.f32.mrf.mxu0 }
 0x88e   :  { %v8315_v6 = vpop.f32.mrf.mxu1  ;;  %v5288_v45 = vadd.f32 %v8265_v12, %v5139_v14 }
 0x88f   :  { %v5280_v23 = vpop.f32.mrf.mxu0 }
 0x890   :  { %v5452_v38 = vpop.f32.mrf.mxu1  ;;  %v5281_v53 = vadd.f32 %v5280_v23, %v5133_v34  ;;  %v5429_v17 = vadd.f32 %v8309_v50, %v5288_v45 }
 0x892   :  { %v5421_v30 = vadd.f32 %v5420_v13, %v5281_v53 }
 0x893   :  { %v8268_v47 = vpop.f32.mrf.mxu0 }
 0x894   :  { %v5302_v61 = vadd.f32 %v8268_v47, %v5151_v31 }
 0x895   :  { %v5294_v3 = vpop.f32.mrf.mxu0 }
 0x896   :  { %v5295_v27 = vadd.f32 %v5294_v3, %v5145_v16  ;;  %v5445_v60 = vadd.f32 %v8312_v7, %v5302_v61 }
 0x898   :  { %v8271_v26 = vpop.f32.mrf.mxu0  ;;  %v5437_v12 = vadd.f32 %v5436_v35, %v5295_v27 }
 0x899   :  { %v5316_v19 = vadd.f32 %v8271_v26, %v5163_v24 }
 0x89a   :  { %v5308_v28 = vpop.f32.mrf.mxu0 }
 0x89b   :  { %v5309_v50 = vadd.f32 %v5308_v28, %v5157_v63  ;;  %v5461_v3 = vadd.f32 %v8315_v6, %v5316_v19 }
 0x89d   :  { %v5453_v41 = vadd.f32 %v5452_v38, %v5309_v50 }
 0x8a6   :  { %v8394_v48 = vpop.f32.mrf.mxu1 }
 0x8a8   :  { %v5708_v46 = vpop.f32.mrf.mxu1 }
 0x8aa   :  { %v8397_v39 = vpop.f32.mrf.mxu1 }
 0x8ac   :  { %v5720_v33 = vpop.f32.mrf.mxu1 }
 0x8ad   :  { %v8350_v44 = vpop.f32.mrf.mxu0 }
 0x8ae   :  { %v5586_v42 = vadd.f32 %v8350_v44, %v5413_v57  ;;  %v8400_v25 = vpop.f32.mrf.mxu1 }
 0x8af   :  { %v5579_v21 = vpop.f32.mrf.mxu0 }
 0x8b0   :  { %v5715_v20 = vadd.f32 %v8394_v48, %v5586_v42  ;;  %v5580_v10 = vadd.f32 %v5579_v21, %v5405_v43  ;;  %v5732_v1 = vpop.f32.mrf.mxu1 }
 0x8b1   :  { %v8353_v5 = vpop.f32.mrf.mxu0 }
 0x8b2   :  { %v5756_v11 = vmul.f32 1.442695, %v5715_v20  ;;  %v5709_v2 = vadd.f32 %v5708_v46, %v5580_v10  ;;  %v5598_v9 = vadd.f32 %v8353_v5, %v5429_v17  ;;  %v8403_v58 = vpop.f32.mrf.mxu1 }
 0x8b3   :  { %v5591_v32 = vpop.f32.mrf.mxu0 }
 0x8b4   :  { %8469 = vpow2.f32 %v5756_v11  ;;  %v5754_v0 = vmul.f32 1.442695, %v5709_v2  ;;  %v5727_v51 = vadd.f32 %v8397_v39, %v5598_v9  ;;  %v5592_v49 = vadd.f32 %v5591_v32, %v5421_v30  ;;  %v5744_v39 = vpop.f32.mrf.mxu1 }
 0x8b5   :  { %v8356_v18 = vpop.f32.mrf.mxu0 }
 0x8b6   :  { %v5760_v62 = vmul.f32 1.442695, %v5727_v51  ;;  %v5721_v37 = vadd.f32 %v5720_v33, %v5592_v49  ;;  %v5610_v23 = vadd.f32 %v8356_v18, %v5445_v60  ;;  %8471 = vpow2.f32 %v5754_v0 }
 0x8b7   :  { %v5603_v47 = vpop.f32.mrf.mxu0 }
 0x8b8   :  { %8473 = vpow2.f32 %v5760_v62  ;;  %v5758_v13 = vmul.f32 1.442695, %v5721_v37  ;;  %v5739_v40 = vadd.f32 %v8400_v25, %v5610_v23  ;;  %v5604_v15 = vadd.f32 %v5603_v47, %v5437_v12 }
 0x8b9   :  { %v8359_v7 = vpop.f32.mrf.mxu0 }
 0x8ba   :  { %v5733_v48 = vadd.f32 %v5732_v1, %v5604_v15  ;;  %v5622_v26 = vadd.f32 %v8359_v7, %v5461_v3  ;;  %8475 = vpow2.f32 %v5758_v13  ;;  %v5764_v46 = vmul.f32 1.442695, %v5739_v40 }
 0x8bb   :  { %v5615_v29 = vpop.f32.mrf.mxu0 }
 0x8bc   :  { %v5762_v35 = vmul.f32 1.442695, %v5733_v48  ;;  %v5751_v14 = vadd.f32 %v8403_v58, %v5622_v26  ;;  %v5616_v55 = vadd.f32 %v5615_v29, %v5453_v41 }
 0x8be   :  { %8477 = vpow2.f32 %v5762_v35  ;;  %v5745_v28 = vadd.f32 %v5744_v39, %v5616_v55  ;;  %v5768_v6 = vmul.f32 1.442695, %v5751_v14 }
 0x8bf   :  { %8479 = vpow2.f32 %v5764_v46 }
 0x8c0   :  { %v5766_v34 = vmul.f32 1.442695, %v5745_v28 }
 0x8c1   :  { %v11306_v45 = vpop.eup %8469 }
 0x8c2   :  { %8481 = vpow2.f32 %v5766_v34  ;;  %5772 = vrot.lane.b32.xlu0 %v11306_v45, %s8617_s3 }
 0x8c3   :  { %v11310_v57 = vpop.eup %8471  ;;  %8483 = vpow2.f32 %v5768_v6 }
 0x8c5   :  { %v11312_v38 = vpop.eup %8473 }
 0x8c6   :  { %5776 = vrot.lane.b32.xlu1 %v11312_v38, %s8617_s3  ;;  %5770 = vrot.lane.b32.xlu0 %v11310_v57, %s8617_s3 }
 0x8c7   :  { %v11318_v31 = vpop.eup %8475 }
 0x8ca   :  { %5774 = vrot.lane.b32.xlu1 %v11318_v31, %s8617_s3 }
 0x8cb   :  { %v11322_v33 = vpop.eup %8477 }
 0x8cc   :  { %5778 = vrot.lane.b32.xlu0 %v11322_v33, %s8617_s3  ;;  %v11326_v44 = vpop.eup %8479 }
 0x8ce   :  { %5780 = vrot.lane.b32.xlu1 %v11326_v44, %s8617_s3 }
 0x8cf   :  { %v11330_v53 = vpop.eup %8481 }
 0x8d0   :  { %5782 = vrot.lane.b32.xlu0 %v11330_v53, %s8617_s3  ;;  %v11334_v42 = vpop.eup %8483 }
 0x8d2   :  { %5784 = vrot.lane.b32.xlu1 %v11334_v42, %s8617_s3 }
 0x934   :  { %v5773_v43 = vpop.permute.xlu0 %5772 }
 0x935   :  { %v5787_v16 = vadd.f32 %v11306_v45, %v5773_v43 }
 0x937   :  { %5796 = vrot.lane.b32.xlu0 %v5787_v16, %s8618_s13 }
 0x938   :  { %v5777_v61 = vpop.permute.xlu1 %5776  ;;  %v5771_v21 = vpop.permute.xlu0 %5770 }
 0x939   :  { %v5789_v20 = vadd.f32 %v11312_v38, %v5777_v61  ;;  %v5786_v10 = vadd.f32 %v11310_v57, %v5771_v21 }
 0x93b   :  { %5800 = vrot.lane.b32.xlu1 %v5789_v20, %s8618_s13  ;;  %5794 = vrot.lane.b32.xlu0 %v5786_v10, %s8618_s13 }
 0x93c   :  { %v5775_v17 = vpop.permute.xlu1 %5774 }
 0x93d   :  { %v5788_v24 = vadd.f32 %v11318_v31, %v5775_v17 }
 0x93e   :  { %v5779_v27 = vpop.permute.xlu0 %5778 }
 0x93f   :  { %v5790_v25 = vadd.f32 %v11322_v33, %v5779_v27  ;;  %5798 = vrot.lane.b32.xlu1 %v5788_v24, %s8618_s13 }
 0x940   :  { %v5781_v5 = vpop.permute.xlu1 %5780 }
 0x941   :  { %v5791_v11 = vadd.f32 %v11326_v44, %v5781_v5  ;;  %5802 = vrot.lane.b32.xlu0 %v5790_v25, %s8618_s13 }
 0x942   :  { %v5783_v2 = vpop.permute.xlu0 %5782 }
 0x943   :  { %v5792_v9 = vadd.f32 %v11330_v53, %v5783_v2  ;;  %5804 = vrot.lane.b32.xlu1 %v5791_v11, %s8618_s13 }
 0x944   :  { %v5785_v30 = vpop.permute.xlu1 %5784 }
 0x945   :  { %v5793_v63 = vadd.f32 %v11334_v42, %v5785_v30  ;;  %5806 = vrot.lane.b32.xlu0 %v5792_v9, %s8618_s13 }
 0x947   :  { %5808 = vrot.lane.b32.xlu1 %v5793_v63, %s8618_s13 }
 0x9a9   :  { %v5797_v19 = vpop.permute.xlu0 %5796 }
 0x9aa   :  { %v5811_v32 = vadd.f32 %v5797_v19, %v5787_v16 }
 0x9ac   :  { %8485 = vrcp.f32 %v5811_v32 }
 0x9ad   :  { %v5801_v60 = vpop.permute.xlu1 %5800  ;;  %v5795_v0 = vpop.permute.xlu0 %5794 }
 0x9ae   :  { %v5813_v51 = vadd.f32 %v5801_v60, %v5789_v20  ;;  %v5810_v49 = vadd.f32 %v5795_v0, %v5786_v10 }
 0x9b0   :  { %8487 = vrcp.f32 %v5813_v51 }
 0x9b1   :  { %8489 = vrcp.f32 %v5810_v49  ;;  %v5799_v1 = vpop.permute.xlu1 %5798 }
 0x9b2   :  { %v5812_v18 = vadd.f32 %v5799_v1, %v5788_v24 }
 0x9b3   :  { %v5803_v12 = vpop.permute.xlu0 %5802 }
 0x9b4   :  { %8491 = vrcp.f32 %v5812_v18  ;;  %v5814_v50 = vadd.f32 %v5803_v12, %v5790_v25 }
 0x9b5   :  { %v5805_v62 = vpop.permute.xlu1 %5804 }
 0x9b6   :  { %8493 = vrcp.f32 %v5814_v50  ;;  %v5815_v37 = vadd.f32 %v5805_v62, %v5791_v11 }
 0x9b7   :  { %v5807_v23 = vpop.permute.xlu0 %5806 }
 0x9b8   :  { %8495 = vrcp.f32 %v5815_v37  ;;  %v5816_v47 = vadd.f32 %v5807_v23, %v5792_v9 }
 0x9b9   :  { %v8486_v3 = vpop.eup %8485  ;;  %v5809_v13 = vpop.permute.xlu1 %5808 }
 0x9ba   :  { %v5835_v40 = vmul.f32 %v8486_v3, %v11306_v45  ;;  %8497 = vrcp.f32 %v5816_v47  ;;  %v5817_v15 = vadd.f32 %v5809_v13, %v5793_v63  ;;  %v11933_v47 = vld [vmem:[#allocation76_spill] sm:$0xff]  ;;  %v11934_v13 = vld [vmem:[#allocation79_spill] sm:$0xff] }
 0x9bc   :  { %v5843_v58 = vmul.f32 %v5835_v40, %v10058_v4  ;;  %8499 = vrcp.f32 %v5817_v15 }
 0x9bd   :  { %v8488_v7 = vpop.eup %8487 }
 0x9be   :  { %v8490_v48 = vpop.eup %8489  ;;  %v5856_v26 = vrot.slane %v5843_v58, 4  ;;  %v5837_v41 = vmul.f32 %v8488_v7, %v11312_v38 }
 0x9bf   :  { %v5834_v29 = vmul.f32 %v8490_v48, %v11310_v57 }
 0x9c0   :  { %v5857_v46 = vadd.f32 %v5856_v26, %v5843_v58  ;;  %v5845_v35 = vmul.f32 %v5837_v41, %v10071_v56 }
 0x9c1   :  { %v8492_v14 = vpop.eup %8491  ;;  %v5842_v55 = vmul.f32 %v5834_v29, %v10055_v59  ;;  %v11935_v29 = vld [vmem:[#allocation78_spill] sm:$0xff] }
 0x9c2   :  { %v5858_v39 = vrot.slane %v5857_v46, 2  ;;  %v5868_v28 = vrot.slane %v5845_v35, 4  ;;  %v5836_v6 = vmul.f32 %v8492_v14, %v11318_v31 }
 0x9c3   :  { %v8494_v34 = vpop.eup %8493  ;;  %v5850_v4 = vrot.slane %v5842_v55, 4 }
 0x9c4   :  { %v5859_v45 = vadd.f32 %v5858_v39, %v5857_v46  ;;  %v5869_v43 = vadd.f32 %v5868_v28, %v5845_v35  ;;  %v5844_v16 = vmul.f32 %v5836_v6, %v10064_v54  ;;  %v5838_v38 = vmul.f32 %v8494_v34, %v11322_v33  ;;  %v11936_v6 = vld [vmem:[#allocation80_spill] sm:$0xff] }
 0x9c5   :  { %v8496_v61 = vpop.eup %8495  ;;  %v5851_v57 = vadd.f32 %v5850_v4, %v5842_v55 }
 0x9c6   :  { %v5860_v21 = vrot.slane %v5859_v45, 1  ;;  %v5870_v20 = vrot.slane %v5869_v43, 2  ;;  %v5862_v56 = vrot.slane %v5844_v16, 4  ;;  %v5846_v10 = vmul.f32 %v5838_v38, %v10078_v22 }
 0x9c7   :  { %v8498_v59 = vpop.eup %8497  ;;  %v5852_v17 = vrot.slane %v5851_v57, 2  ;;  %v5839_v24 = vmul.f32 %v8496_v61, %v11326_v44 }
 0x9c8   :  { %v5871_v31 = vadd.f32 %v5870_v20, %v5869_v43  ;;  %v5863_v27 = vadd.f32 %v5862_v56, %v5844_v16  ;;  %v5874_v25 = vrot.slane %v5846_v10, 4  ;;  %v5861_v11 = vadd.f32 %v5860_v21, %v5859_v45  ;;  %v11937_v20 = vld [vmem:[#allocation81_spill] sm:$0xff] }
 0x9c9   :  { %v8500_v5 = vpop.eup %8499  ;;  %v5853_v2 = vadd.f32 %v5852_v17, %v5851_v57  ;;  %v5847_v54 = vmul.f32 %v5839_v24, %v10083_v8  ;;  %v5840_v33 = vmul.f32 %v8498_v59, %v11330_v53  ;;  %v11932_v8 = vld [vmem:[#allocation77_spill] sm:$0xff] }
 0x9ca   :  { %v5864_v9 = vrot.slane %v5863_v27, 2  ;;  %v5875_v30 = vadd.f32 %v5874_v25, %v5846_v10  ;;  %v5841_v63 = vmul.f32 %v8500_v5, %v11334_v42  ;;  %v5872_v19 = vrot.slane %v5871_v31, 1 }
 0x9cb   :  { %v5854_v22 = vrot.slane %v5853_v2, 1  ;;  %v5880_v32 = vrot.slane %v5847_v54, 4  ;;  %v5848_v60 = vmul.f32 %v5840_v33, %v10088_v52  ;;  %v5899_v50 = vadd.f32 %v5861_v11, %v11932_v8 }
 0x9cc   :  { %v5865_v44 = vadd.f32 %v5864_v9, %v5863_v27  ;;  %v5849_v0 = vmul.f32 %v5841_v63, %v10093_v36  ;;  %v5873_v51 = vadd.f32 %v5872_v19, %v5871_v31  ;;  %v5876_v49 = vrot.slane %v5875_v30, 2  ;;  %v11938_v27 = vld [vmem:[#allocation82_spill] sm:$0xff] }
 0x9cd   :  { %v5855_v1 = vadd.f32 %v5854_v22, %v5853_v2  ;;  %v5881_v18 = vadd.f32 %v5880_v32, %v5847_v54  ;;  %v5886_v12 = vrot.slane %v5848_v60, 4  ;;  %v5907_v48 = vmax.f32 %v5899_v50, 0.0  ;;  %v11939_v2 = vld [vmem:[#allocation83_spill] sm:$0xff] }
 0x9ce   :  { %v5866_v53 = vrot.slane %v5865_v44, 1  ;;  %v5877_v62 = vadd.f32 %v5876_v49, %v5875_v30  ;;  %v5892_v37 = vrot.slane %v5849_v0, 4  ;;  %v5901_v40 = vadd.f32 %v5873_v51, %v11934_v13 }
 0x9cf   :  { %v5882_v23 = vrot.slane %v5881_v18, 2  ;;  %v5887_v42 = vadd.f32 %v5886_v12, %v5848_v60  ;;  %v5898_v3 = vadd.f32 %v5855_v1, %v11933_v47  ;;  %v5922_v16 = vrot.slane %v5907_v48, 7 }
 0x9d0   :  { %v5867_v52 = vadd.f32 %v5866_v53, %v5865_v44  ;;  %v5878_v15 = vrot.slane %v5877_v62, 1  ;;  %v5893_v58 = vadd.f32 %v5892_v37, %v5849_v0  ;;  %v5909_v39 = vmax.f32 %v5901_v40, 0.0 }
 0x9d1   :  { %v5883_v36 = vadd.f32 %v5882_v23, %v5881_v18  ;;  %v5888_v7 = vrot.slane %v5887_v42, 2  ;;  %v5906_v55 = vmax.f32 %v5898_v3, 0.0 }
 0x9d2   :  { %v5879_v26 = vadd.f32 %v5878_v15, %v5877_v62  ;;  %v5894_v41 = vrot.slane %v5893_v58, 2  ;;  %v5900_v46 = vadd.f32 %v5867_v52, %v11935_v29  ;;  %v5926_v59 = vrot.slane %v5909_v39, 5 }
 0x9d3   :  { %v5884_v35 = vrot.slane %v5883_v36, 1  ;;  %v5889_v14 = vadd.f32 %v5888_v7, %v5887_v42  ;;  %v5923_v10 = vsel %vm2252_vm1, %v5922_v16, %v5906_v55 }
 0x9d4   :  { %v5895_v28 = vadd.f32 %v5894_v41, %v5893_v58  ;;  %v5902_v34 = vadd.f32 %v5879_v26, %v11936_v6  ;;  %v5908_v4 = vmax.f32 %v5900_v46, 0.0 }
 0x9d5   :  { %v5885_v45 = vadd.f32 %v5884_v35, %v5883_v36  ;;  %v5890_v43 = vrot.slane %v5889_v14, 1 }
 0x9d6   :  { %v5896_v38 = vrot.slane %v5895_v28, 1  ;;  %v5910_v61 = vmax.f32 %v5902_v34, 0.0  ;;  %v5924_v57 = vrot.slane %v5908_v4, 6 }
 0x9d7   :  { %v5891_v21 = vadd.f32 %v5890_v43, %v5889_v14  ;;  %v5903_v56 = vadd.f32 %v5885_v45, %v11937_v20 }
 0x9d8   :  { %v5897_v17 = vadd.f32 %v5896_v38, %v5895_v28  ;;  %v5925_v24 = vsel %vm2255_vm2, %v5924_v57, %v5923_v10  ;;  %v5928_v31 = vrot.slane %v5910_v61, 4 }
 0x9d9   :  { %v5904_v25 = vadd.f32 %v5891_v21, %v11938_v27  ;;  %v5911_v5 = vmax.f32 %v5903_v56, 0.0  ;;  %v5927_v11 = vsel %vm2258_vm3, %v5926_v59, %v5925_v24 }
 0x9da   :  { %v5905_v54 = vadd.f32 %v5897_v17, %v11939_v2  ;;  %v5929_v33 = vsel %vm2261_vm4, %v5928_v31, %v5927_v11 }
 0x9db   :  { %v5912_v9 = vmax.f32 %v5904_v25, 0.0  ;;  %v5930_v30 = vrot.slane %v5911_v5, 3 }
 0x9dc   :  { %v5913_v63 = vmax.f32 %v5905_v54, 0.0 }
 0x9dd   :  { %v5931_v19 = vsel %vm2264_vm5, %v5930_v30, %v5929_v33  ;;  %v5932_v22 = vrot.slane %v5912_v9, 2 }
 0x9de   :  { %v5934_v32 = vrot.slane %v5913_v63, 1 }
 0x9df   :  { %v5933_v60 = vsel %vm2267_vm6, %v5932_v22, %v5931_v19 }
 0x9e0   :  { %v5935_v44 = vsel %vm2270_vm7, %v5934_v32, %v5933_v60 }
 0x9e1   :  { %5937 = vst [vmem:[#allocation11] sm:$0xff] %v5935_v44 }
 0x9e2   :  { %8592 = shalt.err (!%p8589_p10)
}
 0x9e3   :  { %5947 = dma.vmem_to_hbm [thread:$0]  %s5945_s15, 128, %s11393_s5, [#allocation5]  }
 0x9e4   :  { %8607 = dma.done.wait [#allocation5], 128  }
 0x9e5   :  { %8608 = vsyncadd [#allocation5], 4294967168 }
 0x9e6   :  { %5951 = vsyncpa [#allocation4], 1 }
 0x9e7   :  { %5952 = vsyncpa [#allocation7], 1 }
 0x9e8   :  { %5953 = vsyncpa [#allocation10], 1 }
 0x9e9   :  { %5954 = vsyncpa [#allocation5], 1 }

</bundles_post_ra>
